<compile_context>
chip_gen: v7x
topology: tpu7x:2x2x1
jax: 0.10.0
libtpu: 0.0.40
codegen_flags: <defaults>
</compile_context>

<pallas_src>
import functools

import jax
import jax.numpy as jnp
from jax.experimental import pallas as pl
from jax.experimental.pallas import tpu as pltpu

IMAGE_EMBED_DIM = 384
FEAT_DIM = 2 * IMAGE_EMBED_DIM        # 768 = 48 channels x 16 pool positions
IN_CH = 5
OUT_CH = 48
KSIZE = 3
POOL_OUT = 16
BN_EPS = 1e-5
MAX_BLOCK_B = 128                     # lane-tile aligned batch tile


# ------------------ fused conv + pool + BN/ReLU + Linear kernel -------------------------
def fused_conv_mapping_kernel(x_ref, wc_ref, scale_ref, shift_ref, wl_ref, bl_ref,
                              o_ref, *, seq_len, block_b):
    # x_ref    : (5, L*TB)   input tile, lane index = l*TB + b (batch minor)
    # wc_ref   : (3, 48, 5)  conv weight per tap: wc[k, o, i] = conv_w[o, i, k]
    # scale_ref: (768, 1)    folded eval-mode BN scale, kernel feature order p*48 + o
    # shift_ref: (768, 1)    folded eval-mode BN shift (+ conv bias), same order
    # wl_ref   : (384, 768)  Linear weight, columns permuted to p*48 + o
    # bl_ref   : (384, 1)    Linear bias
    # o_ref    : (384, TB)   transposed output tile (host transposes once at the end)
    L, TB = seq_len, block_b
    N = L * TB
    pool_win = L // POOL_OUT

    x = x_ref[...].astype(jnp.float32)                               # (5, N)

    # ---- Conv1d(pad=1) taps via lane rolls + boundary masks (no concats / copies) -----
    lane = jax.lax.broadcasted_iota(jnp.int32, (1, N), 1)            # lane = l*TB + b
    x_m1 = jnp.where(lane >= TB,
                     pltpu.roll(x, shift=TB, axis=1), 0.0)           # x[l-1], 0 at l == 0
    x_p1 = jnp.where(lane < (L - 1) * TB,
                     pltpu.roll(x, shift=N - TB, axis=1), 0.0)       # x[l+1], 0 at l == L-1

    # ---- conv: three lane-wide (48,5)@(5,N) MXU matmuls, batch folded into lanes ------
    wc = wc_ref[...].astype(jnp.float32)
    conv = (jnp.dot(wc[0], x_m1, preferred_element_type=jnp.float32)
            + jnp.dot(wc[1], x, preferred_element_type=jnp.float32)
            + jnp.dot(wc[2], x_p1, preferred_element_type=jnp.float32))   # (48, N)

    # ---- AdaptiveMaxPool1d(16): running max over each window via lane rolls -----------
    m = conv
    if (pool_win & (pool_win - 1)) == 0:                             # power-of-two window
        s = 1
        while s < pool_win:
            m = jnp.maximum(m, pltpu.roll(m, shift=N - s * TB, axis=1))
            s *= 2
    else:                                                            # general window size
        for w in range(1, pool_win):
            m = jnp.maximum(m, pltpu.roll(conv, shift=N - w * TB, axis=1))
    # pooled value for (o, p, b) now lives at lane p*pool_win*TB + b of row o

    # ---- stack the 16 pooled lane slabs on sublanes: h[p*48 + o, b] --------------------
    h = jnp.concatenate(
        [m[:, p * pool_win * TB:p * pool_win * TB + TB] for p in range(POOL_OUT)],
        axis=0)                                                      # (768, TB)

    # ---- eval BatchNorm (conv bias folded into shift) + ReLU; Dropout(eval) = identity -
    h = jnp.maximum(h * scale_ref[...] + shift_ref[...], 0.0)

    # ---- Linear with batch on lanes: (384,768)@(768,TB) + bias -------------------------
    y = jnp.dot(wl_ref[...], h, preferred_element_type=jnp.float32) + bl_ref[...]
    o_ref[...] = y.astype(o_ref.dtype)


# ---------------------------------- wrapper ---------------------------------------------
def conv_mapping_forward(x_list, params):
    concat = jnp.concatenate(list(x_list[1:]), axis=1)               # (B, 5, L)
    B, C, L = concat.shape
    assert C == IN_CH and L % POOL_OUT == 0, "need 5 channels and L % 16 == 0"

    TB = B if B <= MAX_BLOCK_B else MAX_BLOCK_B
    grid = pl.cdiv(B, TB)
    Bp = grid * TB
    if Bp != B:                                                      # only when B > 128 and ragged
        concat = jnp.pad(concat, ((0, Bp - B), (0, 0), (0, 0)))

    # Host-side packing (one fused XLA copy, replaces the plain concat materialisation):
    #   x_pack[g, i, l*TB + b] = concat[g*TB + b, i, l]   -> kernel lanes are batch-minor.
    x_pack = (concat.reshape(grid, TB, IN_CH, L)
              .transpose(0, 2, 3, 1)
              .reshape(grid, IN_CH, L * TB))

    # Conv weight per tap: wc[k, o, i] = conv_w[o, i, k].
    wc = jnp.transpose(params["conv_w"], (2, 0, 1))                  # (3, 48, 5)

    # Fold eval-mode BN + conv bias into per-feature scale/shift (torch feature o*16+p),
    # then permute every per-feature operand into the kernel order p*48+o so the kernel
    # never reorders features (torch's flatten permutation is done once, on the host).
    scale1d = params["bn_gamma"] / jnp.sqrt(params["bn_var"] + BN_EPS)
    bias_flat = jnp.repeat(params["conv_b"], POOL_OUT)               # feature o*16+p -> conv_b[o]
    shift1d = params["bn_beta"] + (bias_flat - params["bn_mean"]) * scale1d
    perm = lambda v: v.reshape(OUT_CH, POOL_OUT).T.reshape(FEAT_DIM)  # o*16+p -> p*48+o
    scale = perm(scale1d).reshape(FEAT_DIM, 1)
    shift = perm(shift1d).reshape(FEAT_DIM, 1)
    wl = (params["lin_w"].reshape(IMAGE_EMBED_DIM, OUT_CH, POOL_OUT)
          .transpose(0, 2, 1)
          .reshape(IMAGE_EMBED_DIM, FEAT_DIM))                       # (384, 768), cols p*48+o
    bl = params["lin_b"].reshape(IMAGE_EMBED_DIM, 1)

    kernel = functools.partial(fused_conv_mapping_kernel, seq_len=L, block_b=TB)
    out_t = pl.pallas_call(
        kernel,
        out_shape=jax.ShapeDtypeStruct((IMAGE_EMBED_DIM, Bp), jnp.float32),
        grid=(grid,),
        in_specs=[
            pl.BlockSpec((None, IN_CH, L * TB), lambda g: (g, 0, 0)),
            pl.BlockSpec((KSIZE, OUT_CH, IN_CH), lambda g: (0, 0, 0)),      # resident
            pl.BlockSpec((FEAT_DIM, 1), lambda g: (0, 0)),                  # resident
            pl.BlockSpec((FEAT_DIM, 1), lambda g: (0, 0)),                  # resident
            pl.BlockSpec((IMAGE_EMBED_DIM, FEAT_DIM), lambda g: (0, 0)),    # resident
            pl.BlockSpec((IMAGE_EMBED_DIM, 1), lambda g: (0, 0)),           # resident
        ],
        out_specs=pl.BlockSpec((IMAGE_EMBED_DIM, TB), lambda g: (0, g)),
        compiler_params=pltpu.CompilerParams(
            dimension_semantics=("parallel",),
            vmem_limit_bytes=48 * 1024 * 1024),
    )(x_pack, wc, scale, shift, wl, bl)

    # (384, B) -> (B, 384): tiny host-side layout plumbing; keeps the kernel's
    # output block lane-dense in the batch dimension.
    return out_t[:, :B].T


# -------------------------------- pure-JAX reference ------------------------------------
def reference_forward(x_list, params):
    concat = jnp.concatenate(list(x_list[1:]), axis=1)               # (B, 5, L)
    out = jax.lax.conv_general_dilated(
        concat, params["conv_w"], window_strides=(1,), padding=((1, 1),),
        dimension_numbers=("NCH", "OIH", "NCH"))
    out = out + params["conv_b"][None, :, None]
    B, C, L = out.shape
    pooled = jnp.max(out.reshape(B, C, POOL_OUT, L // POOL_OUT), axis=-1)
    v = pooled.reshape(B, C * POOL_OUT)
    scale = params["bn_gamma"] / jnp.sqrt(params["bn_var"] + BN_EPS)
    h = jnp.maximum((v - params["bn_mean"]) * scale + params["bn_beta"], 0.0)
    return h @ params["lin_w"].T + params["lin_b"]


if __name__ == "__main__":
    B, L = 4, 32
    key = jax.random.PRNGKey(0)
    keys = jax.random.split(key, 10)

    # x is a list; x[1:] channel dims sum to 5 (Conv1d expects 5 input channels).
    x0 = jax.random.normal(keys[0], (B, 1, L), jnp.float32)          # ignored by forward
    x1 = jax.random.normal(keys[1], (B, 2, L), jnp.float32)
    x2 = jax.random.normal(keys[2], (B, 3, L), jnp.float32)
    x_list = [x0, x1, x2]

    params = {
        "conv_w": 0.2 * jax.random.normal(keys[3], (OUT_CH, IN_CH, KSIZE), jnp.float32),
        "conv_b": 0.1 * jax.random.normal(keys[4], (OUT_CH,), jnp.float32),
        "bn_gamma": 1.0 + 0.1 * jax.random.normal(keys[5], (FEAT_DIM,), jnp.float32),
        "bn_beta": 0.1 * jax.random.normal(keys[6], (FEAT_DIM,), jnp.float32),
        "bn_mean": 0.1 * jax.random.normal(keys[7], (FEAT_DIM,), jnp.float32),
        "bn_var": jax.random.uniform(keys[8], (FEAT_DIM,), jnp.float32, 0.5, 1.5),
        "lin_w": 0.05 * jax.random.normal(keys[9], (IMAGE_EMBED_DIM, FEAT_DIM), jnp.float32),
        "lin_b": 0.01 * jnp.arange(IMAGE_EMBED_DIM, dtype=jnp.float32),
    }

    out = conv_mapping_forward(x_list, params)
    out = jax.block_until_ready(out)
    assert out.shape == (B, IMAGE_EMBED_DIM) and out.dtype == jnp.float32

    ref = jax.block_until_ready(reference_forward(x_list, params))
    assert jnp.allclose(out, ref, rtol=1e-3, atol=1e-3), "mismatch vs pure-JAX reference"

    print("KERNEL_OK")
</pallas_src>

<mosaic_0001>
module attributes {stable_mosaic.version = 11 : i64} {
  func.func @fused_conv_mapping_kernel(%arg0: i32, %arg1: memref<1x5x128xf32, #tpu.memory_space<vmem>>, %arg2: memref<3x48x5xf32, #tpu.memory_space<vmem>>, %arg3: memref<768x1xf32, #tpu.memory_space<vmem>>, %arg4: memref<768x1xf32, #tpu.memory_space<vmem>>, %arg5: memref<384x768xf32, #tpu.memory_space<vmem>>, %arg6: memref<384x1xf32, #tpu.memory_space<vmem>>, %arg7: memref<384x4xf32, #tpu.memory_space<vmem>>) attributes {dimension_semantics = [#tpu.dimension_semantics<parallel>], iteration_bounds = array<i64: 1>, scalar_prefetch = 0 : i64, scratch_operands = 0 : i64, tpu.core_type = #tpu.core_type<tc>, window_params = [{transform_indices = @transform_0, window_bounds = array<i64: 1, 5, 128>}, {pipeline_mode = #tpu.pipeline_mode<synchronous>, transform_indices = @transform_1, window_bounds = array<i64: 3, 48, 5>}, {pipeline_mode = #tpu.pipeline_mode<synchronous>, transform_indices = @transform_2, window_bounds = array<i64: 768, 1>}, {pipeline_mode = #tpu.pipeline_mode<synchronous>, transform_indices = @transform_3, window_bounds = array<i64: 768, 1>}, {pipeline_mode = #tpu.pipeline_mode<synchronous>, transform_indices = @transform_4, window_bounds = array<i64: 384, 768>}, {pipeline_mode = #tpu.pipeline_mode<synchronous>, transform_indices = @transform_5, window_bounds = array<i64: 384, 1>}, {transform_indices = @transform_6, window_bounds = array<i64: 384, 4>}]} {
    %c0 = arith.constant 0 : index
    %c0_0 = arith.constant 0 : index
    %c0_1 = arith.constant 0 : index
    %0 = vector.load %arg1[%c0, %c0_0, %c0_1] : memref<1x5x128xf32, #tpu.memory_space<vmem>>, vector<1x5x128xf32>
    %1 = vector.shape_cast %0 : vector<1x5x128xf32> to vector<5x128xf32>
    %2 = tpu.iota {dimensions = array<i32: 1>} : vector<1x128xi32>
    %c4_i32 = arith.constant 4 : i32
    %3 = vector.broadcast %c4_i32 : i32 to vector<1x128xi32>
    %4 = arith.cmpi sge, %2, %3 : vector<1x128xi32>
    %c4_i32_2 = arith.constant 4 : i32
    %5 = tpu.dynamic_rotate %1 by %c4_i32_2 dim 1 : vector<5x128xf32>, i32 -> vector<5x128xf32>
    %cst = arith.constant 0.000000e+00 : f32
    %6 = vector.shape_cast %4 : vector<1x128xi1> to vector<1x128xi1>
    %7 = vector.broadcast %6 : vector<1x128xi1> to vector<5x128xi1>
    %8 = vector.broadcast %cst : f32 to vector<5x128xf32>
    %9 = arith.select %7, %5, %8 : vector<5x128xi1>, vector<5x128xf32>
    %c124_i32 = arith.constant 124 : i32
    %10 = vector.broadcast %c124_i32 : i32 to vector<1x128xi32>
    %11 = arith.cmpi slt, %2, %10 : vector<1x128xi32>
    %c124_i32_3 = arith.constant 124 : i32
    %12 = tpu.dynamic_rotate %1 by %c124_i32_3 dim 1 : vector<5x128xf32>, i32 -> vector<5x128xf32>
    %cst_4 = arith.constant 0.000000e+00 : f32
    %13 = vector.shape_cast %11 : vector<1x128xi1> to vector<1x128xi1>
    %14 = vector.broadcast %13 : vector<1x128xi1> to vector<5x128xi1>
    %15 = vector.broadcast %cst_4 : f32 to vector<5x128xf32>
    %16 = arith.select %14, %12, %15 : vector<5x128xi1>, vector<5x128xf32>
    %c0_5 = arith.constant 0 : index
    %c0_6 = arith.constant 0 : index
    %c0_7 = arith.constant 0 : index
    %17 = vector.load %arg2[%c0_5, %c0_6, %c0_7] : memref<3x48x5xf32, #tpu.memory_space<vmem>>, vector<3x48x5xf32>
    %18 = vector.extract_strided_slice %17 {offsets = [0, 0, 0], sizes = [1, 48, 5], strides = [1, 1, 1]} : vector<3x48x5xf32> to vector<1x48x5xf32>
    %19 = vector.shape_cast %18 : vector<1x48x5xf32> to vector<48x5xf32>
    %cst_8 = arith.constant dense<0.000000e+00> : vector<48x128xf32>
    %20 = tpu.matmul %19, %9, %cst_8 {dimension_numbers = #tpu.dot_dimension_numbers<[1], [0], [0], [1], [0, 0, 1, 1], [], []>} : vector<48x5xf32>, vector<5x128xf32>, vector<48x128xf32> -> vector<48x128xf32>
    %21 = vector.extract_strided_slice %17 {offsets = [1, 0, 0], sizes = [1, 48, 5], strides = [1, 1, 1]} : vector<3x48x5xf32> to vector<1x48x5xf32>
    %22 = vector.shape_cast %21 : vector<1x48x5xf32> to vector<48x5xf32>
    %cst_9 = arith.constant dense<0.000000e+00> : vector<48x128xf32>
    %23 = tpu.matmul %22, %1, %cst_9 {dimension_numbers = #tpu.dot_dimension_numbers<[1], [0], [0], [1], [0, 0, 1, 1], [], []>} : vector<48x5xf32>, vector<5x128xf32>, vector<48x128xf32> -> vector<48x128xf32>
    %24 = arith.addf %20, %23 : vector<48x128xf32>
    %25 = vector.extract_strided_slice %17 {offsets = [2, 0, 0], sizes = [1, 48, 5], strides = [1, 1, 1]} : vector<3x48x5xf32> to vector<1x48x5xf32>
    %26 = vector.shape_cast %25 : vector<1x48x5xf32> to vector<48x5xf32>
    %cst_10 = arith.constant dense<0.000000e+00> : vector<48x128xf32>
    %27 = tpu.matmul %26, %16, %cst_10 {dimension_numbers = #tpu.dot_dimension_numbers<[1], [0], [0], [1], [0, 0, 1, 1], [], []>} : vector<48x5xf32>, vector<5x128xf32>, vector<48x128xf32> -> vector<48x128xf32>
    %28 = arith.addf %24, %27 : vector<48x128xf32>
    %c124_i32_11 = arith.constant 124 : i32
    %29 = tpu.dynamic_rotate %28 by %c124_i32_11 dim 1 : vector<48x128xf32>, i32 -> vector<48x128xf32>
    %30 = arith.maximumf %28, %29 : vector<48x128xf32>
    %31 = vector.extract_strided_slice %30 {offsets = [0, 0], sizes = [48, 4], strides = [1, 1]} : vector<48x128xf32> to vector<48x4xf32>
    %32 = vector.extract_strided_slice %30 {offsets = [0, 8], sizes = [48, 4], strides = [1, 1]} : vector<48x128xf32> to vector<48x4xf32>
    %33 = vector.extract_strided_slice %30 {offsets = [0, 16], sizes = [48, 4], strides = [1, 1]} : vector<48x128xf32> to vector<48x4xf32>
    %34 = vector.extract_strided_slice %30 {offsets = [0, 24], sizes = [48, 4], strides = [1, 1]} : vector<48x128xf32> to vector<48x4xf32>
    %35 = vector.extract_strided_slice %30 {offsets = [0, 32], sizes = [48, 4], strides = [1, 1]} : vector<48x128xf32> to vector<48x4xf32>
    %36 = vector.extract_strided_slice %30 {offsets = [0, 40], sizes = [48, 4], strides = [1, 1]} : vector<48x128xf32> to vector<48x4xf32>
    %37 = vector.extract_strided_slice %30 {offsets = [0, 48], sizes = [48, 4], strides = [1, 1]} : vector<48x128xf32> to vector<48x4xf32>
    %38 = vector.extract_strided_slice %30 {offsets = [0, 56], sizes = [48, 4], strides = [1, 1]} : vector<48x128xf32> to vector<48x4xf32>
    %39 = vector.extract_strided_slice %30 {offsets = [0, 64], sizes = [48, 4], strides = [1, 1]} : vector<48x128xf32> to vector<48x4xf32>
    %40 = vector.extract_strided_slice %30 {offsets = [0, 72], sizes = [48, 4], strides = [1, 1]} : vector<48x128xf32> to vector<48x4xf32>
    %41 = vector.extract_strided_slice %30 {offsets = [0, 80], sizes = [48, 4], strides = [1, 1]} : vector<48x128xf32> to vector<48x4xf32>
    %42 = vector.extract_strided_slice %30 {offsets = [0, 88], sizes = [48, 4], strides = [1, 1]} : vector<48x128xf32> to vector<48x4xf32>
    %43 = vector.extract_strided_slice %30 {offsets = [0, 96], sizes = [48, 4], strides = [1, 1]} : vector<48x128xf32> to vector<48x4xf32>
    %44 = vector.extract_strided_slice %30 {offsets = [0, 104], sizes = [48, 4], strides = [1, 1]} : vector<48x128xf32> to vector<48x4xf32>
    %45 = vector.extract_strided_slice %30 {offsets = [0, 112], sizes = [48, 4], strides = [1, 1]} : vector<48x128xf32> to vector<48x4xf32>
    %46 = vector.extract_strided_slice %30 {offsets = [0, 120], sizes = [48, 4], strides = [1, 1]} : vector<48x128xf32> to vector<48x4xf32>
    %47 = tpu.concatenate %31, %32, %33, %34, %35, %36, %37, %38, %39, %40, %41, %42, %43, %44, %45, %46 in 0 : vector<48x4xf32>, vector<48x4xf32>, vector<48x4xf32>, vector<48x4xf32>, vector<48x4xf32>, vector<48x4xf32>, vector<48x4xf32>, vector<48x4xf32>, vector<48x4xf32>, vector<48x4xf32>, vector<48x4xf32>, vector<48x4xf32>, vector<48x4xf32>, vector<48x4xf32>, vector<48x4xf32>, vector<48x4xf32> -> vector<768x4xf32>
    %c0_12 = arith.constant 0 : index
    %c0_13 = arith.constant 0 : index
    %48 = vector.load %arg3[%c0_12, %c0_13] : memref<768x1xf32, #tpu.memory_space<vmem>>, vector<768x1xf32>
    %49 = vector.broadcast %48 : vector<768x1xf32> to vector<768x4xf32>
    %50 = arith.mulf %47, %49 : vector<768x4xf32>
    %c0_14 = arith.constant 0 : index
    %c0_15 = arith.constant 0 : index
    %51 = vector.load %arg4[%c0_14, %c0_15] : memref<768x1xf32, #tpu.memory_space<vmem>>, vector<768x1xf32>
    %52 = vector.broadcast %51 : vector<768x1xf32> to vector<768x4xf32>
    %53 = arith.addf %50, %52 : vector<768x4xf32>
    %cst_16 = arith.constant 0.000000e+00 : f32
    %54 = vector.broadcast %cst_16 : f32 to vector<768x4xf32>
    %55 = arith.maximumf %53, %54 : vector<768x4xf32>
    %c0_17 = arith.constant 0 : index
    %c0_18 = arith.constant 0 : index
    %56 = vector.load %arg5[%c0_17, %c0_18] : memref<384x768xf32, #tpu.memory_space<vmem>>, vector<384x768xf32>
    %cst_19 = arith.constant dense<0.000000e+00> : vector<384x4xf32>
    %57 = tpu.matmul %56, %55, %cst_19 {dimension_numbers = #tpu.dot_dimension_numbers<[1], [0], [0], [1], [0, 0, 1, 1], [], []>} : vector<384x768xf32>, vector<768x4xf32>, vector<384x4xf32> -> vector<384x4xf32>
    %c0_20 = arith.constant 0 : index
    %c0_21 = arith.constant 0 : index
    %58 = vector.load %arg6[%c0_20, %c0_21] : memref<384x1xf32, #tpu.memory_space<vmem>>, vector<384x1xf32>
    %59 = vector.broadcast %58 : vector<384x1xf32> to vector<384x4xf32>
    %60 = arith.addf %57, %59 : vector<384x4xf32>
    %c0_22 = arith.constant 0 : index
    %c0_23 = arith.constant 0 : index
    %61 = vector.load %arg7[%c0_22, %c0_23] : memref<384x4xf32, #tpu.memory_space<vmem>>, vector<384x4xf32>
    tpu.vector_store %arg7[%c0_22, %c0_23], %60 {strides = array<i32>} : memref<384x4xf32, #tpu.memory_space<vmem>>, vector<384x4xf32>,
    return
  }
  func.func @transform_0(%arg0: i32) -> (i32, i32, i32) {
    %c0_i32 = arith.constant 0 : i32
    %c0_i32_0 = arith.constant 0 : i32
    %c0_i32_1 = arith.constant 0 : i32
    return %arg0, %c0_i32, %c0_i32_0 : i32, i32, i32
  }
  func.func @transform_1(%arg0: i32) -> (i32, i32, i32) {
    %c0_i32 = arith.constant 0 : i32
    %c0_i32_0 = arith.constant 0 : i32
    %c0_i32_1 = arith.constant 0 : i32
    %c0_i32_2 = arith.constant 0 : i32
    return %c0_i32, %c0_i32_0, %c0_i32_1 : i32, i32, i32
  }
  func.func @transform_2(%arg0: i32) -> (i32, i32) {
    %c0_i32 = arith.constant 0 : i32
    %c0_i32_0 = arith.constant 0 : i32
    %c0_i32_1 = arith.constant 0 : i32
    return %c0_i32, %c0_i32_0 : i32, i32
  }
  func.func @transform_3(%arg0: i32) -> (i32, i32) {
    %c0_i32 = arith.constant 0 : i32
    %c0_i32_0 = arith.constant 0 : i32
    %c0_i32_1 = arith.constant 0 : i32
    return %c0_i32, %c0_i32_0 : i32, i32
  }
  func.func @transform_4(%arg0: i32) -> (i32, i32) {
    %c0_i32 = arith.constant 0 : i32
    %c0_i32_0 = arith.constant 0 : i32
    %c0_i32_1 = arith.constant 0 : i32
    return %c0_i32, %c0_i32_0 : i32, i32
  }
  func.func @transform_5(%arg0: i32) -> (i32, i32) {
    %c0_i32 = arith.constant 0 : i32
    %c0_i32_0 = arith.constant 0 : i32
    %c0_i32_1 = arith.constant 0 : i32
    return %c0_i32, %c0_i32_0 : i32, i32
  }
  func.func @transform_6(%arg0: i32) -> (i32, i32) {
    %c0_i32 = arith.constant 0 : i32
    %c0_i32_0 = arith.constant 0 : i32
    return %c0_i32, %arg0 : i32, i32
  }
}

</mosaic_0001>

<bundles_post_ra>
// kernel: tpu_custom_call.1
= control target key start
LH: loop header
LB: loop body
LE: loop exit
PB: predicated region body
PF: predicated region fallthrough
CT: control target
= control target key end

     0   :  { %11 = vsyncpa [#allocation3], 0  ;;  %s4207_s21 = smov [#allocation2]   ;;  %s6419_s0 = inlined_call_operand.vmem [shape: f32[1,5,128], index: 0, kind: input, shape index: {}]   ;;  %s6420_s1 = inlined_call_operand.vmem [shape: f32[3,48,5], index: 1, kind: input, shape index: {}]   ;;  %s6421_s2 = inlined_call_operand.vmem [shape: f32[768,1], index: 2, kind: input, shape index: {}]   ;;  %s6422_s3 = inlined_call_operand.vmem [shape: f32[768,1], index: 3, kind: input, shape index: {}]   ;;  %s6423_s4 = inlined_call_operand.hbm [shape: f32[384,768], index: 4, kind: input, shape index: {}]   ;;  %s6424_s5 = inlined_call_operand.vmem [shape: f32[384,1], index: 5, kind: input, shape index: {}]   ;;  %s6425_s6 = inlined_call_operand.vmem [shape: f32[384,4], index: 6, kind: output, shape index: {}]  }
   0x1   :  { %s25_s22 = sshll.u32 %s4207_s21, 4  ;;  %s4183_s25 = scalar_lea.hbm %s6423_s4, 36864  ;;  %s26_s22 = int_to_ptr.vmem [resolvable:$true] %s25_s22 }
   0x2   :  { %p4184_p0 = scmp.ne.s32.totalorder %s6423_s4, %s4183_s25  ;;  %p4187_p1 = scmp.lt.u32.totalorder %s4183_s25, %s6423_s4 }
   0x4   :  { %p4189_p2 = pnand %p4187_p1, %p4184_p0 }
   0x6   :  { %4192 = shalt.err (!%p4189_p2)
}
   0x7   :  { %s4193_s30 = scalar_lea.vmem %s26_s22, 36864  ;;  %p4198_p4 = scmp.lt.s32.totalorder %s26_s22, %s26_s22 }
   0x8   :  { %p4194_p3 = scmp.ne.s32.totalorder %s26_s22, %s4193_s30  ;;  %p4199_p5 = scmp.lt.s32.totalorder %s4193_s30, %s4193_s30 }
   0xa   :  { %p4200_p6 = por %p4199_p5, %p4198_p4 }
   0xc   :  { %p4201_p7 = pnand %p4200_p6, %p4194_p3 }
   0xe   :  { %4204 = shalt.err (!%p4201_p7)
}
   0xf   :  { %s4208_s7 = smov 768   ;;  %s4209_s8 = smov 48  }
  0x10   :  { %31 = dma.hbm_to_vmem [thread:$0]  %s6423_s4, 36864, %s26_s22, [#allocation3], %s4208_s7, %s4208_s7, %s4209_s8  }
  0x11   :  { %4205 = dma.done.wait [#allocation3], 36864  }
  0x12   :  { %4206 = vsyncadd [#allocation3], 4294930432  ;;  %v4210_v0 = vmov 0   ;;  %vm89_vm0 = vcmask 1044480   ;;  %v721_v1 = vld [vmem:[%s6421_s2 + $0x8] sm:$0xff]  ;;  %s4211_s15 = smov 4   ;;  %v38_v61 = vlaneseq }
  0x13   :  { %4182 = vset.pattern.permute.xlu1 %v4210_v0  ;;  %4181 = vset.pattern.permute.xlu0 %v4210_v0  ;;  %v37_v2 = vld [vmem:[%s6419_s0] sm:$0x1f]  ;;  %v722_v3 = vld [vmem:[%s6421_s2 + $0x10] sm:$0xff]  ;;  %s4212_s4 = smov 124   ;;  %v723_v7 = vld [vmem:[%s6421_s2 + $0x18] sm:$0xff]  ;;  %vm70_vm1 = vcmask 39936  }
  0x14   :  { %823 = vperm.xlu1 %4182, %v721_v1   ;;  %41 = vrot.lane.b32.xlu0 %v37_v2, %s4211_s15  ;;  %v724_v4 = vld [vmem:[%s6421_s2 + $0x20] sm:$0xff]  ;;  %v726_v6 = vld [vmem:[%s6421_s2 + $0x30] sm:$0xff]  ;;  %v725_v9 = vld [vmem:[%s6421_s2 + $0x28] sm:$0xff]  ;;  %v39_v0 = vand.u32 127, %v38_v61  ;;  %s4215_s17 = smov 112   ;;  %s4216_s18 = smov 104  }
  0x15   :  { %3747 = vmatprep.subr.msk.mxu0 %vm89_vm0, %v37_v2  ;;  %v720_v5 = vld [vmem:[%s6421_s2] sm:$0xff]  ;;  %v58_v10 = vld [vmem:[%s6420_s1 + $0x30] sm:$0xff]  ;;  %v727_v12 = vld [vmem:[%s6421_s2 + $0x38] sm:$0xff]  ;;  %s4217_s19 = smov 96   ;;  %s4218_s0 = smov 88   ;;  %vm3651_vm4 = vcmask 31744  }
  0x16   :  { %3748 = vmatpush3.msk.msra.mxu0 %vm89_vm0, %v37_v2  ;;  %v728_v8 = vld [vmem:[%s6421_s2 + $0x40] sm:$0xff]  ;;  %v730_v11 = vld [vmem:[%s6421_s2 + $0x50] sm:$0xff]  ;;  %3749 = vmatprep.mubr.msk.f32.mxu0 %vm70_vm1, %v58_v10  ;;  %v59_v13 = vld [vmem:[%s6420_s1 + $0x38] sm:$0xff]  ;;  %vm40_vm2 = vcmp.ge.s32.totalorder %v39_v0, 4  ;;  %vm46_vm3 = vcmp.lt.s32.totalorder %v39_v0, 124  ;;  %s4219_s20 = smov 80  }
  0x17   :  { %3750 = vmatmul.mubr.msk.f32.vlgmr.msra.gmra.mrb[0].mxu0 %vm70_vm1, %v59_v13  ;;  %v60_v14 = vld [vmem:[%s6420_s1 + $0x40] sm:$0xff]  ;;  %v61_v15 = vld [vmem:[%s6420_s1 + $0x48] sm:$0xff]  ;;  %v62_v16 = vld [vmem:[%s6420_s1 + $0x50] sm:$0xff]  ;;  %s4220_s21 = smov 72   ;;  %s4222_s22 = smov 56  }
  0x18   :  { %828 = vperm.xlu1 %4182, %v722_v3   ;;  %47 = vrot.lane.b32.xlu0 %v37_v2, %s4212_s4  ;;  %v732_v17 = vld [vmem:[%s6421_s2 + $0x60] sm:$0xff]  ;;  %v729_v18 = vld [vmem:[%s6421_s2 + $0x48] sm:$0xff]  ;;  %v63_v19 = vld [vmem:[%s6420_s1 + $0x58] sm:$0xff]  ;;  %s4223_s23 = smov 40   ;;  %s4224_s24 = smov 32  }
  0x19   :  { %3752 = vmatprep.mubr.msk.f32.mxu0 %vm70_vm1, %v60_v14  ;;  %v52_v20 = vld [vmem:[%s6420_s1] sm:$0xff]  ;;  %v734_v21 = vld [vmem:[%s6421_s2 + $0x70] sm:$0xff]  ;;  %v731_v22 = vld [vmem:[%s6421_s2 + $0x58] sm:$0xff]  ;;  %s4225_s25 = smov 24   ;;  %s4226_s26 = smov 16  }
  0x1a   :  { %v736_v23 = vld [vmem:[%s6421_s2 + $0x80] sm:$0xff]  ;;  %v733_v24 = vld [vmem:[%s6421_s2 + $0x68] sm:$0xff]  ;;  %v738_v25 = vld [vmem:[%s6421_s2 + $0x90] sm:$0xff]  ;;  %s4227_s27 = smov 8  }
  0x1b   :  { %3753 = vmatmul.mubr.msk.f32.gmra.mrb[2].mxu0 %vm70_vm1, %v61_v15  ;;  %v735_v26 = vld [vmem:[%s6421_s2 + $0x78] sm:$0xff]  ;;  %v740_v27 = vld [vmem:[%s6421_s2 + $0xa0] sm:$0xff]  ;;  %v737_v28 = vld [vmem:[%s6421_s2 + $0x88] sm:$0xff] }
  0x1c   :  { %838 = vperm.xlu1 %4182, %v724_v4   ;;  %818 = vperm.xlu0 %4181, %v720_v5   ;;  %v742_v29 = vld [vmem:[%s6421_s2 + $0xb0] sm:$0xff]  ;;  %v739_v30 = vld [vmem:[%s6421_s2 + $0x98] sm:$0xff]  ;;  %v744_v31 = vld [vmem:[%s6421_s2 + $0xc0] sm:$0xff] }
  0x1d   :  { %3755 = vmatprep.mubr.msk.f32.mxu0 %vm70_vm1, %v62_v16  ;;  %v741_v32 = vld [vmem:[%s6421_s2 + $0xa8] sm:$0xff]  ;;  %v746_v33 = vld [vmem:[%s6421_s2 + $0xd0] sm:$0xff]  ;;  %v743_v34 = vld [vmem:[%s6421_s2 + $0xb8] sm:$0xff] }
  0x1e   :  { %v748_v35 = vld [vmem:[%s6421_s2 + $0xe0] sm:$0xff]  ;;  %v745_v36 = vld [vmem:[%s6421_s2 + $0xc8] sm:$0xff]  ;;  %v750_v37 = vld [vmem:[%s6421_s2 + $0xf0] sm:$0xff] }
  0x1f   :  { %3756 = vmatmul.mubr.msk.f32.gmra.mrb[4].mxu0 %vm70_vm1, %v63_v19  ;;  %v747_v38 = vld [vmem:[%s6421_s2 + $0xd8] sm:$0xff]  ;;  %v752_v39 = vld [vmem:[%s6421_s2 + $0x100] sm:$0xff]  ;;  %v749_v40 = vld [vmem:[%s6421_s2 + $0xe8] sm:$0xff] }
  0x20   :  { %848 = vperm.xlu1 %4182, %v726_v6   ;;  %833 = vperm.xlu0 %4181, %v723_v7   ;;  %v754_v41 = vld [vmem:[%s6421_s2 + $0x110] sm:$0xff]  ;;  %v751_v42 = vld [vmem:[%s6421_s2 + $0xf8] sm:$0xff]  ;;  %v756_v43 = vld [vmem:[%s6421_s2 + $0x120] sm:$0xff] }
  0x21   :  { %3760 = vmatprep.mubr.msk.f32.mxu0 %vm70_vm1, %v52_v20  ;;  %v753_v44 = vld [vmem:[%s6421_s2 + $0x108] sm:$0xff]  ;;  %v758_v45 = vld [vmem:[%s6421_s2 + $0x130] sm:$0xff]  ;;  %v755_v46 = vld [vmem:[%s6421_s2 + $0x118] sm:$0xff] }
  0x22   :  { %v760_v47 = vld [vmem:[%s6421_s2 + $0x140] sm:$0xff]  ;;  %v757_v48 = vld [vmem:[%s6421_s2 + $0x128] sm:$0xff]  ;;  %v762_v49 = vld [vmem:[%s6421_s2 + $0x150] sm:$0xff] }
  0x23   :  { %v759_v50 = vld [vmem:[%s6421_s2 + $0x138] sm:$0xff]  ;;  %v764_v51 = vld [vmem:[%s6421_s2 + $0x160] sm:$0xff]  ;;  %v761_v52 = vld [vmem:[%s6421_s2 + $0x148] sm:$0xff] }
  0x24   :  { %858 = vperm.xlu1 %4182, %v728_v8   ;;  %843 = vperm.xlu0 %4181, %v725_v9   ;;  %v766_v53 = vld [vmem:[%s6421_s2 + $0x170] sm:$0xff]  ;;  %v763_v54 = vld [vmem:[%s6421_s2 + $0x158] sm:$0xff]  ;;  %v768_v55 = vld [vmem:[%s6421_s2 + $0x180] sm:$0xff] }
  0x25   :  { %v765_v56 = vld [vmem:[%s6421_s2 + $0x168] sm:$0xff]  ;;  %v770_v57 = vld [vmem:[%s6421_s2 + $0x190] sm:$0xff]  ;;  %v767_v58 = vld [vmem:[%s6421_s2 + $0x178] sm:$0xff] }
  0x26   :  { %v772_v59 = vld [vmem:[%s6421_s2 + $0x1a0] sm:$0xff]  ;;  %v769_v60 = vld [vmem:[%s6421_s2 + $0x188] sm:$0xff]  ;;  %v774_v62 = vld [vmem:[%s6421_s2 + $0x1b0] sm:$0xff] }
  0x27   :  { %v771_v63 = vld [vmem:[%s6421_s2 + $0x198] sm:$0xff]  ;;  %v776_v1 = vld [vmem:[%s6421_s2 + $0x1c0] sm:$0xff]  ;;  %v773_v2 = vld [vmem:[%s6421_s2 + $0x1a8] sm:$0xff] }
  0x28   :  { %868 = vperm.xlu1 %4182, %v730_v11   ;;  %853 = vperm.xlu0 %4181, %v727_v12   ;;  %v778_v3 = vld [vmem:[%s6421_s2 + $0x1d0] sm:$0xff]  ;;  %v775_v4 = vld [vmem:[%s6421_s2 + $0x1b8] sm:$0xff]  ;;  %v53_v7 = vld [vmem:[%s6420_s1 + $0x8] sm:$0xff] }
  0x29   :  { %v780_v8 = vld [vmem:[%s6421_s2 + $0x1e0] sm:$0xff]  ;;  %v777_v9 = vld [vmem:[%s6421_s2 + $0x1c8] sm:$0xff]  ;;  %v54_v10 = vld [vmem:[%s6420_s1 + $0x10] sm:$0xff] }
  0x2a   :  { %v55_v13 = vld [vmem:[%s6420_s1 + $0x18] sm:$0xff]  ;;  %v782_v14 = vld [vmem:[%s6421_s2 + $0x1f0] sm:$0xff]  ;;  %v56_v16 = vld [vmem:[%s6420_s1 + $0x20] sm:$0xff] }
  0x2b   :  { %v779_v15 = vld [vmem:[%s6421_s2 + $0x1d8] sm:$0xff]  ;;  %v781_v19 = vld [vmem:[%s6421_s2 + $0x1e8] sm:$0xff]  ;;  %v64_v20 = vld [vmem:[%s6420_s1 + $0x60] sm:$0xff] }
  0x2c   :  { %878 = vperm.xlu1 %4182, %v732_v17   ;;  %863 = vperm.xlu0 %4181, %v729_v18   ;;  %v57_v17 = vld [vmem:[%s6420_s1 + $0x28] sm:$0xff]  ;;  %v784_v18 = vld [vmem:[%s6421_s2 + $0x200] sm:$0xff] }
  0x30   :  { %888 = vperm.xlu1 %4182, %v734_v21   ;;  %873 = vperm.xlu0 %4181, %v731_v22   ;;  %v65_v22 = vld [vmem:[%s6420_s1 + $0x68] sm:$0xff] }
  0x34   :  { %898 = vperm.xlu1 %4182, %v736_v23   ;;  %883 = vperm.xlu0 %4181, %v733_v24   ;;  %v786_v23 = vld [vmem:[%s6421_s2 + $0x210] sm:$0xff]  ;;  %v783_v24 = vld [vmem:[%s6421_s2 + $0x1f8] sm:$0xff] }
  0x38   :  { %908 = vperm.xlu1 %4182, %v738_v25   ;;  %893 = vperm.xlu0 %4181, %v735_v26   ;;  %v66_v25 = vld [vmem:[%s6420_s1 + $0x70] sm:$0xff] }
  0x3c   :  { %918 = vperm.xlu1 %4182, %v740_v27   ;;  %903 = vperm.xlu0 %4181, %v737_v28   ;;  %v67_v27 = vld [vmem:[%s6420_s1 + $0x78] sm:$0xff]  ;;  %v788_v28 = vld [vmem:[%s6421_s2 + $0x220] sm:$0xff] }
  0x40   :  { %928 = vperm.xlu1 %4182, %v742_v29   ;;  %913 = vperm.xlu0 %4181, %v739_v30   ;;  %v785_v29 = vld [vmem:[%s6421_s2 + $0x208] sm:$0xff]  ;;  %v68_v30 = vld [vmem:[%s6420_s1 + $0x80] sm:$0xff] }
  0x44   :  { %938 = vperm.xlu1 %4182, %v744_v31   ;;  %923 = vperm.xlu0 %4181, %v741_v32  }
  0x48   :  { %948 = vperm.xlu1 %4182, %v746_v33   ;;  %933 = vperm.xlu0 %4181, %v743_v34   ;;  %v69_v33 = vld [vmem:[%s6420_s1 + $0x88] sm:$0xff]  ;;  %v790_v34 = vld [vmem:[%s6421_s2 + $0x230] sm:$0xff]  ;;  %s4221_s1 = smov 64  }
  0x4c   :  { %958 = vperm.xlu1 %4182, %v748_v35   ;;  %943 = vperm.xlu0 %4181, %v745_v36   ;;  %v787_v35 = vld [vmem:[%s6421_s2 + $0x218] sm:$0xff] }
  0x50   :  { %968 = vperm.xlu1 %4182, %v750_v37   ;;  %953 = vperm.xlu0 %4181, %v747_v38   ;;  %v792_v38 = vld [vmem:[%s6421_s2 + $0x240] sm:$0xff] }
  0x54   :  { %978 = vperm.xlu1 %4182, %v752_v39   ;;  %963 = vperm.xlu0 %4181, %v749_v40   ;;  %v789_v39 = vld [vmem:[%s6421_s2 + $0x228] sm:$0xff] }
  0x58   :  { %988 = vperm.xlu1 %4182, %v754_v41   ;;  %973 = vperm.xlu0 %4181, %v751_v42   ;;  %v794_v42 = vld [vmem:[%s6421_s2 + $0x250] sm:$0xff] }
  0x5c   :  { %998 = vperm.xlu1 %4182, %v756_v43   ;;  %983 = vperm.xlu0 %4181, %v753_v44   ;;  %v791_v43 = vld [vmem:[%s6421_s2 + $0x238] sm:$0xff] }
  0x60   :  { %1008 = vperm.xlu1 %4182, %v758_v45   ;;  %993 = vperm.xlu0 %4181, %v755_v46   ;;  %v796_v46 = vld [vmem:[%s6421_s2 + $0x260] sm:$0xff] }
  0x64   :  { %1018 = vperm.xlu1 %4182, %v760_v47   ;;  %1003 = vperm.xlu0 %4181, %v757_v48   ;;  %v793_v47 = vld [vmem:[%s6421_s2 + $0x248] sm:$0xff] }
  0x68   :  { %1028 = vperm.xlu1 %4182, %v762_v49   ;;  %1013 = vperm.xlu0 %4181, %v759_v50   ;;  %v1424_v50 = vld [vmem:[%s6422_s3 + $0x100] sm:$0xff] }
  0x6c   :  { %1038 = vperm.xlu1 %4182, %v764_v51   ;;  %1023 = vperm.xlu0 %4181, %v761_v52   ;;  %v795_v51 = vld [vmem:[%s6421_s2 + $0x258] sm:$0xff] }
  0x70   :  { %1048 = vperm.xlu1 %4182, %v766_v53   ;;  %1033 = vperm.xlu0 %4181, %v763_v54   ;;  %v1426_v54 = vld [vmem:[%s6422_s3 + $0x110] sm:$0xff] }
  0x74   :  { %1058 = vperm.xlu1 %4182, %v768_v55   ;;  %1043 = vperm.xlu0 %4181, %v765_v56   ;;  %v797_v55 = vld [vmem:[%s6421_s2 + $0x268] sm:$0xff] }
  0x78   :  { %1068 = vperm.xlu1 %4182, %v770_v57   ;;  %1053 = vperm.xlu0 %4181, %v767_v58   ;;  %v1428_v58 = vld [vmem:[%s6422_s3 + $0x120] sm:$0xff] }
  0x7c   :  { %1078 = vperm.xlu1 %4182, %v772_v59   ;;  %1063 = vperm.xlu0 %4181, %v769_v60   ;;  %v1425_v59 = vld [vmem:[%s6422_s3 + $0x108] sm:$0xff] }
  0x80   :  { %1088 = vperm.xlu1 %4182, %v774_v62   ;;  %1073 = vperm.xlu0 %4181, %v771_v63   ;;  %v1430_v62 = vld [vmem:[%s6422_s3 + $0x130] sm:$0xff]  ;;  %v1427_v63 = vld [vmem:[%s6422_s3 + $0x118] sm:$0xff] }
  0x84   :  { %1098 = vperm.xlu1 %4182, %v776_v1   ;;  %1083 = vperm.xlu0 %4181, %v773_v2   ;;  %v1432_v2 = vld [vmem:[%s6422_s3 + $0x140] sm:$0xff] }
  0x86   :  { %v42_v5 = vpop.permute.xlu0 %41 }
  0x87   :  { %v45_v6 = vsel %vm40_vm2, %v42_v5, 0.0 }
  0x88   :  { %1108 = vperm.xlu1 %4182, %v778_v3   ;;  %1093 = vperm.xlu0 %4181, %v775_v4   ;;  %v1429_v3 = vld [vmem:[%s6422_s3 + $0x128] sm:$0xff] }
  0x89   :  { %3758 = vmatprep.subr.msk.mxu0 %vm89_vm0, %v45_v6 }
  0x8a   :  { %3759 = vmatpush3.msk.msra.mxu0 %vm89_vm0, %v45_v6  ;;  %v48_v11 = vpop.permute.xlu0 %47  ;;  %v1434_v6 = vld [vmem:[%s6422_s3 + $0x150] sm:$0xff] }
  0x8b   :  { %3761 = vmatmul.mubr.msk.f32.vlgmr.msra.gmra.mrb[0].mxu0 %vm70_vm1, %v53_v7  ;;  %v51_v12 = vsel %vm46_vm3, %v48_v11, 0.0  ;;  %v1431_v7 = vld [vmem:[%s6422_s3 + $0x138] sm:$0xff]  ;;  %v1433_v11 = vld [vmem:[%s6422_s3 + $0x148] sm:$0xff] }
  0x8c   :  { %1118 = vperm.xlu1 %4182, %v780_v8   ;;  %1103 = vperm.xlu0 %4181, %v777_v9  }
  0x8d   :  { %3763 = vmatprep.mubr.msk.f32.mxu0 %vm70_vm1, %v54_v10  ;;  %3769 = vmatprep.subr.msk.mxu0 %vm89_vm0, %v51_v12  ;;  %v1436_v10 = vld [vmem:[%s6422_s3 + $0x160] sm:$0xff] }
  0x8e   :  { %3770 = vmatpush3.msk.msra.mxu0 %vm89_vm0, %v51_v12 }
  0x8f   :  { %3764 = vmatmul.mubr.msk.f32.gmra.mrb[2].mxu0 %vm70_vm1, %v55_v13 }
  0x90   :  { %1128 = vperm.xlu1 %4182, %v782_v14   ;;  %1113 = vperm.xlu0 %4181, %v779_v15   ;;  %v1438_v14 = vld [vmem:[%s6422_s3 + $0x170] sm:$0xff]  ;;  %v1435_v15 = vld [vmem:[%s6422_s3 + $0x158] sm:$0xff] }
  0x91   :  { %3766 = vmatprep.mubr.msk.f32.mxu0 %vm70_vm1, %v56_v16 }
  0x93   :  { %3767 = vmatmul.mubr.msk.f32.gmra.mrb[4].mxu0 %vm70_vm1, %v57_v17  ;;  %v4529_v21 = vpop.permute.xlu1 %823 }
  0x94   :  { %1138 = vperm.xlu1 %4182, %v784_v18   ;;  %1123 = vperm.xlu0 %4181, %v781_v19   ;;  %v1392_v18 = vld [vmem:[%s6422_s3] sm:$0xff]  ;;  %v1437_v19 = vld [vmem:[%s6422_s3 + $0x168] sm:$0xff] }
  0x95   :  { %3771 = vmatprep.mubr.msk.f32.mxu0 %vm70_vm1, %v64_v20 }
  0x97   :  { %3772 = vmatmul.mubr.msk.f32.vlgmr.msra.gmra.mrb[0].mxu0 %vm70_vm1, %v65_v22  ;;  %v4545_v26 = vpop.permute.xlu1 %828 }
  0x98   :  { %1148 = vperm.xlu1 %4182, %v786_v23   ;;  %1133 = vperm.xlu0 %4181, %v783_v24   ;;  %v1440_v23 = vld [vmem:[%s6422_s3 + $0x180] sm:$0xff]  ;;  %v1439_v24 = vld [vmem:[%s6422_s3 + $0x178] sm:$0xff] }
  0x99   :  { %3774 = vmatprep.mubr.msk.f32.mxu0 %vm70_vm1, %v66_v25 }
  0x9b   :  { %3775 = vmatmul.mubr.msk.f32.gmra.mrb[2].mxu0 %vm70_vm1, %v67_v27  ;;  %v4561_v31 = vpop.permute.xlu1 %838  ;;  %v4563_v32 = vpop.permute.xlu0 %818 }
  0x9c   :  { %1158 = vperm.xlu1 %4182, %v788_v28   ;;  %1143 = vperm.xlu0 %4181, %v785_v29   ;;  %v1394_v28 = vld [vmem:[%s6422_s3 + $0x10] sm:$0xff]  ;;  %v1393_v29 = vld [vmem:[%s6422_s3 + $0x8] sm:$0xff] }
  0x9d   :  { %3777 = vmatprep.mubr.msk.f32.mxu0 %vm70_vm1, %v68_v30 }
  0x9f   :  { %3778 = vmatmul.mubr.msk.f32.gmra.mrb[4].mxu0 %vm70_vm1, %v69_v33  ;;  %v4576_v36 = vpop.permute.xlu1 %848  ;;  %v4578_v37 = vpop.permute.xlu0 %833 }
  0xa0   :  { %1168 = vperm.xlu1 %4182, %v790_v34   ;;  %1153 = vperm.xlu0 %4181, %v787_v35   ;;  %v1442_v34 = vld [vmem:[%s6422_s3 + $0x190] sm:$0xff]  ;;  %v1441_v35 = vld [vmem:[%s6422_s3 + $0x188] sm:$0xff] }
  0xa3   :  { %v4586_v40 = vpop.permute.xlu1 %858  ;;  %v4588_v41 = vpop.permute.xlu0 %843 }
  0xa4   :  { %1178 = vperm.xlu1 %4182, %v792_v38   ;;  %1163 = vperm.xlu0 %4181, %v789_v39  }
  0xa7   :  { %v4596_v44 = vpop.permute.xlu1 %868  ;;  %v4598_v45 = vpop.permute.xlu0 %853 }
  0xa8   :  { %1188 = vperm.xlu1 %4182, %v794_v42   ;;  %1173 = vperm.xlu0 %4181, %v791_v43   ;;  %v1396_v42 = vld [vmem:[%s6422_s3 + $0x20] sm:$0xff]  ;;  %v1395_v43 = vld [vmem:[%s6422_s3 + $0x18] sm:$0xff] }
  0xab   :  { %v4606_v48 = vpop.permute.xlu1 %878  ;;  %v4608_v49 = vpop.permute.xlu0 %863 }
  0xac   :  { %1198 = vperm.xlu1 %4182, %v796_v46   ;;  %1183 = vperm.xlu0 %4181, %v793_v47  }
  0xaf   :  { %v4616_v52 = vpop.permute.xlu1 %888  ;;  %v4618_v53 = vpop.permute.xlu0 %873 }
  0xb0   :  { %1650 = vperm.xlu1 %4182, %v1424_v50   ;;  %1193 = vperm.xlu0 %4181, %v795_v51   ;;  %v1444_v50 = vld [vmem:[%s6422_s3 + $0x1a0] sm:$0xff]  ;;  %v1443_v51 = vld [vmem:[%s6422_s3 + $0x198] sm:$0xff] }
  0xb3   :  { %v4626_v56 = vpop.permute.xlu1 %898  ;;  %v4628_v57 = vpop.permute.xlu0 %883 }
  0xb4   :  { %1660 = vperm.xlu1 %4182, %v1426_v54   ;;  %1203 = vperm.xlu0 %4181, %v797_v55  }
  0xb7   :  { %v4636_v60 = vpop.permute.xlu1 %908  ;;  %v4638_v61 = vpop.permute.xlu0 %893 }
  0xb8   :  { %1670 = vperm.xlu1 %4182, %v1428_v58   ;;  %1655 = vperm.xlu0 %4181, %v1425_v59   ;;  %v1398_v58 = vld [vmem:[%s6422_s3 + $0x30] sm:$0xff]  ;;  %v1397_v59 = vld [vmem:[%s6422_s3 + $0x28] sm:$0xff] }
  0xbb   :  { %v4646_v0 = vpop.permute.xlu1 %918  ;;  %v4648_v1 = vpop.permute.xlu0 %903 }
  0xbc   :  { %6429 = vst [vmem:[#allocation5_spill] sm:$0xff] %v4646_v0  ;;  %1680 = vperm.xlu1 %4182, %v1430_v62   ;;  %1665 = vperm.xlu0 %4181, %v1427_v63  }
  0xbf   :  { %v4656_v4 = vpop.permute.xlu1 %928  ;;  %v4658_v5 = vpop.permute.xlu0 %913 }
  0xc0   :  { %6430 = vst [vmem:[#allocation6_spill] sm:$0xff] %v4656_v4  ;;  %1690 = vperm.xlu1 %4182, %v1432_v2   ;;  %1675 = vperm.xlu0 %4181, %v1429_v3   ;;  %v1446_v2 = vld [vmem:[%s6422_s3 + $0x1b0] sm:$0xff]  ;;  %v1445_v3 = vld [vmem:[%s6422_s3 + $0x1a8] sm:$0xff] }
  0xc3   :  { %v4666_v8 = vpop.permute.xlu1 %938  ;;  %v4668_v9 = vpop.permute.xlu0 %923 }
  0xc4   :  { %6431 = vst [vmem:[#allocation7_spill] sm:$0xff] %v4666_v8  ;;  %6432 = vst [vmem:[#allocation8_spill] sm:$0xff] %v4668_v9  ;;  %1700 = vperm.xlu1 %4182, %v1434_v6   ;;  %1685 = vperm.xlu0 %4181, %v1431_v7  }
  0xc7   :  { %v4676_v12 = vpop.permute.xlu1 %948  ;;  %v4678_v13 = vpop.permute.xlu0 %933 }
  0xc8   :  { %6433 = vst [vmem:[#allocation9_spill] sm:$0xff] %v4676_v12  ;;  %6434 = vst [vmem:[#allocation10_spill] sm:$0xff] %v4678_v13  ;;  %1710 = vperm.xlu1 %4182, %v1436_v10   ;;  %1695 = vperm.xlu0 %4181, %v1433_v11   ;;  %v1400_v10 = vld [vmem:[%s6422_s3 + $0x40] sm:$0xff]  ;;  %v1399_v11 = vld [vmem:[%s6422_s3 + $0x38] sm:$0xff] }
  0xc9   :  { %v1411_v12 = vld [vmem:[%s6422_s3 + $0x98] sm:$0xff] }
  0xcb   :  { %v4686_v16 = vpop.permute.xlu1 %958  ;;  %v4688_v17 = vpop.permute.xlu0 %943 }
  0xcc   :  { %6435 = vst [vmem:[#allocation11_spill] sm:$0xff] %v4686_v16  ;;  %6436 = vst [vmem:[#allocation12_spill] sm:$0xff] %v4688_v17  ;;  %1720 = vperm.xlu1 %4182, %v1438_v14   ;;  %1705 = vperm.xlu0 %4181, %v1435_v15  }
  0xcf   :  { %v4696_v20 = vpop.permute.xlu1 %968  ;;  %v4698_v22 = vpop.permute.xlu0 %953 }
  0xd0   :  { %6437 = vst [vmem:[#allocation13_spill] sm:$0xff] %v4696_v20  ;;  %6438 = vst [vmem:[#allocation14_spill] sm:$0xff] %v4698_v22  ;;  %1490 = vperm.xlu1 %4182, %v1392_v18   ;;  %1715 = vperm.xlu0 %4181, %v1437_v19   ;;  %v1448_v18 = vld [vmem:[%s6422_s3 + $0x1c0] sm:$0xff]  ;;  %v1447_v19 = vld [vmem:[%s6422_s3 + $0x1b8] sm:$0xff] }
  0xd1   :  { %v1410_v20 = vld [vmem:[%s6422_s3 + $0x90] sm:$0xff] }
  0xd3   :  { %v4706_v25 = vpop.permute.xlu1 %978  ;;  %v4708_v27 = vpop.permute.xlu0 %963 }
  0xd4   :  { %6439 = vst [vmem:[#allocation15_spill] sm:$0xff] %v4708_v27  ;;  %1730 = vperm.xlu1 %4182, %v1440_v23   ;;  %1725 = vperm.xlu0 %4181, %v1439_v24   ;;  %v1409_v27 = vld [vmem:[%s6422_s3 + $0x88] sm:$0xff] }
  0xd7   :  { %v4716_v30 = vpop.permute.xlu1 %988  ;;  %v4718_v33 = vpop.permute.xlu0 %973 }
  0xd8   :  { %6440 = vst [vmem:[#allocation16_spill] sm:$0xff] %v4718_v33  ;;  %1500 = vperm.xlu1 %4182, %v1394_v28   ;;  %1495 = vperm.xlu0 %4181, %v1393_v29   ;;  %v1402_v28 = vld [vmem:[%s6422_s3 + $0x50] sm:$0xff]  ;;  %v1401_v29 = vld [vmem:[%s6422_s3 + $0x48] sm:$0xff]  ;;  %v1408_v33 = vld [vmem:[%s6422_s3 + $0x80] sm:$0xff] }
  0xdb   :  { %v4726_v38 = vpop.permute.xlu1 %998  ;;  %v4728_v39 = vpop.permute.xlu0 %983 }
  0xdc   :  { %1740 = vperm.xlu1 %4182, %v1442_v34   ;;  %1735 = vperm.xlu0 %4181, %v1441_v35  }
  0xdf   :  { %v4736_v46 = vpop.permute.xlu1 %1008  ;;  %v4738_v47 = vpop.permute.xlu0 %993 }
  0xe0   :  { %6441 = vst [vmem:[#allocation17_spill] sm:$0xff] %v4736_v46  ;;  %1510 = vperm.xlu1 %4182, %v1396_v42   ;;  %1505 = vperm.xlu0 %4181, %v1395_v43   ;;  %v1450_v42 = vld [vmem:[%s6422_s3 + $0x1d0] sm:$0xff]  ;;  %v1449_v43 = vld [vmem:[%s6422_s3 + $0x1c8] sm:$0xff] }
  0xe3   :  { %v4746_v54 = vpop.permute.xlu1 %1018  ;;  %v4748_v55 = vpop.permute.xlu0 %1003 }
  0xe4   :  { %6442 = vst [vmem:[#allocation18_spill] sm:$0xff] %v4746_v54  ;;  %1750 = vperm.xlu1 %4182, %v1444_v50   ;;  %1745 = vperm.xlu0 %4181, %v1443_v51  }
  0xe7   :  { %v4756_v62 = vpop.permute.xlu1 %1028  ;;  %v4758_v63 = vpop.permute.xlu0 %1013 }
  0xe8   :  { %6443 = vst [vmem:[#allocation19_spill] sm:$0xff] %v4756_v62  ;;  %6444 = vst [vmem:[#allocation20_spill] sm:$0xff] %v4758_v63  ;;  %1520 = vperm.xlu1 %4182, %v1398_v58   ;;  %1515 = vperm.xlu0 %4181, %v1397_v59   ;;  %v1404_v58 = vld [vmem:[%s6422_s3 + $0x60] sm:$0xff]  ;;  %v1403_v59 = vld [vmem:[%s6422_s3 + $0x58] sm:$0xff] }
  0xeb   :  { %v4766_v6 = vpop.permute.xlu1 %1038  ;;  %v4768_v7 = vpop.permute.xlu0 %1023 }
  0xec   :  { %6445 = vst [vmem:[#allocation21_spill] sm:$0xff] %v4766_v6  ;;  %6446 = vst [vmem:[#allocation22_spill] sm:$0xff] %v4768_v7  ;;  %1760 = vperm.xlu1 %4182, %v1446_v2   ;;  %1755 = vperm.xlu0 %4181, %v1445_v3  }
  0xef   :  { %v4776_v14 = vpop.permute.xlu1 %1048  ;;  %v4778_v15 = vpop.permute.xlu0 %1033 }
  0xf0   :  { %6447 = vst [vmem:[#allocation23_spill] sm:$0xff] %v4776_v14  ;;  %6448 = vst [vmem:[#allocation24_spill] sm:$0xff] %v4778_v15  ;;  %1530 = vperm.xlu1 %4182, %v1400_v10   ;;  %1525 = vperm.xlu0 %4181, %v1399_v11   ;;  %v1452_v10 = vld [vmem:[%s6422_s3 + $0x1e0] sm:$0xff]  ;;  %v1451_v11 = vld [vmem:[%s6422_s3 + $0x1d8] sm:$0xff] }
  0xf3   :  { %v4786_v23 = vpop.permute.xlu1 %1058  ;;  %v4788_v24 = vpop.permute.xlu0 %1043 }
  0xf4   :  { %6449 = vst [vmem:[#allocation25_spill] sm:$0xff] %v4786_v23  ;;  %6450 = vst [vmem:[#allocation26_spill] sm:$0xff] %v4788_v24  ;;  %1770 = vperm.xlu1 %4182, %v1448_v18   ;;  %1765 = vperm.xlu0 %4181, %v1447_v19  }
  0xf7   :  { %v4796_v34 = vpop.permute.xlu1 %1068  ;;  %v4798_v35 = vpop.permute.xlu0 %1053 }
  0xf8   :  { %6451 = vst [vmem:[#allocation27_spill] sm:$0xff] %v4796_v34  ;;  %6452 = vst [vmem:[#allocation28_spill] sm:$0xff] %v4798_v35  ;;  %1540 = vperm.xlu1 %4182, %v1402_v28   ;;  %1535 = vperm.xlu0 %4181, %v1401_v29   ;;  %v1406_v28 = vld [vmem:[%s6422_s3 + $0x70] sm:$0xff]  ;;  %v1405_v29 = vld [vmem:[%s6422_s3 + $0x68] sm:$0xff] }
  0xfb   :  { %v4806_v50 = vpop.permute.xlu1 %1078  ;;  %v4808_v51 = vpop.permute.xlu0 %1063 }
  0xfc   :  { %6453 = vst [vmem:[#allocation29_spill] sm:$0xff] %v4806_v50  ;;  %6454 = vst [vmem:[#allocation30_spill] sm:$0xff] %v4808_v51  ;;  %1780 = vperm.xlu1 %4182, %v1450_v42   ;;  %1775 = vperm.xlu0 %4181, %v1449_v43  }
  0xff   :  { %v4816_v2 = vpop.permute.xlu1 %1088  ;;  %v4818_v3 = vpop.permute.xlu0 %1073 }
 0x100   :  { %6455 = vst [vmem:[#allocation31_spill] sm:$0xff] %v4816_v2  ;;  %6456 = vst [vmem:[#allocation32_spill] sm:$0xff] %v4818_v3  ;;  %1550 = vperm.xlu1 %4182, %v1404_v58   ;;  %1545 = vperm.xlu0 %4181, %v1403_v59   ;;  %v1454_v58 = vld [vmem:[%s6422_s3 + $0x1f0] sm:$0xff]  ;;  %v1453_v59 = vld [vmem:[%s6422_s3 + $0x1e8] sm:$0xff] }
 0x103   :  { %v4826_v18 = vpop.permute.xlu1 %1098  ;;  %v4828_v19 = vpop.permute.xlu0 %1083 }
 0x104   :  { %6457 = vst [vmem:[#allocation33_spill] sm:$0xff] %v4826_v18  ;;  %6458 = vst [vmem:[#allocation34_spill] sm:$0xff] %v4828_v19  ;;  %1790 = vperm.xlu1 %4182, %v1452_v10   ;;  %1785 = vperm.xlu0 %4181, %v1451_v11  }
 0x107   :  { %v4836_v42 = vpop.permute.xlu1 %1108  ;;  %v4838_v43 = vpop.permute.xlu0 %1093 }
 0x108   :  { %6459 = vst [vmem:[#allocation35_spill] sm:$0xff] %v4836_v42  ;;  %6460 = vst [vmem:[#allocation36_spill] sm:$0xff] %v4838_v43  ;;  %1560 = vperm.xlu1 %4182, %v1406_v28   ;;  %1555 = vperm.xlu0 %4181, %v1405_v29   ;;  %v1407_v28 = vld [vmem:[%s6422_s3 + $0x78] sm:$0xff] }
 0x10b   :  { %v4846_v10 = vpop.permute.xlu0 %1103  ;;  %v4848_v11 = vpop.permute.xlu1 %1118 }
 0x10c   :  { %6461 = vst [vmem:[#allocation37_spill] sm:$0xff] %v4846_v10  ;;  %1800 = vperm.xlu1 %4182, %v1454_v58   ;;  %1795 = vperm.xlu0 %4181, %v1453_v59   ;;  %6462 = vst [vmem:[#allocation38_spill] sm:$0xff] %v4848_v11  ;;  %v1455_v58 = vld [vmem:[%s6422_s3 + $0x1f8] sm:$0xff]  ;;  %v6426_v10 = vmov 0.0|0.0  }
 0x10d   :  { %3780 = vmatprep.subr.bf16.mxu0 %v6426_v10  ;;  %3924 = vmatprep.subr.bf16.mxu1 %v6426_v10 }
 0x10f   :  { %v4856_v29 = vpop.permute.xlu0 %1113  ;;  %v4864_v59 = vpop.permute.xlu1 %1128 }
 0x110   :  { %6463 = vst [vmem:[#allocation39_spill] sm:$0xff] %v4856_v29  ;;  %1570 = vperm.xlu1 %4182, %v1408_v33   ;;  %1565 = vperm.xlu0 %4181, %v1407_v28   ;;  %6464 = vst [vmem:[#allocation40_spill] sm:$0xff] %v4864_v59 }
 0x113   :  { %v4866_v16 = vpop.permute.xlu0 %1123  ;;  %v4873_v28 = vpop.permute.xlu1 %1138 }
 0x114   :  { %6465 = vst [vmem:[#allocation41_spill] sm:$0xff] %v4866_v16  ;;  %1580 = vperm.xlu1 %4182, %v1410_v20   ;;  %1805 = vperm.xlu0 %4181, %v1455_v58   ;;  %6467 = vst [vmem:[#allocation43_spill] sm:$0xff] %v4873_v28 }
 0x117   :  { %v4871_v33 = vpop.permute.xlu0 %1133  ;;  %v4880_v59 = vpop.permute.xlu1 %1148 }
 0x118   :  { %6466 = vst [vmem:[#allocation42_spill] sm:$0xff] %v4871_v33  ;;  %1575 = vperm.xlu0 %4181, %v1409_v27   ;;  %6469 = vst [vmem:[#allocation45_spill] sm:$0xff] %v4880_v59 }
 0x11b   :  { %v4878_v22 = vpop.permute.xlu0 %1143  ;;  %v4884_v58 = vpop.permute.xlu1 %1158 }
 0x11c   :  { %1585 = vperm.xlu0 %4181, %v1411_v12   ;;  %6468 = vst [vmem:[#allocation44_spill] sm:$0xff] %v4878_v22  ;;  %6471 = vst [vmem:[#allocation47_spill] sm:$0xff] %v4884_v58 }
 0x11f   :  { %v4882_v20 = vpop.permute.xlu0 %1153  ;;  %v4888_v11 = vpop.permute.xlu1 %1168 }
 0x120   :  { %6470 = vst [vmem:[#allocation46_spill] sm:$0xff] %v4882_v20  ;;  %6473 = vst [vmem:[#allocation49_spill] sm:$0xff] %v4888_v11 }
 0x123   :  { %v4886_v16 = vpop.permute.xlu0 %1163  ;;  %v4892_v28 = vpop.permute.xlu1 %1178 }
 0x124   :  { %6472 = vst [vmem:[#allocation48_spill] sm:$0xff] %v4886_v16  ;;  %6475 = vst [vmem:[#allocation51_spill] sm:$0xff] %v4892_v28 }
 0x127   :  { %v4890_v27 = vpop.permute.xlu0 %1173  ;;  %v4896_v29 = vpop.permute.xlu1 %1188 }
 0x128   :  { %6474 = vst [vmem:[#allocation50_spill] sm:$0xff] %v4890_v27  ;;  %6477 = vst [vmem:[#allocation53_spill] sm:$0xff] %v4896_v29 }
 0x12b   :  { %v4894_v33 = vpop.permute.xlu0 %1183  ;;  %v4900_v22 = vpop.permute.xlu1 %1198 }
 0x12c   :  { %6476 = vst [vmem:[#allocation52_spill] sm:$0xff] %v4894_v33  ;;  %6479 = vst [vmem:[#allocation55_spill] sm:$0xff] %v4900_v22 }
 0x12f   :  { %v4898_v12 = vpop.permute.xlu0 %1193  ;;  %v4904_v20 = vpop.permute.xlu1 %1650 }
 0x130   :  { %6478 = vst [vmem:[#allocation54_spill] sm:$0xff] %v4898_v12 }
 0x133   :  { %v4902_v59 = vpop.permute.xlu0 %1203  ;;  %v4908_v16 = vpop.permute.xlu1 %1660 }
 0x134   :  { %6480 = vst [vmem:[#allocation56_spill] sm:$0xff] %v4902_v59  ;;  %6481 = vst [vmem:[#allocation57_spill] sm:$0xff] %v4908_v16 }
 0x137   :  { %v4906_v58 = vpop.permute.xlu0 %1655  ;;  %v4912_v27 = vpop.permute.xlu1 %1670 }
 0x138   :  { %6482 = vst [vmem:[#allocation58_spill] sm:$0xff] %v4912_v27 }
 0x13b   :  { %v4910_v11 = vpop.permute.xlu0 %1665  ;;  %v4916_v33 = vpop.permute.xlu1 %1680 }
 0x13c   :  { %6484 = vst [vmem:[#allocation60_spill] sm:$0xff] %v4916_v33 }
 0x13f   :  { %v4914_v28 = vpop.permute.xlu0 %1675  ;;  %v4920_v12 = vpop.permute.xlu1 %1690 }
 0x140   :  { %6483 = vst [vmem:[#allocation59_spill] sm:$0xff] %v4914_v28  ;;  %6486 = vst [vmem:[#allocation62_spill] sm:$0xff] %v4920_v12 }
 0x143   :  { %v4918_v29 = vpop.permute.xlu0 %1685  ;;  %v4924_v59 = vpop.permute.xlu1 %1700 }
 0x144   :  { %6485 = vst [vmem:[#allocation61_spill] sm:$0xff] %v4918_v29  ;;  %6488 = vst [vmem:[#allocation64_spill] sm:$0xff] %v4924_v59 }
 0x147   :  { %v4922_v22 = vpop.permute.xlu0 %1695  ;;  %v4928_v42 = vpop.permute.xlu1 %1710 }
 0x148   :  { %6487 = vst [vmem:[#allocation63_spill] sm:$0xff] %v4922_v22  ;;  %6490 = vst [vmem:[#allocation66_spill] sm:$0xff] %v4928_v42 }
 0x14b   :  { %v4926_v8 = vpop.permute.xlu0 %1705  ;;  %v4935_v18 = vpop.permute.xlu1 %1720 }
 0x14c   :  { %6489 = vst [vmem:[#allocation65_spill] sm:$0xff] %v4926_v8  ;;  %6492 = vst [vmem:[#allocation68_spill] sm:$0xff] %v4935_v18 }
 0x14f   :  { %v4932_v13 = vpop.permute.xlu0 %1715  ;;  %v1491_v3 = vpop.permute.xlu1 %1490 }
 0x150   :  { %6491 = vst [vmem:[#allocation67_spill] sm:$0xff] %v4932_v13 }
 0x153   :  { %v4939_v19 = vpop.permute.xlu0 %1725  ;;  %v4947_v18 = vpop.permute.xlu1 %1730 }
 0x154   :  { %6493 = vst [vmem:[#allocation69_spill] sm:$0xff] %v4939_v19  ;;  %6494 = vst [vmem:[#allocation70_spill] sm:$0xff] %v4947_v18 }
 0x157   :  { %v1496_v10 = vpop.permute.xlu0 %1495  ;;  %v1501_v14 = vpop.permute.xlu1 %1500 }
 0x15b   :  { %v4949_v51 = vpop.permute.xlu0 %1735  ;;  %v4951_v13 = vpop.permute.xlu1 %1740 }
 0x15c   :  { %6495 = vst [vmem:[#allocation71_spill] sm:$0xff] %v4949_v51  ;;  %6496 = vst [vmem:[#allocation72_spill] sm:$0xff] %v4951_v13 }
 0x15f   :  { %v1506_v23 = vpop.permute.xlu0 %1505  ;;  %v4955_v35 = vpop.permute.xlu1 %1510 }
 0x163   :  { %v4953_v19 = vpop.permute.xlu0 %1745  ;;  %v4959_v24 = vpop.permute.xlu1 %1750 }
 0x164   :  { %6497 = vst [vmem:[#allocation73_spill] sm:$0xff] %v4953_v19  ;;  %6498 = vst [vmem:[#allocation74_spill] sm:$0xff] %v4959_v24 }
 0x167   :  { %v4957_v42 = vpop.permute.xlu0 %1515  ;;  %v4963_v6 = vpop.permute.xlu1 %1520 }
 0x16a   :  { %v3773_v17 = vpop.f32.mrb[0].mxu0 }
 0x16b   :  { %428 = vrot.lane.b32.xlu1 %v3773_v17, %s4212_s4  ;;  %v391_v4 = vpop.f32.mrb[1].mxu0  ;;  %v4961_v8 = vpop.permute.xlu0 %1755 }
 0x16c   :  { %6499 = vst [vmem:[#allocation75_spill] sm:$0xff] %v4961_v8  ;;  %v4967_v18 = vpop.permute.xlu1 %1760 }
 0x16d   :  { %6500 = vst [vmem:[#allocation76_spill] sm:$0xff] %v4967_v18 }
 0x16e   :  { %v3776_v43 = vpop.f32.mrb[2].mxu0 }
 0x16f   :  { %426 = vrot.lane.b32.xlu1 %v391_v4, %s4212_s4  ;;  %v401_v2 = vpop.f32.mrb[3].mxu0  ;;  %v4965_v59 = vpop.permute.xlu0 %1525 }
 0x170   :  { %430 = vrot.lane.b32.xlu0 %v401_v2, %s4212_s4  ;;  %v4971_v12 = vpop.permute.xlu1 %1530 }
 0x172   :  { %v4941_v50 = vpop.f32.mrb[4].mxu0 }
 0x173   :  { %432 = vrot.lane.b32.xlu1 %v3776_v43, %s4212_s4  ;;  %v411_v34 = vpop.f32.mrb[5].mxu0  ;;  %v4969_v51 = vpop.permute.xlu0 %1765 }
 0x174   :  { %434 = vrot.lane.b32.xlu0 %v411_v34, %s4212_s4  ;;  %6501 = vst [vmem:[#allocation77_spill] sm:$0xff] %v4969_v51  ;;  %v4975_v19 = vpop.permute.xlu1 %1770 }
 0x175   :  { %6502 = vst [vmem:[#allocation78_spill] sm:$0xff] %v4975_v19 }
 0x177   :  { %436 = vrot.lane.b32.xlu1 %v4941_v50, %s4212_s4  ;;  %v4973_v13 = vpop.permute.xlu0 %1535  ;;  %s4214_s4 = smov 120  }
 0x178   :  { %v4979_v54 = vpop.permute.xlu1 %1540 }
 0x17b   :  { %v4977_v15 = vpop.permute.xlu0 %1775 }
 0x17c   :  { %6503 = vst [vmem:[#allocation79_spill] sm:$0xff] %v4977_v15  ;;  %v4983_v8 = vpop.permute.xlu1 %1780 }
 0x17d   :  { %6504 = vst [vmem:[#allocation80_spill] sm:$0xff] %v4983_v8 }
 0x17f   :  { %v4981_v24 = vpop.permute.xlu0 %1545 }
 0x180   :  { %v4987_v62 = vpop.permute.xlu1 %1550 }
 0x183   :  { %v4985_v22 = vpop.permute.xlu0 %1785 }
 0x184   :  { %6505 = vst [vmem:[#allocation81_spill] sm:$0xff] %v4985_v22  ;;  %v4991_v51 = vpop.permute.xlu1 %1790 }
 0x185   :  { %6506 = vst [vmem:[#allocation82_spill] sm:$0xff] %v4991_v51 }
 0x187   :  { %v4989_v18 = vpop.permute.xlu0 %1555 }
 0x188   :  { %v4995_v9 = vpop.permute.xlu1 %1560 }
 0x18b   :  { %v4993_v7 = vpop.permute.xlu0 %1795 }
 0x18c   :  { %6507 = vst [vmem:[#allocation83_spill] sm:$0xff] %v4993_v7  ;;  %v4999_v15 = vpop.permute.xlu1 %1800 }
 0x18d   :  { %6508 = vst [vmem:[#allocation84_spill] sm:$0xff] %v4999_v15 }
 0x18f   :  { %v4997_v19 = vpop.permute.xlu0 %1565 }
 0x190   :  { %v5003_v29 = vpop.permute.xlu1 %1570 }
 0x193   :  { %v5001_v0 = vpop.permute.xlu0 %1805 }
 0x194   :  { %6509 = vst [vmem:[#allocation85_spill] sm:$0xff] %v5001_v0  ;;  %v5007_v22 = vpop.permute.xlu1 %1580 }
 0x197   :  { %v5005_v8 = vpop.permute.xlu0 %1575 }
 0x19b   :  { %v5009_v63 = vpop.permute.xlu0 %1585 }
 0x1dd   :  { %v429_v33 = vpop.permute.xlu1 %428 }
 0x1de   :  { %v5011_v51 = vmax.f32 %v3773_v17, %v429_v33 }
 0x1e0   :  { %452 = vrot.lane.b32.xlu1 %v5011_v51, %s4214_s4  ;;  %v1297_v15 = vmul.f32 %v4529_v21, %v5011_v51 }
 0x1e1   :  { %v427_v7 = vpop.permute.xlu1 %426 }
 0x1e2   :  { %v5017_v0 = vmax.f32 %v391_v4, %v427_v7  ;;  %v431_v28 = vpop.permute.xlu0 %430  ;;  %v1969_v33 = vadd.f32 %v1496_v10, %v1297_v15 }
 0x1e3   :  { %v5019_v16 = vmax.f32 %v401_v2, %v431_v28 }
 0x1e4   :  { %470 = vrot.lane.b32.xlu1 %v5011_v51, %s4215_s17  ;;  %450 = vrot.lane.b32.xlu0 %v5017_v0, %s4214_s4  ;;  %v1296_v17 = vmul.f32 %v4563_v32, %v5017_v0  ;;  %v2065_v32 = vmax.f32 %v1969_v33, 0.0 }
 0x1e5   :  { %v433_v46 = vpop.permute.xlu1 %432  ;;  %v1298_v21 = vmul.f32 %v4545_v26, %v5019_v16 }
 0x1e6   :  { %v5029_v4 = vmax.f32 %v3776_v43, %v433_v46  ;;  %v435_v7 = vpop.permute.xlu0 %434  ;;  %v1968_v2 = vadd.f32 %v1491_v3, %v1296_v17 }
 0x1e7   :  { %v5031_v28 = vmax.f32 %v411_v34, %v435_v7  ;;  %v1970_v10 = vadd.f32 %v1501_v14, %v1298_v21 }
 0x1e8   :  { %488 = vrot.lane.b32.xlu1 %v5011_v51, %s4216_s18  ;;  %468 = vrot.lane.b32.xlu0 %v5017_v0, %s4215_s17  ;;  %v2064_v27 = vmax.f32 %v1968_v2, 0.0  ;;  %v1299_v15 = vmul.f32 %v4578_v37, %v5029_v4 }
 0x1e9   :  { %v437_v26 = vpop.permute.xlu1 %436  ;;  %v1300_v46 = vmul.f32 %v4561_v31, %v5031_v28  ;;  %v2066_v17 = vmax.f32 %v1970_v10, 0.0  ;;  %v6510_v31 = vmov 0.0|0.0  }
 0x1ea   :  { %v5042_v34 = vmax.f32 %v4941_v50, %v437_v26  ;;  %v3781_v3 = vpack.c.bf16 %v2065_v32, %v2064_v27  ;;  %v1971_v43 = vadd.f32 %v1506_v23, %v1299_v15 }
 0x1eb   :  { %v1972_v14 = vadd.f32 %v4955_v35, %v1300_v46 }
 0x1ec   :  { %3782 = vmatpush1.bf16.msra.mxu0 %v3781_v3  ;;  %506 = vrot.lane.b32.xlu1 %v5011_v51, %s4217_s19  ;;  %v2067_v33 = vmax.f32 %v1971_v43, 0.0  ;;  %v1301_v37 = vmul.f32 %v4588_v41, %v5042_v34  ;;  %v1412_v43 = vld [vmem:[%s6422_s3 + $0xa0] sm:$0xff] }
 0x1ed   :  { %486 = vrot.lane.b32.xlu0 %v5017_v0, %s4216_s18  ;;  %3783 = vmatprep.subr.bf16.mxu0 %v6510_v31  ;;  %v2068_v27 = vmax.f32 %v1972_v14, 0.0  ;;  %v1413_v14 = vld [vmem:[%s6422_s3 + $0xa8] sm:$0xff] }
 0x1ee   :  { %v3784_v50 = vpack.c.bf16 %v2067_v33, %v2066_v17  ;;  %v1973_v23 = vadd.f32 %v4957_v42, %v1301_v37 }
 0x1f0   :  { %3785 = vmatpush1.bf16.msra.mxu0 %v3784_v50  ;;  %524 = vrot.lane.b32.xlu1 %v5011_v51, %s4218_s0  ;;  %v2069_v21 = vmax.f32 %v1973_v23, 0.0 }
 0x1f1   :  { %504 = vrot.lane.b32.xlu0 %v5017_v0, %s4217_s19  ;;  %3786 = vmatprep.subr.bf16.mxu0 %v6510_v31 }
 0x1f2   :  { %v3787_v41 = vpack.c.bf16 %v2069_v21, %v2068_v27  ;;  %v1415_v27 = vld [vmem:[%s6422_s3 + $0xb8] sm:$0xff] }
 0x1f4   :  { %542 = vrot.lane.b32.xlu1 %v5011_v51, %s4219_s20  ;;  %3788 = vmatpush1.bf16.msra.mxu0 %v3787_v41 }
 0x1f5   :  { %522 = vrot.lane.b32.xlu0 %v5017_v0, %s4218_s0  ;;  %3789 = vmatprep.subr.bf16.mxu0 %v6510_v31 }
 0x1f8   :  { %560 = vrot.lane.b32.xlu1 %v5011_v51, %s4220_s21 }
 0x1f9   :  { %540 = vrot.lane.b32.xlu0 %v5017_v0, %s4219_s20 }
 0x1fc   :  { %578 = vrot.lane.b32.xlu1 %v5011_v51, %s4221_s1 }
 0x1fd   :  { %558 = vrot.lane.b32.xlu0 %v5017_v0, %s4220_s21 }
 0x200   :  { %596 = vrot.lane.b32.xlu1 %v5011_v51, %s4222_s22 }
 0x201   :  { %576 = vrot.lane.b32.xlu0 %v5017_v0, %s4221_s1 }
 0x204   :  { %614 = vrot.lane.b32.xlu1 %v5011_v51, %s4209_s8 }
 0x205   :  { %594 = vrot.lane.b32.xlu0 %v5017_v0, %s4222_s22 }
 0x208   :  { %632 = vrot.lane.b32.xlu1 %v5011_v51, %s4223_s23 }
 0x209   :  { %612 = vrot.lane.b32.xlu0 %v5017_v0, %s4209_s8 }
 0x20c   :  { %650 = vrot.lane.b32.xlu1 %v5011_v51, %s4224_s24 }
 0x20d   :  { %630 = vrot.lane.b32.xlu0 %v5017_v0, %s4223_s23 }
 0x210   :  { %668 = vrot.lane.b32.xlu1 %v5011_v51, %s4225_s25 }
 0x211   :  { %648 = vrot.lane.b32.xlu0 %v5017_v0, %s4224_s24 }
 0x214   :  { %686 = vrot.lane.b32.xlu1 %v5011_v51, %s4226_s26 }
 0x215   :  { %666 = vrot.lane.b32.xlu0 %v5017_v0, %s4225_s25 }
 0x218   :  { %704 = vrot.lane.b32.xlu1 %v5011_v51, %s4227_s27 }
 0x219   :  { %684 = vrot.lane.b32.xlu0 %v5017_v0, %s4226_s26 }
 0x21c   :  { %456 = vrot.lane.b32.xlu1 %v5029_v4, %s4214_s4 }
 0x21d   :  { %702 = vrot.lane.b32.xlu0 %v5017_v0, %s4227_s27 }
 0x220   :  { %474 = vrot.lane.b32.xlu1 %v5029_v4, %s4215_s17 }
 0x221   :  { %454 = vrot.lane.b32.xlu0 %v5019_v16, %s4214_s4 }
 0x224   :  { %492 = vrot.lane.b32.xlu1 %v5029_v4, %s4216_s18 }
 0x225   :  { %472 = vrot.lane.b32.xlu0 %v5019_v16, %s4215_s17 }
 0x228   :  { %510 = vrot.lane.b32.xlu1 %v5029_v4, %s4217_s19 }
 0x229   :  { %490 = vrot.lane.b32.xlu0 %v5019_v16, %s4216_s18 }
 0x22c   :  { %528 = vrot.lane.b32.xlu1 %v5029_v4, %s4218_s0 }
 0x22d   :  { %508 = vrot.lane.b32.xlu0 %v5019_v16, %s4217_s19 }
 0x230   :  { %546 = vrot.lane.b32.xlu1 %v5029_v4, %s4219_s20 }
 0x231   :  { %526 = vrot.lane.b32.xlu0 %v5019_v16, %s4218_s0 }
 0x234   :  { %564 = vrot.lane.b32.xlu1 %v5029_v4, %s4220_s21 }
 0x235   :  { %544 = vrot.lane.b32.xlu0 %v5019_v16, %s4219_s20 }
 0x238   :  { %582 = vrot.lane.b32.xlu1 %v5029_v4, %s4221_s1 }
 0x239   :  { %562 = vrot.lane.b32.xlu0 %v5019_v16, %s4220_s21 }
 0x23c   :  { %600 = vrot.lane.b32.xlu1 %v5029_v4, %s4222_s22 }
 0x23d   :  { %580 = vrot.lane.b32.xlu0 %v5019_v16, %s4221_s1 }
 0x240   :  { %618 = vrot.lane.b32.xlu1 %v5029_v4, %s4209_s8 }
 0x241   :  { %598 = vrot.lane.b32.xlu0 %v5019_v16, %s4222_s22 }
 0x244   :  { %636 = vrot.lane.b32.xlu1 %v5029_v4, %s4223_s23 }
 0x245   :  { %616 = vrot.lane.b32.xlu0 %v5019_v16, %s4209_s8 }
 0x248   :  { %654 = vrot.lane.b32.xlu1 %v5029_v4, %s4224_s24 }
 0x249   :  { %634 = vrot.lane.b32.xlu0 %v5019_v16, %s4223_s23 }
 0x24c   :  { %672 = vrot.lane.b32.xlu1 %v5029_v4, %s4225_s25 }
 0x24d   :  { %652 = vrot.lane.b32.xlu0 %v5019_v16, %s4224_s24 }
 0x250   :  { %690 = vrot.lane.b32.xlu1 %v5029_v4, %s4226_s26 }
 0x251   :  { %670 = vrot.lane.b32.xlu0 %v5019_v16, %s4225_s25 }
 0x252   :  { %v453_v0 = vpop.permute.xlu1 %452 }
 0x253   :  { %v1303_v35 = vmul.f32 %v4598_v45, %v453_v0 }
 0x254   :  { %708 = vrot.lane.b32.xlu1 %v5029_v4, %s4227_s27 }
 0x255   :  { %688 = vrot.lane.b32.xlu0 %v5019_v16, %s4226_s26  ;;  %v1975_v7 = vadd.f32 %v4965_v59, %v1303_v35 }
 0x256   :  { %v5160_v51 = vpop.permute.xlu1 %470  ;;  %v451_v42 = vpop.permute.xlu0 %450 }
 0x257   :  { %v1302_v2 = vmul.f32 %v4576_v36, %v451_v42  ;;  %v2071_v15 = vmax.f32 %v1975_v7, 0.0  ;;  %v1417_v42 = vld [vmem:[%s6422_s3 + $0xc8] sm:$0xff] }
 0x258   :  { %460 = vrot.lane.b32.xlu1 %v5042_v34, %s4214_s4 }
 0x259   :  { %v1974_v32 = vadd.f32 %v4963_v6, %v1302_v2  ;;  %706 = vrot.lane.b32.xlu0 %v5019_v16, %s4227_s27 }
 0x25a   :  { %v5169_v45 = vpop.permute.xlu1 %488  ;;  %v5171_v4 = vpop.permute.xlu0 %468 }
 0x25b   :  { %v2070_v10 = vmax.f32 %v1974_v32, 0.0  ;;  %v1419_v32 = vld [vmem:[%s6422_s3 + $0xd8] sm:$0xff] }
 0x25c   :  { %478 = vrot.lane.b32.xlu1 %v5042_v34, %s4215_s17 }
 0x25d   :  { %v3790_v59 = vpack.c.bf16 %v2071_v15, %v2070_v10  ;;  %458 = vrot.lane.b32.xlu0 %v5031_v28, %s4214_s4 }
 0x25e   :  { %v5177_v36 = vpop.permute.xlu1 %506 }
 0x25f   :  { %v5179_v26 = vpop.permute.xlu0 %486  ;;  %3791 = vmatpush1.bf16.msra.mxu0 %v3790_v59 }
 0x260   :  { %496 = vrot.lane.b32.xlu1 %v5042_v34, %s4216_s18  ;;  %3792 = vmatprep.subr.bf16.mxu0 %v6510_v31 }
 0x261   :  { %476 = vrot.lane.b32.xlu0 %v5031_v28, %s4215_s17 }
 0x262   :  { %v5186_v16 = vpop.permute.xlu1 %524 }
 0x263   :  { %6511 = vst [vmem:[#allocation86_spill] sm:$0xff] %v5186_v16  ;;  %v5188_v6 = vpop.permute.xlu0 %504 }
 0x264   :  { %514 = vrot.lane.b32.xlu1 %v5042_v34, %s4217_s19 }
 0x265   :  { %494 = vrot.lane.b32.xlu0 %v5031_v28, %s4216_s18 }
 0x266   :  { %v5194_v46 = vpop.permute.xlu1 %542 }
 0x267   :  { %v5196_v3 = vpop.permute.xlu0 %522 }
 0x268   :  { %6512 = vst [vmem:[#allocation87_spill] sm:$0xff] %v5196_v3  ;;  %532 = vrot.lane.b32.xlu1 %v5042_v34, %s4218_s0 }
 0x269   :  { %512 = vrot.lane.b32.xlu0 %v5031_v28, %s4217_s19 }
 0x26a   :  { %v5205_v17 = vpop.permute.xlu1 %560 }
 0x26b   :  { %v5207_v33 = vpop.permute.xlu0 %540 }
 0x26c   :  { %1590 = vperm.xlu1 %4182, %v1412_v43  }
 0x26d   :  { %530 = vrot.lane.b32.xlu0 %v5031_v28, %s4218_s0 }
 0x26e   :  { %v5211_v37 = vpop.permute.xlu1 %578 }
 0x26f   :  { %v5216_v50 = vpop.permute.xlu0 %558 }
 0x270   :  { %550 = vrot.lane.b32.xlu1 %v5042_v34, %s4219_s20 }
 0x271   :  { %1595 = vperm.xlu0 %4181, %v1413_v14   ;;  %v1421_v14 = vld [vmem:[%s6422_s3 + $0xe8] sm:$0xff] }
 0x272   :  { %v5220_v23 = vpop.permute.xlu1 %596 }
 0x273   :  { %v5225_v21 = vpop.permute.xlu0 %576 }
 0x274   :  { %568 = vrot.lane.b32.xlu1 %v5042_v34, %s4220_s21 }
 0x275   :  { %1605 = vperm.xlu0 %4181, %v1415_v27  }
 0x276   :  { %v5229_v41 = vpop.permute.xlu1 %614 }
 0x277   :  { %6513 = vst [vmem:[#allocation88_spill] sm:$0xff] %v5229_v41  ;;  %v5231_v0 = vpop.permute.xlu0 %594 }
 0x278   :  { %586 = vrot.lane.b32.xlu1 %v5042_v34, %s4221_s1 }
 0x279   :  { %548 = vrot.lane.b32.xlu0 %v5031_v28, %s4219_s20 }
 0x27a   :  { %v5237_v35 = vpop.permute.xlu1 %632 }
 0x27b   :  { %6514 = vst [vmem:[#allocation89_spill] sm:$0xff] %v5237_v35  ;;  %v5242_v7 = vpop.permute.xlu0 %612 }
 0x27c   :  { %604 = vrot.lane.b32.xlu1 %v5042_v34, %s4222_s22 }
 0x27d   :  { %1615 = vperm.xlu0 %4181, %v1417_v42  }
 0x27e   :  { %v5246_v2 = vpop.permute.xlu1 %650 }
 0x27f   :  { %6515 = vst [vmem:[#allocation90_spill] sm:$0xff] %v5246_v2  ;;  %v5251_v15 = vpop.permute.xlu0 %630 }
 0x280   :  { %6516 = vst [vmem:[#allocation91_spill] sm:$0xff] %v5251_v15  ;;  %622 = vrot.lane.b32.xlu1 %v5042_v34, %s4209_s8 }
 0x281   :  { %1625 = vperm.xlu0 %4181, %v1419_v32  }
 0x282   :  { %v5255_v10 = vpop.permute.xlu1 %668 }
 0x283   :  { %6517 = vst [vmem:[#allocation92_spill] sm:$0xff] %v5255_v10  ;;  %v5257_v59 = vpop.permute.xlu0 %648 }
 0x284   :  { %6518 = vst [vmem:[#allocation93_spill] sm:$0xff] %v5257_v59  ;;  %640 = vrot.lane.b32.xlu1 %v5042_v34, %s4223_s23 }
 0x285   :  { %566 = vrot.lane.b32.xlu0 %v5031_v28, %s4220_s21 }
 0x286   :  { %v5263_v43 = vpop.permute.xlu1 %686 }
 0x287   :  { %6519 = vst [vmem:[#allocation94_spill] sm:$0xff] %v5263_v43  ;;  %v5268_v27 = vpop.permute.xlu0 %666 }
 0x288   :  { %6520 = vst [vmem:[#allocation95_spill] sm:$0xff] %v5268_v27  ;;  %658 = vrot.lane.b32.xlu1 %v5042_v34, %s4224_s24 }
 0x289   :  { %1635 = vperm.xlu0 %4181, %v1421_v14  }
 0x28a   :  { %v5272_v42 = vpop.permute.xlu1 %704 }
 0x28b   :  { %6521 = vst [vmem:[#allocation96_spill] sm:$0xff] %v5272_v42  ;;  %v5274_v32 = vpop.permute.xlu0 %684 }
 0x28c   :  { %6522 = vst [vmem:[#allocation97_spill] sm:$0xff] %v5274_v32  ;;  %676 = vrot.lane.b32.xlu1 %v5042_v34, %s4225_s25 }
 0x28d   :  { %584 = vrot.lane.b32.xlu0 %v5031_v28, %s4221_s1 }
 0x28e   :  { %v457_v43 = vpop.permute.xlu1 %456 }
 0x28f   :  { %v5280_v10 = vpop.permute.xlu0 %702  ;;  %v1305_v59 = vmul.f32 %v4608_v49, %v457_v43  ;;  %v1414_v49 = vld [vmem:[%s6422_s3 + $0xb0] sm:$0xff] }
 0x290   :  { %6523 = vst [vmem:[#allocation98_spill] sm:$0xff] %v5280_v10  ;;  %694 = vrot.lane.b32.xlu1 %v5042_v34, %s4226_s26 }
 0x291   :  { %602 = vrot.lane.b32.xlu0 %v5031_v28, %s4222_s22  ;;  %v1977_v32 = vadd.f32 %v4973_v13, %v1305_v59 }
 0x292   :  { %v5287_v14 = vpop.permute.xlu1 %474 }
 0x293   :  { %v455_v42 = vpop.permute.xlu0 %454  ;;  %v2073_v35 = vmax.f32 %v1977_v32, 0.0 }
 0x294   :  { %v1304_v27 = vmul.f32 %v4586_v40, %v455_v42  ;;  %712 = vrot.lane.b32.xlu1 %v5042_v34, %s4227_s27  ;;  %v1416_v40 = vld [vmem:[%s6422_s3 + $0xc0] sm:$0xff] }
 0x295   :  { %620 = vrot.lane.b32.xlu0 %v5031_v28, %s4209_s8 }
 0x296   :  { %v1976_v43 = vadd.f32 %v4971_v12, %v1304_v27  ;;  %v5299_v10 = vpop.permute.xlu1 %492  ;;  %v1418_v12 = vld [vmem:[%s6422_s3 + $0xd0] sm:$0xff] }
 0x297   :  { %v5301_v2 = vpop.permute.xlu0 %472 }
 0x298   :  { %v2072_v13 = vmax.f32 %v1976_v43, 0.0  ;;  %1600 = vperm.xlu1 %4182, %v1414_v49   ;;  %v1420_v49 = vld [vmem:[%s6422_s3 + $0xe0] sm:$0xff] }
 0x299   :  { %638 = vrot.lane.b32.xlu0 %v5031_v28, %s4223_s23 }
 0x29a   :  { %v3793_v34 = vpack.c.bf16 %v2073_v35, %v2072_v13  ;;  %v5308_v59 = vpop.permute.xlu1 %510 }
 0x29b   :  { %6524 = vst [vmem:[#allocation99_spill] sm:$0xff] %v5308_v59  ;;  %v5310_v42 = vpop.permute.xlu0 %490 }
 0x29c   :  { %3794 = vmatpush1.bf16.msra.mxu0 %v3793_v34  ;;  %1610 = vperm.xlu1 %4182, %v1416_v40  }
 0x29d   :  { %656 = vrot.lane.b32.xlu0 %v5031_v28, %s4224_s24  ;;  %3795 = vmatprep.subr.bf16.mxu0 %v6510_v31 }
 0x29e   :  { %v529_v27 = vpop.permute.xlu1 %528 }
 0x29f   :  { %v5318_v32 = vpop.permute.xlu0 %508  ;;  %v1329_v35 = vmul.f32 %v4728_v39, %v529_v27  ;;  %v1422_v39 = vld [vmem:[%s6422_s3 + $0xf0] sm:$0xff] }
 0x2a0   :  { %6525 = vst [vmem:[#allocation100_spill] sm:$0xff] %v5318_v32  ;;  %1620 = vperm.xlu1 %4182, %v1418_v12   ;;  %v1471_v32 = vld [vmem:[%s6422_s3 + $0x278] sm:$0xff] }
 0x2a1   :  { %674 = vrot.lane.b32.xlu0 %v5031_v28, %s4225_s25  ;;  %v2001_v40 = vadd.f32 %v4906_v58, %v1329_v35 }
 0x2a2   :  { %v5326_v43 = vpop.permute.xlu1 %546 }
 0x2a3   :  { %v527_v13 = vpop.permute.xlu0 %526  ;;  %v2097_v3 = vmax.f32 %v2001_v40, 0.0  ;;  %v2283_v40 = vld [vmem:[#allocation2 + $0x3d8] sm:$0xff] }
 0x2a4   :  { %v1328_v34 = vmul.f32 %v4706_v25, %v527_v13  ;;  %1630 = vperm.xlu1 %4182, %v1420_v49   ;;  %v1456_v25 = vld [vmem:[%s6422_s3 + $0x200] sm:$0xff]  ;;  %3205 = vmatprep.mubr.f32.mxu1 %v2283_v40  ;;  %v1461_v40 = vld [vmem:[%s6422_s3 + $0x228] sm:$0xff] }
 0x2a5   :  { %692 = vrot.lane.b32.xlu0 %v5031_v28, %s4226_s26 }
 0x2a6   :  { %v2000_v12 = vadd.f32 %v4904_v20, %v1328_v34  ;;  %v5336_v27 = vpop.permute.xlu1 %564  ;;  %v1423_v20 = vld [vmem:[%s6422_s3 + $0xf8] sm:$0xff]  ;;  %v1460_v34 = vld [vmem:[%s6422_s3 + $0x220] sm:$0xff] }
 0x2a7   :  { %v5338_v15 = vpop.permute.xlu0 %544 }
 0x2a8   :  { %1640 = vperm.xlu1 %4182, %v1422_v39   ;;  %v2096_v16 = vmax.f32 %v2000_v12, 0.0  ;;  %v1459_v12 = vld [vmem:[%s6422_s3 + $0x218] sm:$0xff] }
 0x2a9   :  { %710 = vrot.lane.b32.xlu0 %v5031_v28, %s4227_s27  ;;  %v1458_v28 = vld [vmem:[%s6422_s3 + $0x210] sm:$0xff] }
 0x2aa   :  { %v5345_v58 = vpop.permute.xlu1 %582  ;;  %v5347_v35 = vpack.c.bf16 %v2097_v3, %v2096_v16  ;;  %v1457_v16 = vld [vmem:[%s6422_s3 + $0x208] sm:$0xff] }
 0x2ab   :  { %v5352_v49 = vpop.permute.xlu0 %562 }
 0x2ac   :  { %6526 = vst [vmem:[#allocation101_spill] sm:$0xff] %v5347_v35  ;;  %3940 = vmatpush1.bf16.msra.mxu1 %v5347_v35  ;;  %1810 = vperm.xlu1 %4182, %v1456_v25  }
 0x2ad   :  { %1645 = vperm.xlu0 %4181, %v1423_v20   ;;  %3925 = vmatprep.subr.bf16.mxu1 %v6510_v31  ;;  %v1462_v20 = vld [vmem:[%s6422_s3 + $0x230] sm:$0xff] }
 0x2ae   :  { %v5359_v13 = vpop.permute.xlu1 %600 }
 0x2af   :  { %v5364_v3 = vpop.permute.xlu0 %580 }
 0x2b0   :  { %1820 = vperm.xlu1 %4182, %v1458_v28   ;;  %v2161_v28 = vld [vmem:[#allocation2 + $0x8] sm:$0xff] }
 0x2b1   :  { %1815 = vperm.xlu0 %4181, %v1457_v16   ;;  %2800 = vmatprep.mubr.f32.mxu0 %v2161_v28  ;;  %v1466_v28 = vld [vmem:[%s6422_s3 + $0x250] sm:$0xff] }
 0x2b2   :  { %v5369_v39 = vpop.permute.xlu1 %618 }
 0x2b3   :  { %6527 = vst [vmem:[#allocation102_spill] sm:$0xff] %v5369_v39  ;;  %v5374_v25 = vpop.permute.xlu0 %598  ;;  %v1463_v39 = vld [vmem:[%s6422_s3 + $0x238] sm:$0xff] }
 0x2b4   :  { %1830 = vperm.xlu1 %4182, %v1460_v34   ;;  %v1464_v34 = vld [vmem:[%s6422_s3 + $0x240] sm:$0xff] }
 0x2b5   :  { %1825 = vperm.xlu0 %4181, %v1459_v12  }
 0x2b6   :  { %v5379_v16 = vpop.permute.xlu1 %636 }
 0x2b7   :  { %6528 = vst [vmem:[#allocation103_spill] sm:$0xff] %v5379_v16  ;;  %v5384_v35 = vpop.permute.xlu0 %616 }
 0x2b8   :  { %6529 = vst [vmem:[#allocation104_spill] sm:$0xff] %v5384_v35  ;;  %1840 = vperm.xlu1 %4182, %v1462_v20  }
 0x2b9   :  { %1835 = vperm.xlu0 %4181, %v1461_v40   ;;  %v1465_v40 = vld [vmem:[%s6422_s3 + $0x248] sm:$0xff] }
 0x2ba   :  { %v5389_v12 = vpop.permute.xlu1 %654 }
 0x2bb   :  { %6530 = vst [vmem:[#allocation105_spill] sm:$0xff] %v5389_v12  ;;  %v5394_v16 = vpop.permute.xlu0 %634  ;;  %v1468_v12 = vld [vmem:[%s6422_s3 + $0x260] sm:$0xff] }
 0x2bc   :  { %6531 = vst [vmem:[#allocation106_spill] sm:$0xff] %v5394_v16  ;;  %1850 = vperm.xlu1 %4182, %v1464_v34  }
 0x2bd   :  { %1845 = vperm.xlu0 %4181, %v1463_v39   ;;  %v1467_v39 = vld [vmem:[%s6422_s3 + $0x258] sm:$0xff] }
 0x2be   :  { %v5399_v20 = vpop.permute.xlu1 %672 }
 0x2bf   :  { %6532 = vst [vmem:[#allocation107_spill] sm:$0xff] %v5399_v20  ;;  %v5404_v35 = vpop.permute.xlu0 %652  ;;  %v798_v20 = vld [vmem:[%s6421_s2 + $0x270] sm:$0xff] }
 0x2c0   :  { %6533 = vst [vmem:[#allocation108_spill] sm:$0xff] %v5404_v35  ;;  %1860 = vperm.xlu1 %4182, %v1466_v28  }
 0x2c1   :  { %1855 = vperm.xlu0 %4181, %v1465_v40   ;;  %v1469_v40 = vld [vmem:[%s6422_s3 + $0x268] sm:$0xff] }
 0x2c2   :  { %v5409_v34 = vpop.permute.xlu1 %690 }
 0x2c3   :  { %6534 = vst [vmem:[#allocation109_spill] sm:$0xff] %v5409_v34  ;;  %v5414_v16 = vpop.permute.xlu0 %670  ;;  %v1470_v34 = vld [vmem:[%s6422_s3 + $0x270] sm:$0xff] }
 0x2c4   :  { %6535 = vst [vmem:[#allocation110_spill] sm:$0xff] %v5414_v16  ;;  %1870 = vperm.xlu1 %4182, %v1468_v12  }
 0x2c5   :  { %1865 = vperm.xlu0 %4181, %v1467_v39   ;;  %v799_v39 = vld [vmem:[%s6421_s2 + $0x278] sm:$0xff] }
 0x2c6   :  { %v5419_v28 = vpop.permute.xlu1 %708 }
 0x2c7   :  { %6536 = vst [vmem:[#allocation111_spill] sm:$0xff] %v5419_v28  ;;  %v5424_v35 = vpop.permute.xlu0 %688 }
 0x2c8   :  { %6537 = vst [vmem:[#allocation112_spill] sm:$0xff] %v5424_v35  ;;  %1208 = vperm.xlu1 %4182, %v798_v20   ;;  %v800_v20 = vld [vmem:[%s6421_s2 + $0x280] sm:$0xff] }
 0x2c9   :  { %1875 = vperm.xlu0 %4181, %v1469_v40   ;;  %v1308_v40 = vmul.f32 %v4606_v48, %v5171_v4  ;;  %v1310_v4 = vmul.f32 %v4616_v52, %v5301_v2  ;;  %v802_v52 = vld [vmem:[%s6421_s2 + $0x290] sm:$0xff] }
 0x2ca   :  { %v461_v12 = vpop.permute.xlu1 %460 }
 0x2cb   :  { %v5432_v16 = vpop.permute.xlu0 %706  ;;  %v1307_v28 = vmul.f32 %v4618_v53, %v461_v12  ;;  %v1472_v12 = vld [vmem:[%s6422_s3 + $0x280] sm:$0xff]  ;;  %v1980_v48 = vadd.f32 %v4987_v62, %v1308_v40  ;;  %v1982_v62 = vadd.f32 %v4995_v9, %v1310_v4  ;;  %v1314_v9 = vmul.f32 %v4636_v60, %v5179_v26 }
 0x2cc   :  { %6538 = vst [vmem:[#allocation113_spill] sm:$0xff] %v5432_v16  ;;  %1880 = vperm.xlu1 %4182, %v1470_v34   ;;  %v1309_v16 = vmul.f32 %v4628_v57, %v5160_v51  ;;  %v801_v57 = vld [vmem:[%s6421_s2 + $0x288] sm:$0xff]  ;;  %v1311_v51 = vmul.f32 %v4638_v61, %v5287_v14 }
 0x2cd   :  { %1213 = vperm.xlu0 %4181, %v799_v39   ;;  %v1979_v53 = vadd.f32 %v4981_v24, %v1307_v28  ;;  %v1473_v61 = vld [vmem:[%s6422_s3 + $0x288] sm:$0xff] }
 0x2ce   :  { %v479_v35 = vpop.permute.xlu1 %478  ;;  %v1981_v24 = vadd.f32 %v4989_v18, %v1309_v16  ;;  %v1983_v16 = vadd.f32 %v4997_v19, %v1311_v51  ;;  %v1315_v19 = vmul.f32 %v4658_v5, %v5169_v45  ;;  %v1332_v5 = vmul.f32 %v4726_v38, %v5207_v33  ;;  %v1476_v33 = vld [vmem:[%s6422_s3 + $0x2a0] sm:$0xff] }
 0x2cf   :  { %v459_v41 = vpop.permute.xlu0 %458  ;;  %v1313_v40 = vmul.f32 %v4648_v1, %v479_v35  ;;  %v803_v1 = vld [vmem:[%s6421_s2 + $0x298] sm:$0xff] }
 0x2d0   :  { %v1306_v34 = vmul.f32 %v4596_v44, %v459_v41  ;;  %1218 = vperm.xlu1 %4182, %v800_v20   ;;  %v2075_v41 = vmax.f32 %v1979_v53, 0.0  ;;  %v2077_v14 = vmax.f32 %v1981_v24, 0.0  ;;  %v2079_v26 = vmax.f32 %v1983_v16, 0.0 }
 0x2d1   :  { %1885 = vperm.xlu0 %4181, %v1471_v32   ;;  %v1985_v35 = vadd.f32 %v5005_v8, %v1313_v40  ;;  %v1475_v8 = vld [vmem:[%s6422_s3 + $0x298] sm:$0xff] }
 0x2d2   :  { %v1978_v39 = vadd.f32 %v4979_v54, %v1306_v34  ;;  %v5454_v59 = vpop.permute.xlu1 %496  ;;  %v2076_v54 = vmax.f32 %v1980_v48, 0.0  ;;  %v2078_v34 = vmax.f32 %v1982_v62, 0.0 }
 0x2d3   :  { %v477_v44 = vpop.permute.xlu0 %476  ;;  %v2081_v24 = vmax.f32 %v1985_v35, 0.0 }
 0x2d4   :  { %v2074_v32 = vmax.f32 %v1978_v39, 0.0  ;;  %1890 = vperm.xlu1 %4182, %v1472_v12   ;;  %v1312_v28 = vmul.f32 %v4626_v56, %v477_v44  ;;  %v1474_v56 = vld [vmem:[%s6422_s3 + $0x290] sm:$0xff]  ;;  %v3799_v53 = vpack.c.bf16 %v2077_v14, %v2076_v54  ;;  %v1986_v39 = vadd.f32 %v5007_v22, %v1314_v9  ;;  %v6541_v54 = vld [vmem:[#allocation57_spill] sm:$0xff] }
 0x2d5   :  { %1223 = vperm.xlu0 %4181, %v801_v57   ;;  %v3802_v45 = vpack.c.bf16 %v2079_v26, %v2078_v34  ;;  %v1333_v22 = vmul.f32 %v4748_v55, %v5194_v46 }
 0x2d6   :  { %v3796_v2 = vpack.c.bf16 %v2075_v41, %v2074_v32  ;;  %v5467_v20 = vpop.permute.xlu1 %514  ;;  %v1984_v12 = vadd.f32 %v5003_v29, %v1312_v28  ;;  %v804_v29 = vld [vmem:[%s6421_s2 + $0x2a0] sm:$0xff]  ;;  %v2082_v38 = vmax.f32 %v1986_v39, 0.0  ;;  %v807_v39 = vld [vmem:[%s6421_s2 + $0x2b8] sm:$0xff] }
 0x2d7   :  { %v5472_v18 = vpop.permute.xlu0 %494 }
 0x2d8   :  { %3797 = vmatpush1.bf16.msra.mxu0 %v3796_v2  ;;  %1228 = vperm.xlu1 %4182, %v802_v52   ;;  %v2080_v57 = vmax.f32 %v1984_v12, 0.0  ;;  %v6540_v52 = vld [vmem:[#allocation17_spill] sm:$0xff]  ;;  %v6542_v2 = vld [vmem:[#allocation59_spill] sm:$0xff] }
 0x2d9   :  { %1895 = vperm.xlu0 %4181, %v1473_v61   ;;  %3798 = vmatprep.subr.bf16.mxu0 %v6510_v31  ;;  %v1334_v55 = vmul.f32 %v6540_v52, %v5338_v15  ;;  %v2005_v28 = vadd.f32 %v6542_v2, %v1333_v22  ;;  %v6543_v61 = vld [vmem:[#allocation20_spill] sm:$0xff]  ;;  %v806_v12 = vld [vmem:[%s6421_s2 + $0x2b0] sm:$0xff] }
 0x2da   :  { %v533_v48 = vpop.permute.xlu1 %532  ;;  %v3805_v46 = vpack.c.bf16 %v2081_v24, %v2080_v57  ;;  %v1335_v14 = vmul.f32 %v6543_v61, %v5326_v43  ;;  %v1477_v43 = vld [vmem:[%s6422_s3 + $0x2a8] sm:$0xff]  ;;  %v6547_v22 = vld [vmem:[#allocation8_spill] sm:$0xff] }
 0x2db   :  { %v5488_v60 = vpop.permute.xlu0 %512  ;;  %v1331_v4 = vmul.f32 %v4738_v47, %v533_v48  ;;  %v1987_v47 = vadd.f32 %v5009_v63, %v1315_v19  ;;  %v6539_v63 = vld [vmem:[#allocation58_spill] sm:$0xff]  ;;  %v2101_v48 = vmax.f32 %v2005_v28, 0.0  ;;  %v1317_v24 = vmul.f32 %v6547_v22, %v5299_v10  ;;  %v6549_v28 = vld [vmem:[#allocation19_spill] sm:$0xff]  ;;  %v812_v22 = vld [vmem:[%s6421_s2 + $0x2e0] sm:$0xff] }
 0x2dc   :  { %3800 = vmatpush1.bf16.msra.mxu0 %v3799_v53  ;;  %1900 = vperm.xlu1 %4182, %v1474_v56   ;;  %v2004_v32 = vadd.f32 %v6539_v63, %v1332_v5  ;;  %v6544_v56 = vld [vmem:[#allocation60_spill] sm:$0xff]  ;;  %v809_v63 = vld [vmem:[%s6421_s2 + $0x2c8] sm:$0xff]  ;;  %v1338_v61 = vmul.f32 %v6549_v28, %v5216_v50 }
 0x2dd   :  { %1233 = vperm.xlu0 %4181, %v803_v1   ;;  %3801 = vmatprep.subr.bf16.mxu0 %v6510_v31  ;;  %v2003_v51 = vadd.f32 %v4910_v11, %v1331_v4  ;;  %v2083_v62 = vmax.f32 %v1987_v47, 0.0  ;;  %v2006_v53 = vadd.f32 %v6544_v56, %v1334_v55  ;;  %v6545_v1 = vld [vmem:[#allocation61_spill] sm:$0xff]  ;;  %v1478_v4 = vld [vmem:[%s6422_s3 + $0x2b0] sm:$0xff]  ;;  %v6552_v56 = vld [vmem:[#allocation24_spill] sm:$0xff] }
 0x2de   :  { %v2100_v9 = vmax.f32 %v2004_v32, 0.0  ;;  %v2007_v19 = vadd.f32 %v6545_v1, %v1335_v14  ;;  %v808_v47 = vld [vmem:[%s6421_s2 + $0x2c0] sm:$0xff]  ;;  %v811_v50 = vld [vmem:[%s6421_s2 + $0x2d8] sm:$0xff] }
 0x2df   :  { %v531_v44 = vpop.permute.xlu0 %530  ;;  %v2099_v16 = vmax.f32 %v2003_v51, 0.0  ;;  %v3808_v15 = vpack.c.bf16 %v2083_v62, %v2082_v38  ;;  %v2102_v26 = vmax.f32 %v2006_v53, 0.0  ;;  %v1481_v62 = vld [vmem:[%s6422_s3 + $0x2c8] sm:$0xff]  ;;  %v1339_v53 = vmul.f32 %v6552_v56, %v5205_v17 }
 0x2e0   :  { %v1330_v41 = vmul.f32 %v4716_v30, %v531_v44  ;;  %3803 = vmatpush1.bf16.msra.mxu0 %v3802_v45  ;;  %1238 = vperm.xlu1 %4182, %v804_v29   ;;  %v805_v30 = vld [vmem:[%s6421_s2 + $0x2a8] sm:$0xff]  ;;  %v5534_v35 = vpack.c.bf16 %v2101_v48, %v2100_v9  ;;  %v2103_v5 = vmax.f32 %v2007_v19, 0.0  ;;  %v6546_v45 = vld [vmem:[#allocation5_spill] sm:$0xff]  ;;  %v1479_v44 = vld [vmem:[%s6422_s3 + $0x2b8] sm:$0xff] }
 0x2e1   :  { %1905 = vperm.xlu0 %4181, %v1475_v8   ;;  %3804 = vmatprep.subr.bf16.mxu0 %v6510_v31  ;;  %v1316_v57 = vmul.f32 %v6546_v45, %v5310_v42  ;;  %v6554_v19 = vld [vmem:[#allocation64_spill] sm:$0xff]  ;;  %v6556_v45 = vld [vmem:[#allocation65_spill] sm:$0xff]  ;;  %v6564_v56 = vld [vmem:[#allocation30_spill] sm:$0xff] }
 0x2e2   :  { %v2002_v11 = vadd.f32 %v6541_v54, %v1330_v41  ;;  %v5547_v8 = vpack.c.bf16 %v2103_v5, %v2102_v26  ;;  %v2010_v26 = vadd.f32 %v6554_v19, %v1338_v61 }
 0x2e4   :  { %v2098_v40 = vmax.f32 %v2002_v11, 0.0  ;;  %3806 = vmatpush1.bf16.msra.mxu0 %v3805_v46  ;;  %1910 = vperm.xlu1 %4182, %v1476_v33   ;;  %v1480_v33 = vld [vmem:[%s6422_s3 + $0x2c0] sm:$0xff]  ;;  %v6548_v46 = vld [vmem:[#allocation22_spill] sm:$0xff] }
 0x2e5   :  { %1243 = vperm.xlu0 %4181, %v805_v30   ;;  %3807 = vmatprep.subr.bf16.mxu0 %v6510_v31  ;;  %v810_v30 = vld [vmem:[%s6421_s2 + $0x2d0] sm:$0xff] }
 0x2e6   :  { %v5523_v34 = vpack.c.bf16 %v2099_v16, %v2098_v40  ;;  %v6550_v16 = vld [vmem:[#allocation63_spill] sm:$0xff] }
 0x2e8   :  { %3809 = vmatpush1.bf16.msra.mxu0 %v3808_v15  ;;  %3941 = vmatpush1.bf16.msra.mxu1 %v5523_v34  ;;  %v6551_v15 = vld [vmem:[#allocation18_spill] sm:$0xff] }
 0x2e9   :  { %1248 = vperm.xlu1 %4182, %v806_v12   ;;  %1915 = vperm.xlu0 %4181, %v1477_v43   ;;  %v1482_v12 = vld [vmem:[%s6422_s3 + $0x2d0] sm:$0xff]  ;;  %v6553_v43 = vld [vmem:[#allocation62_spill] sm:$0xff] }
 0x2ea   :  { %3926 = vmatprep.subr.bf16.mxu1 %v6510_v31  ;;  %3810 = vmatprep.subr.bf16.mxu0 %v6510_v31 }
 0x2eb   :  { %v1591_v29 = vpop.permute.xlu1 %1590 }
 0x2ec   :  { %3942 = vmatpush1.bf16.msra.mxu1 %v5534_v35  ;;  %v1988_v51 = vadd.f32 %v1591_v29, %v1316_v57  ;;  %v2011_v57 = vadd.f32 %v6556_v45, %v1339_v53  ;;  %v1345_v53 = vmul.f32 %v6564_v56, %v5211_v37  ;;  %v6567_v37 = vld [vmem:[#allocation27_spill] sm:$0xff] }
 0x2ed   :  { %1920 = vperm.xlu1 %4182, %v1478_v4   ;;  %1253 = vperm.xlu0 %4181, %v807_v39   ;;  %v6555_v4 = vld [vmem:[#allocation21_spill] sm:$0xff] }
 0x2ee   :  { %3927 = vmatprep.subr.bf16.mxu1 %v6510_v31  ;;  %v2084_v32 = vmax.f32 %v1988_v51, 0.0  ;;  %v1340_v39 = vmul.f32 %v6555_v4, %v5352_v49 }
 0x2ef   :  { %v551_v41 = vpop.permute.xlu1 %550 }
 0x2f0   :  { %3943 = vmatpush1.bf16.msra.mxu1 %v5547_v8  ;;  %v1596_v42 = vpop.permute.xlu0 %1595  ;;  %v1337_v54 = vmul.f32 %v6548_v46, %v551_v41  ;;  %v2106_v41 = vmax.f32 %v2010_v26, 0.0  ;;  %v6566_v26 = vld [vmem:[#allocation70_spill] sm:$0xff] }
 0x2f1   :  { %v1989_v38 = vadd.f32 %v1596_v42, %v1317_v24  ;;  %1258 = vperm.xlu1 %4182, %v808_v47   ;;  %1925 = vperm.xlu0 %4181, %v1479_v44   ;;  %v6557_v47 = vld [vmem:[#allocation26_spill] sm:$0xff]  ;;  %v1483_v24 = vld [vmem:[%s6422_s3 + $0x2d8] sm:$0xff] }
 0x2f2   :  { %3928 = vmatprep.subr.bf16.mxu1 %v6510_v31  ;;  %v2009_v40 = vadd.f32 %v6550_v16, %v1337_v54  ;;  %v1341_v44 = vmul.f32 %v6557_v47, %v5336_v27  ;;  %v6558_v42 = vld [vmem:[#allocation66_spill] sm:$0xff]  ;;  %v2107_v27 = vmax.f32 %v2011_v57, 0.0  ;;  %v1484_v54 = vld [vmem:[%s6422_s3 + $0x2e0] sm:$0xff]  ;;  %v6568_v47 = vld [vmem:[#allocation71_spill] sm:$0xff] }
 0x2f3   :  { %v2085_v10 = vmax.f32 %v1989_v38, 0.0  ;;  %v569_v52 = vpop.permute.xlu1 %568  ;;  %v2012_v38 = vadd.f32 %v6558_v42, %v1340_v39  ;;  %v6562_v16 = vld [vmem:[#allocation69_spill] sm:$0xff]  ;;  %v1346_v39 = vmul.f32 %v6567_v37, %v5364_v3  ;;  %v815_v3 = vld [vmem:[%s6421_s2 + $0x2f8] sm:$0xff]  ;;  %v2449_v37 = vld [vmem:[%s6424_s5 + $0x8] sm:$0xff] }
 0x2f4   :  { %v5565_v55 = vpop.permute.xlu0 %1605  ;;  %v2105_v17 = vmax.f32 %v2009_v40, 0.0 }
 0x2f5   :  { %v3811_v11 = vpack.c.bf16 %v2085_v10, %v2084_v32  ;;  %1930 = vperm.xlu1 %4182, %v1480_v33   ;;  %1263 = vperm.xlu0 %4181, %v809_v63   ;;  %v6559_v63 = vld [vmem:[#allocation28_spill] sm:$0xff]  ;;  %v6560_v10 = vld [vmem:[#allocation67_spill] sm:$0xff]  ;;  %v2108_v28 = vmax.f32 %v2012_v38, 0.0 }
 0x2f6   :  { %v1343_v32 = vmul.f32 %v6559_v63, %v569_v52  ;;  %v2013_v46 = vadd.f32 %v6560_v10, %v1341_v44  ;;  %v6561_v52 = vld [vmem:[#allocation25_spill] sm:$0xff]  ;;  %v2017_v44 = vadd.f32 %v6568_v47, %v1345_v53  ;;  %v6575_v53 = vld [vmem:[#allocation74_spill] sm:$0xff] }
 0x2f7   :  { %3812 = vmatpush1.bf16.msra.mxu0 %v3811_v11  ;;  %v5574_v2 = vpop.permute.xlu1 %586  ;;  %v813_v11 = vld [vmem:[%s6421_s2 + $0x2e8] sm:$0xff]  ;;  %v6571_v10 = vld [vmem:[#allocation29_spill] sm:$0xff] }
 0x2f8   :  { %v549_v14 = vpop.permute.xlu0 %548  ;;  %3813 = vmatprep.subr.bf16.mxu0 %v6510_v31  ;;  %v2015_v40 = vadd.f32 %v6562_v16, %v1343_v32  ;;  %v6570_v32 = vld [vmem:[#allocation72_spill] sm:$0xff] }
 0x2f9   :  { %v1336_v9 = vmul.f32 %v6551_v15, %v549_v14  ;;  %1268 = vperm.xlu1 %4182, %v810_v30   ;;  %1935 = vperm.xlu0 %4181, %v1481_v62   ;;  %v1344_v62 = vmul.f32 %v6561_v52, %v5225_v21  ;;  %v5627_v14 = vpack.c.bf16 %v2107_v27, %v2106_v41  ;;  %v6563_v15 = vld [vmem:[#allocation23_spill] sm:$0xff]  ;;  %v1487_v16 = vld [vmem:[%s6422_s3 + $0x2f8] sm:$0xff] }
 0x2fa   :  { %v814_v21 = vld [vmem:[%s6421_s2 + $0x2f0] sm:$0xff]  ;;  %v2111_v45 = vmax.f32 %v2015_v40, 0.0  ;;  %v2018_v27 = vadd.f32 %v6570_v32, %v1346_v39  ;;  %v6578_v39 = vld [vmem:[#allocation76_spill] sm:$0xff] }
 0x2fb   :  { %v2008_v48 = vadd.f32 %v6553_v43, %v1336_v9  ;;  %v5590_v1 = vpop.permute.xlu1 %604  ;;  %v6565_v43 = vld [vmem:[#allocation68_spill] sm:$0xff]  ;;  %v2016_v4 = vadd.f32 %v6566_v26, %v1344_v62  ;;  %v1486_v41 = vld [vmem:[%s6422_s3 + $0x2f0] sm:$0xff]  ;;  %v6573_v62 = vld [vmem:[#allocation34_spill] sm:$0xff] }
 0x2fc   :  { %v5595_v29 = vpop.permute.xlu0 %1615  ;;  %v6574_v40 = vld [vmem:[#allocation31_spill] sm:$0xff]  ;;  %v2114_v56 = vmax.f32 %v2018_v27, 0.0  ;;  %v6582_v27 = vld [vmem:[#allocation37_spill] sm:$0xff] }
 0x2fd   :  { %v2104_v5 = vmax.f32 %v2008_v48, 0.0  ;;  %1940 = vperm.xlu1 %4182, %v1482_v12   ;;  %1273 = vperm.xlu0 %4181, %v811_v50   ;;  %v2109_v12 = vmax.f32 %v2013_v46, 0.0  ;;  %v1485_v50 = vld [vmem:[%s6422_s3 + $0x2e8] sm:$0xff]  ;;  %v2112_v63 = vmax.f32 %v2016_v4, 0.0  ;;  %v6577_v26 = vld [vmem:[#allocation75_spill] sm:$0xff] }
 0x2ff   :  { %v5606_v49 = vpop.permute.xlu1 %622  ;;  %v5608_v51 = vpack.c.bf16 %v2105_v17, %v2104_v5  ;;  %v5649_v5 = vpack.c.bf16 %v2109_v12, %v2108_v28  ;;  %v1349_v28 = vmul.f32 %v6573_v62, %v5574_v2 }
 0x300   :  { %v5611_v33 = vpop.permute.xlu0 %1625 }
 0x301   :  { %1278 = vperm.xlu1 %4182, %v812_v22   ;;  %1945 = vperm.xlu0 %4181, %v1483_v24   ;;  %v6569_v22 = vld [vmem:[#allocation32_spill] sm:$0xff]  ;;  %v2021_v4 = vadd.f32 %v6577_v26, %v1349_v28 }
 0x302   :  { %3944 = vmatpush1.bf16.msra.mxu1 %v5608_v51  ;;  %v1347_v24 = vmul.f32 %v6569_v22, %v5345_v58 }
 0x303   :  { %v5622_v30 = vpop.permute.xlu1 %640  ;;  %3929 = vmatprep.subr.bf16.mxu1 %v6510_v31 }
 0x304   :  { %v567_v61 = vpop.permute.xlu0 %566 }
 0x305   :  { %v1342_v9 = vmul.f32 %v6563_v15, %v567_v61  ;;  %1950 = vperm.xlu1 %4182, %v1484_v54   ;;  %1283 = vperm.xlu0 %4181, %v813_v11   ;;  %v2113_v54 = vmax.f32 %v2017_v44, 0.0  ;;  %v6572_v11 = vld [vmem:[#allocation73_spill] sm:$0xff]  ;;  %v1350_v15 = vmul.f32 %v6574_v40, %v5231_v0  ;;  %v2450_v0 = vld [vmem:[%s6424_s5 + $0x10] sm:$0xff]  ;;  %v6580_v44 = vld [vmem:[#allocation10_spill] sm:$0xff] }
 0x306   :  { %3945 = vmatpush1.bf16.msra.mxu1 %v5627_v14  ;;  %v2019_v52 = vadd.f32 %v6572_v11, %v1347_v24  ;;  %v2448_v61 = vld [vmem:[%s6424_s5] sm:$0xff]  ;;  %v1319_v22 = vmul.f32 %v6580_v44, %v5454_v59  ;;  %v2451_v11 = vld [vmem:[%s6424_s5 + $0x18] sm:$0xff]  ;;  %v6592_v44 = vld [vmem:[#allocation14_spill] sm:$0xff] }
 0x307   :  { %v2014_v48 = vadd.f32 %v6565_v43, %v1342_v9  ;;  %v5641_v19 = vpop.permute.xlu1 %658  ;;  %3930 = vmatprep.subr.bf16.mxu1 %v6510_v31  ;;  %v2452_v59 = vld [vmem:[%s6424_s5 + $0x20] sm:$0xff] }
 0x308   :  { %v5647_v17 = vpop.permute.xlu0 %1635 }
 0x309   :  { %v2110_v57 = vmax.f32 %v2014_v48, 0.0  ;;  %1288 = vperm.xlu1 %4182, %v814_v21   ;;  %1955 = vperm.xlu0 %4181, %v1485_v50   ;;  %v5684_v21 = vpack.c.bf16 %v2113_v54, %v2112_v63  ;;  %v6576_v50 = vld [vmem:[#allocation36_spill] sm:$0xff]  ;;  %v2115_v48 = vmax.f32 %v2019_v52, 0.0  ;;  %v6581_v63 = vld [vmem:[#allocation77_spill] sm:$0xff]  ;;  %v2117_v54 = vmax.f32 %v2021_v4, 0.0  ;;  %v6589_v4 = vld [vmem:[#allocation39_spill] sm:$0xff] }
 0x30a   :  { %3946 = vmatpush1.bf16.msra.mxu1 %v5649_v5  ;;  %v1351_v43 = vmul.f32 %v6576_v50, %v5220_v23 }
 0x30b   :  { %v5661_v42 = vpop.permute.xlu1 %676  ;;  %3931 = vmatprep.subr.bf16.mxu1 %v6510_v31  ;;  %v5664_v38 = vpack.c.bf16 %v2111_v45, %v2110_v57  ;;  %v2022_v45 = vadd.f32 %v6578_v39, %v1350_v15  ;;  %v6579_v57 = vld [vmem:[#allocation33_spill] sm:$0xff]  ;;  %v6590_v39 = vld [vmem:[#allocation38_spill] sm:$0xff] }
 0x30c   :  { %v585_v58 = vpop.permute.xlu0 %584  ;;  %v1352_v23 = vmul.f32 %v6579_v57, %v5374_v25  ;;  %v2023_v32 = vadd.f32 %v6581_v63, %v1351_v43  ;;  %v6583_v25 = vld [vmem:[#allocation6_spill] sm:$0xff]  ;;  %v6588_v43 = vld [vmem:[#allocation79_spill] sm:$0xff] }
 0x30d   :  { %v1348_v46 = vmul.f32 %v6571_v10, %v585_v58  ;;  %1960 = vperm.xlu1 %4182, %v1486_v41   ;;  %1293 = vperm.xlu0 %4181, %v815_v3   ;;  %v5706_v3 = vpack.c.bf16 %v2115_v48, %v2114_v56  ;;  %v1353_v58 = vmul.f32 %v6582_v27, %v5359_v13  ;;  %v2118_v52 = vmax.f32 %v2022_v45, 0.0  ;;  %v6584_v13 = vld [vmem:[#allocation78_spill] sm:$0xff] }
 0x30e   :  { %3947 = vmatpush1.bf16.msra.mxu1 %v5664_v38  ;;  %v1318_v10 = vmul.f32 %v6583_v25, %v5472_v18  ;;  %v2024_v62 = vadd.f32 %v6584_v13, %v1352_v23  ;;  %v6585_v18 = vld [vmem:[#allocation12_spill] sm:$0xff]  ;;  %v2119_v50 = vmax.f32 %v2023_v32, 0.0  ;;  %v1356_v45 = vmul.f32 %v6590_v39, %v5242_v7  ;;  %v6597_v7 = vld [vmem:[#allocation9_spill] sm:$0xff]  ;;  %v6604_v39 = vld [vmem:[#allocation102_spill] sm:$0xff] }
 0x30f   :  { %v5680_v9 = vpop.permute.xlu1 %694  ;;  %3932 = vmatprep.subr.bf16.mxu1 %v6510_v31  ;;  %v2020_v2 = vadd.f32 %v6575_v53, %v1348_v46  ;;  %v1991_v46 = vadd.f32 %v5565_v55, %v1319_v22  ;;  %v1321_v55 = vmul.f32 %v6585_v18, %v5177_v36  ;;  %v6587_v53 = vld [vmem:[#allocation7_spill] sm:$0xff]  ;;  %v2025_v48 = vadd.f32 %v6588_v43, %v1353_v58  ;;  %v6594_v25 = vld [vmem:[#allocation88_spill] sm:$0xff] }
 0x310   :  { %v603_v12 = vpop.permute.xlu0 %602  ;;  %v2120_v57 = vmax.f32 %v2024_v62, 0.0 }
 0x311   :  { %2498 = vperm.xlu1 %4182, %v2448_v61   ;;  %1965 = vperm.xlu0 %4181, %v1487_v16   ;;  %v2116_v24 = vmax.f32 %v2020_v2, 0.0  ;;  %v6586_v61 = vld [vmem:[#allocation35_spill] sm:$0xff]  ;;  %v1320_v2 = vmul.f32 %v6587_v53, %v5188_v6  ;;  %v2087_v26 = vmax.f32 %v1991_v46, 0.0  ;;  %v1993_v36 = vadd.f32 %v5595_v29, %v1321_v55  ;;  %v2453_v6 = vld [vmem:[%s6424_s5 + $0x28] sm:$0xff]  ;;  %v2456_v55 = vld [vmem:[%s6424_s5 + $0x40] sm:$0xff] }
 0x312   :  { %3948 = vmatpush1.bf16.msra.mxu1 %v5684_v21  ;;  %v1354_v16 = vmul.f32 %v6586_v61, %v603_v12  ;;  %v6591_v29 = vld [vmem:[#allocation99_spill] sm:$0xff]  ;;  %v2455_v61 = vld [vmem:[%s6424_s5 + $0x38] sm:$0xff] }
 0x313   :  { %v5699_v47 = vpop.permute.xlu1 %712  ;;  %3933 = vmatprep.subr.bf16.mxu1 %v6510_v31  ;;  %v5728_v56 = vpack.c.bf16 %v2117_v54, %v2116_v24  ;;  %v1323_v22 = vmul.f32 %v6592_v44, %v6591_v29  ;;  %v6593_v24 = vld [vmem:[#allocation80_spill] sm:$0xff]  ;;  %v2089_v62 = vmax.f32 %v1993_v36, 0.0  ;;  %v6606_v29 = vld [vmem:[#allocation11_spill] sm:$0xff] }
 0x314   :  { %v5704_v41 = vpop.permute.xlu0 %620  ;;  %v2026_v63 = vadd.f32 %v6593_v24, %v1354_v16  ;;  %v6596_v54 = vld [vmem:[#allocation100_spill] sm:$0xff]  ;;  %v6599_v16 = vld [vmem:[#allocation82_spill] sm:$0xff]  ;;  %v1324_v44 = vmul.f32 %v6606_v29, %v5488_v60  ;;  %v6613_v29 = vld [vmem:[#allocation43_spill] sm:$0xff] }
 0x315   :  { %2508 = vperm.xlu1 %4182, %v2450_v0   ;;  %2503 = vperm.xlu0 %4181, %v2449_v37   ;;  %v1355_v0 = vmul.f32 %v6589_v4, %v5590_v1  ;;  %v2454_v37 = vld [vmem:[%s6424_s5 + $0x30] sm:$0xff]  ;;  %v5746_v1 = vpack.c.bf16 %v2119_v50, %v2118_v52  ;;  %v6598_v52 = vld [vmem:[#allocation81_spill] sm:$0xff]  ;;  %v6600_v53 = vld [vmem:[#allocation104_spill] sm:$0xff] }
 0x316   :  { %3949 = vmatpush1.bf16.msra.mxu1 %v5706_v3  ;;  %v2122_v4 = vmax.f32 %v2026_v63, 0.0  ;;  %v2458_v63 = vld [vmem:[%s6424_s5 + $0x50] sm:$0xff] }
 0x317   :  { %v1601_v28 = vpop.permute.xlu1 %1600  ;;  %3934 = vmatprep.subr.bf16.mxu1 %v6510_v31  ;;  %v2027_v13 = vadd.f32 %v6598_v52, %v1355_v0 }
 0x318   :  { %v1990_v40 = vadd.f32 %v1601_v28, %v1318_v10  ;;  %v5726_v15 = vpop.permute.xlu0 %638  ;;  %v6595_v10 = vld [vmem:[#allocation41_spill] sm:$0xff]  ;;  %v1995_v28 = vadd.f32 %v5611_v33, %v1323_v22 }
 0x319   :  { %2518 = vperm.xlu1 %4182, %v2452_v59   ;;  %2513 = vperm.xlu0 %4181, %v2451_v11   ;;  %v1357_v46 = vmul.f32 %v6595_v10, %v6594_v25  ;;  %v1322_v59 = vmul.f32 %v6597_v7, %v6596_v54  ;;  %v2121_v11 = vmax.f32 %v2025_v48, 0.0  ;;  %v6602_v48 = vld [vmem:[#allocation15_spill] sm:$0xff]  ;;  %v6607_v25 = vld [vmem:[#allocation84_spill] sm:$0xff] }
 0x31a   :  { %v2086_v12 = vmax.f32 %v1990_v40, 0.0  ;;  %3950 = vmatpush1.bf16.msra.mxu1 %v5728_v56  ;;  %v2028_v40 = vadd.f32 %v6599_v16, %v1356_v45  ;;  %v6605_v45 = vld [vmem:[#allocation42_spill] sm:$0xff]  ;;  %v2091_v22 = vmax.f32 %v1995_v28, 0.0  ;;  %v2460_v28 = vld [vmem:[%s6424_s5 + $0x60] sm:$0xff] }
 0x31b   :  { %v1611_v23 = vpop.permute.xlu1 %1610  ;;  %3935 = vmatprep.subr.bf16.mxu1 %v6510_v31  ;;  %v5770_v33 = vpack.c.bf16 %v2121_v11, %v2120_v57  ;;  %v2123_v57 = vmax.f32 %v2027_v13, 0.0  ;;  %v6608_v11 = vld [vmem:[#allocation85_spill] sm:$0xff] }
 0x31c   :  { %v3814_v32 = vpack.c.bf16 %v2087_v26, %v2086_v12  ;;  %v1992_v27 = vadd.f32 %v1611_v23, %v1320_v2  ;;  %v5751_v58 = vpop.permute.xlu0 %656  ;;  %v6601_v2 = vld [vmem:[#allocation40_spill] sm:$0xff]  ;;  %v1325_v26 = vmul.f32 %v6602_v48, %v5467_v20  ;;  %v1359_v23 = vmul.f32 %v6605_v45, %v6604_v39 }
 0x31d   :  { %2528 = vperm.xlu1 %4182, %v2454_v37   ;;  %2523 = vperm.xlu0 %4181, %v2453_v6   ;;  %v1358_v50 = vmul.f32 %v6601_v2, %v6600_v53  ;;  %v6603_v37 = vld [vmem:[#allocation83_spill] sm:$0xff]  ;;  %v5795_v7 = vpack.c.bf16 %v2123_v57, %v2122_v4  ;;  %v2461_v4 = vld [vmem:[%s6424_s5 + $0x68] sm:$0xff] }
 0x31e   :  { %v2088_v18 = vmax.f32 %v1992_v27, 0.0  ;;  %3951 = vmatpush1.bf16.msra.mxu1 %v5746_v1  ;;  %3815 = vmatpush1.bf16.msra.mxu0 %v3814_v32  ;;  %v2029_v6 = vadd.f32 %v6603_v37, %v1357_v46  ;;  %v1997_v24 = vadd.f32 %v5647_v17, %v1325_v26  ;;  %v2457_v32 = vld [vmem:[%s6424_s5 + $0x48] sm:$0xff]  ;;  %v2124_v27 = vmax.f32 %v2028_v40, 0.0  ;;  %v6609_v2 = vld [vmem:[#allocation87_spill] sm:$0xff] }
 0x31f   :  { %v1621_v43 = vpop.permute.xlu1 %1620  ;;  %3936 = vmatprep.subr.bf16.mxu1 %v6510_v31  ;;  %3816 = vmatprep.subr.bf16.mxu0 %v6510_v31  ;;  %v2030_v17 = vadd.f32 %v6607_v25, %v1358_v50  ;;  %v2031_v52 = vadd.f32 %v6608_v11, %v1359_v23  ;;  %v6610_v50 = vld [vmem:[#allocation13_spill] sm:$0xff]  ;;  %v2462_v26 = vld [vmem:[%s6424_s5 + $0x70] sm:$0xff] }
 0x320   :  { %v3817_v0 = vpack.c.bf16 %v2089_v62, %v2088_v18  ;;  %v1994_v36 = vadd.f32 %v1621_v43, %v1322_v59  ;;  %v5775_v12 = vpop.permute.xlu0 %674  ;;  %v2125_v59 = vmax.f32 %v2029_v6, 0.0  ;;  %v2093_v13 = vmax.f32 %v1997_v24, 0.0  ;;  %v2459_v18 = vld [vmem:[%s6424_s5 + $0x58] sm:$0xff]  ;;  %v2464_v24 = vld [vmem:[%s6424_s5 + $0x80] sm:$0xff] }
 0x321   :  { %2538 = vperm.xlu1 %4182, %v2456_v55   ;;  %2533 = vperm.xlu0 %4181, %v2455_v61   ;;  %v2126_v61 = vmax.f32 %v2030_v17, 0.0  ;;  %v1326_v43 = vmul.f32 %v6610_v50, %v6609_v2  ;;  %v2127_v48 = vmax.f32 %v2031_v52, 0.0  ;;  %v2289_v17 = vld [vmem:[#allocation2 + $0x408] sm:$0xff] }
 0x322   :  { %v2090_v20 = vmax.f32 %v1994_v36, 0.0  ;;  %3952 = vmatpush1.bf16.msra.mxu1 %v5770_v33  ;;  %3818 = vmatpush1.bf16.msra.mxu0 %v3817_v0  ;;  %v5809_v53 = vpack.c.bf16 %v2125_v59, %v2124_v27  ;;  %v6611_v0 = vld [vmem:[#allocation86_spill] sm:$0xff]  ;;  %v6612_v36 = vld [vmem:[#allocation16_spill] sm:$0xff]  ;;  %v6616_v59 = vld [vmem:[#allocation45_spill] sm:$0xff] }
 0x323   :  { %v1631_v60 = vpop.permute.xlu1 %1630  ;;  %3937 = vmatprep.subr.bf16.mxu1 %v6510_v31  ;;  %3819 = vmatprep.subr.bf16.mxu0 %v6510_v31  ;;  %v1327_v37 = vmul.f32 %v6612_v36, %v6611_v0  ;;  %v5824_v23 = vpack.c.bf16 %v2127_v48, %v2126_v61  ;;  %v2160_v48 = vld [vmem:[#allocation2] sm:$0xff] }
 0x324   :  { %v3820_v10 = vpack.c.bf16 %v2091_v22, %v2090_v20  ;;  %v1996_v46 = vadd.f32 %v1631_v60, %v1324_v44  ;;  %v5793_v54 = vpop.permute.xlu0 %692  ;;  %v1360_v44 = vmul.f32 %v6613_v29, %v5704_v41  ;;  %v2282_v22 = vld [vmem:[#allocation2 + $0x3d0] sm:$0xff]  ;;  %v6614_v20 = vld [vmem:[#allocation44_spill] sm:$0xff] }
 0x325   :  { %2548 = vperm.xlu1 %4182, %v2458_v63   ;;  %2543 = vperm.xlu0 %4181, %v2457_v32   ;;  %v1361_v63 = vmul.f32 %v6614_v20, %v5606_v49  ;;  %v2463_v41 = vld [vmem:[%s6424_s5 + $0x78] sm:$0xff]  ;;  %v2288_v49 = vld [vmem:[#allocation2 + $0x400] sm:$0xff]  ;;  %v2294_v29 = vld [vmem:[#allocation2 + $0x430] sm:$0xff] }
 0x326   :  { %v2092_v62 = vmax.f32 %v1996_v46, 0.0  ;;  %3953 = vmatpush1.bf16.msra.mxu1 %v5795_v7  ;;  %3821 = vmatpush1.bf16.msra.mxu0 %v3820_v10  ;;  %v6615_v46 = vld [vmem:[#allocation91_spill] sm:$0xff] }
 0x327   :  { %v1641_v55 = vpop.permute.xlu1 %1640  ;;  %3938 = vmatprep.subr.bf16.mxu1 %v6510_v31  ;;  %3822 = vmatprep.subr.bf16.mxu0 %v6510_v31  ;;  %v1362_v11 = vmul.f32 %v6616_v59, %v6615_v46  ;;  %v2301_v59 = vld [vmem:[#allocation2 + $0x468] sm:$0xff] }
 0x328   :  { %v3823_v16 = vpack.c.bf16 %v2093_v13, %v2092_v62  ;;  %v5807_v40 = vpop.permute.xlu0 %710  ;;  %v1998_v6 = vadd.f32 %v1641_v55, %v1326_v43  ;;  %v2466_v62 = vld [vmem:[%s6424_s5 + $0x90] sm:$0xff]  ;;  %v2465_v43 = vld [vmem:[%s6424_s5 + $0x88] sm:$0xff] }
 0x329   :  { %2558 = vperm.xlu1 %4182, %v2460_v28   ;;  %2553 = vperm.xlu0 %4181, %v2459_v18   ;;  %v6617_v28 = vld [vmem:[#allocation89_spill] sm:$0xff]  ;;  %v6618_v18 = vld [vmem:[#allocation46_spill] sm:$0xff] }
 0x32a   :  { %3954 = vmatpush1.bf16.msra.mxu1 %v5809_v53  ;;  %3824 = vmatpush1.bf16.msra.mxu0 %v3823_v16  ;;  %v2094_v32 = vmax.f32 %v1998_v6, 0.0  ;;  %v1363_v55 = vmul.f32 %v6618_v18, %v6617_v28  ;;  %v6619_v6 = vld [vmem:[#allocation106_spill] sm:$0xff] }
 0x32b   :  { %v1811_v39 = vpop.permute.xlu1 %1810  ;;  %3939 = vmatprep.subr.bf16.mxu1 %v6510_v31  ;;  %3825 = vmatprep.subr.bf16.mxu0 %v6510_v31 }
 0x32c   :  { %v1646_v45 = vpop.permute.xlu0 %1645  ;;  %v2032_v27 = vadd.f32 %v1811_v39, %v1360_v44  ;;  %v6620_v39 = vld [vmem:[#allocation47_spill] sm:$0xff]  ;;  %v2468_v44 = vld [vmem:[%s6424_s5 + $0xa0] sm:$0xff] }
 0x32d   :  { %v1999_v57 = vadd.f32 %v1646_v45, %v1327_v37  ;;  %2568 = vperm.xlu1 %4182, %v2462_v26   ;;  %2563 = vperm.xlu0 %4181, %v2461_v4   ;;  %v2295_v4 = vld [vmem:[#allocation2 + $0x438] sm:$0xff]  ;;  %v1364_v45 = vmul.f32 %v6620_v39, %v6619_v6  ;;  %v2472_v6 = vld [vmem:[%s6424_s5 + $0xc0] sm:$0xff] }
 0x32e   :  { %3955 = vmatpush1.bf16.msra.mxu1 %v5824_v23  ;;  %v2128_v61 = vmax.f32 %v2032_v27, 0.0  ;;  %v2167_v37 = vld [vmem:[#allocation2 + $0x38] sm:$0xff]  ;;  %v6628_v39 = vld [vmem:[#allocation93_spill] sm:$0xff] }
 0x32f   :  { %v2095_v60 = vmax.f32 %v1999_v57, 0.0  ;;  %v1821_v25 = vpop.permute.xlu1 %1820  ;;  %3876 = vmatprep.subr.bf16.mxu1 %v6510_v31  ;;  %v6621_v57 = vld [vmem:[#allocation103_spill] sm:$0xff] }
 0x330   :  { %v1816_v10 = vpop.permute.xlu0 %1815  ;;  %v2034_v16 = vadd.f32 %v1821_v25, %v1362_v11  ;;  %v2166_v25 = vld [vmem:[#allocation2 + $0x30] sm:$0xff] }
 0x331   :  { %v3826_v52 = vpack.c.bf16 %v2095_v60, %v2094_v32  ;;  %3206 = vmatmul.mubr.f32.vlgmr.msra.gmra.mrb[0].mxu1 %v2282_v22  ;;  %v2033_v13 = vadd.f32 %v1816_v10, %v1361_v63  ;;  %2578 = vperm.xlu1 %4182, %v2464_v24   ;;  %v6622_v22 = vld [vmem:[#allocation48_spill] sm:$0xff]  ;;  %v6623_v32 = vld [vmem:[#allocation101_spill] sm:$0xff]  ;;  %v2470_v11 = vld [vmem:[%s6424_s5 + $0xb0] sm:$0xff] }
 0x332   :  { %2573 = vperm.xlu0 %4181, %v2463_v41   ;;  %3210 = vmatprep.mubr.f32.mxu1 %v2289_v17  ;;  %v1365_v24 = vmul.f32 %v6622_v22, %v6621_v57  ;;  %v2130_v20 = vmax.f32 %v2034_v16, 0.0  ;;  %v2467_v60 = vld [vmem:[%s6424_s5 + $0x98] sm:$0xff] }
 0x333   :  { %v2129_v2 = vmax.f32 %v2033_v13, 0.0  ;;  %3827 = vmatpush1.bf16.msra.mxu0 %v3826_v52  ;;  %v1831_v50 = vpop.permute.xlu1 %1830  ;;  %v6624_v52 = vld [vmem:[#allocation50_spill] sm:$0xff]  ;;  %v2471_v22 = vld [vmem:[%s6424_s5 + $0xb8] sm:$0xff] }
 0x334   :  { %v1826_v26 = vpop.permute.xlu0 %1825  ;;  %3828 = vmatprep.subr.bf16.mxu0 %v6510_v31  ;;  %v2036_v41 = vadd.f32 %v1831_v50, %v1364_v45  ;;  %v1367_v13 = vmul.f32 %v6624_v52, %v5622_v30  ;;  %v2173_v30 = vld [vmem:[#allocation2 + $0x68] sm:$0xff]  ;;  %v6629_v45 = vld [vmem:[#allocation51_spill] sm:$0xff]  ;;  %v6632_v52 = vld [vmem:[#allocation108_spill] sm:$0xff] }
 0x335   :  { %v3877_v0 = vpack.c.bf16 %v2129_v2, %v2128_v61  ;;  %3211 = vmatmul.mubr.f32.gmra.mrb[2].mxu1 %v2288_v49  ;;  %v2035_v36 = vadd.f32 %v1826_v26, %v1363_v55  ;;  %2588 = vperm.xlu1 %4182, %v2466_v62   ;;  %v6625_v49 = vld [vmem:[#allocation49_spill] sm:$0xff]  ;;  %v2469_v61 = vld [vmem:[%s6424_s5 + $0xa8] sm:$0xff]  ;;  %v2307_v26 = vld [vmem:[#allocation2 + $0x498] sm:$0xff] }
 0x336   :  { %2583 = vperm.xlu0 %4181, %v2465_v43   ;;  %2801 = vmatmul.mubr.f32.vlgmr.msra.gmra.mrb[6].mxu0 %v2160_v48  ;;  %v1366_v62 = vmul.f32 %v6625_v49, %v5726_v15  ;;  %v2300_v55 = vld [vmem:[#allocation2 + $0x460] sm:$0xff]  ;;  %v2132_v16 = vmax.f32 %v2036_v41, 0.0 }
 0x337   :  { %v2131_v63 = vmax.f32 %v2035_v36, 0.0  ;;  %3830 = vmatpush1.bf16.msra.mxu0 %v6623_v32  ;;  %3215 = vmatprep.mubr.f32.mxu1 %v2295_v4  ;;  %v1841_v27 = vpop.permute.xlu1 %1840  ;;  %v2172_v43 = vld [vmem:[#allocation2 + $0x60] sm:$0xff]  ;;  %v6626_v4 = vld [vmem:[#allocation90_spill] sm:$0xff] }
 0x338   :  { %3878 = vmatpush1.bf16.msra.mxu1 %v3877_v0  ;;  %v1836_v17 = vpop.permute.xlu0 %1835  ;;  %2805 = vmatprep.mubr.f32.mxu0 %v2167_v37  ;;  %v2038_v50 = vadd.f32 %v1841_v27, %v1366_v62  ;;  %v6627_v0 = vld [vmem:[#allocation52_spill] sm:$0xff]  ;;  %v2178_v27 = vld [vmem:[#allocation2 + $0x90] sm:$0xff]  ;;  %v2312_v62 = vld [vmem:[#allocation2 + $0x4c0] sm:$0xff] }
 0x339   :  { %v3880_v10 = vpack.c.bf16 %v2131_v63, %v2130_v20  ;;  %3216 = vmatmul.mubr.f32.gmra.mrb[4].mxu1 %v2294_v29  ;;  %v2037_v46 = vadd.f32 %v1836_v17, %v1365_v24  ;;  %2598 = vperm.xlu1 %4182, %v2468_v44   ;;  %v1369_v36 = vmul.f32 %v6627_v0, %v6626_v4  ;;  %v2306_v44 = vld [vmem:[#allocation2 + $0x490] sm:$0xff]  ;;  %v2179_v63 = vld [vmem:[#allocation2 + $0x98] sm:$0xff] }
 0x33a   :  { %2593 = vperm.xlu0 %4181, %v2467_v60   ;;  %2806 = vmatmul.mubr.f32.gmra.mrb[8].mxu0 %v2166_v25  ;;  %v1368_v29 = vmul.f32 %v6629_v45, %v6628_v39  ;;  %v2134_v24 = vmax.f32 %v2038_v50, 0.0  ;;  %v6630_v60 = vld [vmem:[#allocation105_spill] sm:$0xff]  ;;  %v6631_v25 = vld [vmem:[#allocation54_spill] sm:$0xff]  ;;  %v6634_v50 = vld [vmem:[#allocation56_spill] sm:$0xff] }
 0x33b   :  { %v2133_v28 = vmax.f32 %v2037_v46, 0.0  ;;  %3831 = vmatprep.subr.bf16.mxu0 %v6510_v31  ;;  %3879 = vmatprep.subr.bf16.mxu1 %v6510_v31  ;;  %v1851_v18 = vpop.permute.xlu1 %1850  ;;  %v1371_v41 = vmul.f32 %v6631_v25, %v6630_v60  ;;  %v6635_v0 = vld [vmem:[#allocation55_spill] sm:$0xff]  ;;  %v2191_v39 = vld [vmem:[#allocation2 + $0xf8] sm:$0xff]  ;;  %v2197_v60 = vld [vmem:[#allocation2 + $0x128] sm:$0xff] }
 0x33c   :  { %3833 = vmatpush1.bf16.msra.mxu0 %v5523_v34  ;;  %3220 = vmatprep.mubr.f32.mxu1 %v2301_v59  ;;  %v1846_v2 = vpop.permute.xlu0 %1845  ;;  %v2040_v32 = vadd.f32 %v1851_v18, %v1368_v29  ;;  %v2473_v18 = vld [vmem:[%s6424_s5 + $0xc8] sm:$0xff] }
 0x33d   :  { %3881 = vmatpush1.bf16.msra.mxu1 %v3880_v10  ;;  %v2039_v15 = vadd.f32 %v1846_v2, %v1367_v13  ;;  %2608 = vperm.xlu1 %4182, %v2470_v11   ;;  %v3883_v48 = vpack.c.bf16 %v2133_v28, %v2132_v16  ;;  %v2313_v10 = vld [vmem:[#allocation2 + $0x4c8] sm:$0xff]  ;;  %v2474_v11 = vld [vmem:[%s6424_s5 + $0xd0] sm:$0xff]  ;;  %v6633_v13 = vld [vmem:[#allocation53_spill] sm:$0xff] }
 0x33e   :  { %3221 = vmatmul.mubr.f32.gmra.mrb[6].mxu1 %v2300_v55  ;;  %2603 = vperm.xlu0 %4181, %v2469_v61   ;;  %v1370_v49 = vmul.f32 %v6633_v13, %v6632_v52  ;;  %v2136_v55 = vmax.f32 %v2040_v32, 0.0  ;;  %v2185_v61 = vld [vmem:[#allocation2 + $0xc8] sm:$0xff]  ;;  %v2184_v2 = vld [vmem:[#allocation2 + $0xc0] sm:$0xff] }
 0x33f   :  { %v2135_v37 = vmax.f32 %v2039_v15, 0.0  ;;  %2810 = vmatprep.mubr.f32.mxu0 %v2173_v30  ;;  %3834 = vmatprep.subr.bf16.mxu0 %v6510_v31  ;;  %v1861_v34 = vpop.permute.xlu1 %1860  ;;  %v1373_v15 = vmul.f32 %v6634_v50, %v5641_v19  ;;  %v2318_v19 = vld [vmem:[#allocation2 + $0x4f0] sm:$0xff] }
 0x340   :  { %2811 = vmatmul.mubr.f32.gmra.mrb[10].mxu0 %v2172_v43  ;;  %3882 = vmatprep.subr.bf16.mxu1 %v6510_v31  ;;  %v1856_v57 = vpop.permute.xlu0 %1855  ;;  %v2042_v16 = vadd.f32 %v1861_v34, %v1370_v49  ;;  %v2475_v34 = vld [vmem:[%s6424_s5 + $0xd8] sm:$0xff]  ;;  %v2330_v49 = vld [vmem:[#allocation2 + $0x550] sm:$0xff] }
 0x341   :  { %3836 = vmatpush1.bf16.msra.mxu0 %v5534_v35  ;;  %3225 = vmatprep.mubr.f32.mxu1 %v2307_v26  ;;  %v2041_v20 = vadd.f32 %v1856_v57, %v1369_v36  ;;  %v3886_v17 = vpack.c.bf16 %v2135_v37, %v2134_v24  ;;  %v1372_v36 = vmul.f32 %v6635_v0, %v5751_v58  ;;  %v2208_v0 = vld [vmem:[#allocation2 + $0x180] sm:$0xff] }
 0x342   :  { %3884 = vmatpush1.bf16.msra.mxu1 %v3883_v48  ;;  %2618 = vperm.xlu1 %4182, %v2472_v6   ;;  %v2319_v48 = vld [vmem:[#allocation2 + $0x4f8] sm:$0xff]  ;;  %v2138_v6 = vmax.f32 %v2042_v16, 0.0  ;;  %v2337_v16 = vld [vmem:[#allocation2 + $0x588] sm:$0xff] }
 0x343   :  { %3226 = vmatmul.mubr.f32.gmra.mrb[8].mxu1 %v2306_v44  ;;  %2613 = vperm.xlu0 %4181, %v2471_v22   ;;  %v1871_v46 = vpop.permute.xlu1 %1870  ;;  %v2137_v59 = vmax.f32 %v2041_v20, 0.0  ;;  %v2190_v44 = vld [vmem:[#allocation2 + $0xf0] sm:$0xff]  ;;  %v2325_v22 = vld [vmem:[#allocation2 + $0x528] sm:$0xff]  ;;  %v2324_v20 = vld [vmem:[#allocation2 + $0x520] sm:$0xff] }
 0x344   :  { %2815 = vmatprep.mubr.f32.mxu0 %v2179_v63  ;;  %3837 = vmatprep.subr.bf16.mxu0 %v6510_v31  ;;  %v1866_v35 = vpop.permute.xlu0 %1865  ;;  %v2044_v29 = vadd.f32 %v1871_v46, %v1372_v36  ;;  %v2477_v63 = vld [vmem:[%s6424_s5 + $0xe8] sm:$0xff] }
 0x345   :  { %2816 = vmatmul.mubr.f32.gmra.mrb[12].mxu0 %v2178_v27  ;;  %3885 = vmatprep.subr.bf16.mxu1 %v6510_v31  ;;  %v2043_v28 = vadd.f32 %v1866_v35, %v1371_v41  ;;  %v3889_v43 = vpack.c.bf16 %v2137_v59, %v2136_v55  ;;  %v6636_v41 = vld [vmem:[#allocation92_spill] sm:$0xff]  ;;  %v6637_v35 = vld [vmem:[#allocation95_spill] sm:$0xff] }
 0x346   :  { %3839 = vmatpush1.bf16.msra.mxu0 %v5547_v8  ;;  %3230 = vmatprep.mubr.f32.mxu1 %v2313_v10  ;;  %v2476_v8 = vld [vmem:[%s6424_s5 + $0xe0] sm:$0xff]  ;;  %v2140_v27 = vmax.f32 %v2044_v29, 0.0  ;;  %v2331_v59 = vld [vmem:[#allocation2 + $0x558] sm:$0xff]  ;;  %v2342_v29 = vld [vmem:[#allocation2 + $0x5b0] sm:$0xff] }
 0x347   :  { %3887 = vmatpush1.bf16.msra.mxu1 %v3886_v17  ;;  %2628 = vperm.xlu1 %4182, %v2474_v11   ;;  %v1209_v30 = vpop.permute.xlu1 %1208  ;;  %v2139_v4 = vmax.f32 %v2043_v28, 0.0  ;;  %v2196_v10 = vld [vmem:[#allocation2 + $0x120] sm:$0xff]  ;;  %v2203_v55 = vld [vmem:[#allocation2 + $0x158] sm:$0xff] }
 0x348   :  { %3231 = vmatmul.mubr.f32.gmra.mrb[10].mxu1 %v2312_v62  ;;  %2623 = vperm.xlu0 %4181, %v2473_v18   ;;  %v1876_v26 = vpop.permute.xlu0 %1875  ;;  %v1374_v11 = vmul.f32 %v1209_v30, %v6637_v35  ;;  %v2479_v62 = vld [vmem:[%s6424_s5 + $0xf8] sm:$0xff]  ;;  %v2482_v30 = vld [vmem:[%s6424_s5 + $0x110] sm:$0xff] }
 0x349   :  { %2820 = vmatprep.mubr.f32.mxu0 %v2185_v61  ;;  %3840 = vmatprep.subr.bf16.mxu0 %v6510_v31  ;;  %v2045_v37 = vadd.f32 %v1876_v26, %v1373_v15  ;;  %v3892_v57 = vpack.c.bf16 %v2139_v4, %v2138_v6  ;;  %v2202_v61 = vld [vmem:[#allocation2 + $0x150] sm:$0xff]  ;;  %v2336_v15 = vld [vmem:[#allocation2 + $0x580] sm:$0xff]  ;;  %v2209_v26 = vld [vmem:[#allocation2 + $0x188] sm:$0xff] }
 0x34a   :  { %2821 = vmatmul.mubr.f32.gmra.mrb[14].mxu0 %v2184_v2  ;;  %3888 = vmatprep.subr.bf16.mxu1 %v6510_v31  ;;  %v6638_v4 = vld [vmem:[#allocation107_spill] sm:$0xff] }
 0x34b   :  { %3842 = vmatpush1.bf16.msra.mxu0 %v5608_v51  ;;  %3235 = vmatprep.mubr.f32.mxu1 %v2319_v48  ;;  %v1881_v45 = vpop.permute.xlu1 %1880  ;;  %v2141_v24 = vmax.f32 %v2045_v37, 0.0  ;;  %v2478_v51 = vld [vmem:[%s6424_s5 + $0xf0] sm:$0xff] }
 0x34c   :  { %3890 = vmatpush1.bf16.msra.mxu1 %v3889_v43  ;;  %2638 = vperm.xlu1 %4182, %v2476_v8   ;;  %v1214_v58 = vpop.permute.xlu0 %1213  ;;  %v2046_v18 = vadd.f32 %v1881_v45, %v1374_v11  ;;  %v2484_v45 = vld [vmem:[%s6424_s5 + $0x120] sm:$0xff] }
 0x34d   :  { %3236 = vmatmul.mubr.f32.gmra.mrb[12].mxu1 %v2318_v19  ;;  %2633 = vperm.xlu0 %4181, %v2475_v34   ;;  %v1375_v17 = vmul.f32 %v1214_v58, %v6636_v41  ;;  %v3895_v46 = vpack.c.bf16 %v2141_v24, %v2140_v27  ;;  %v2343_v19 = vld [vmem:[#allocation2 + $0x5b8] sm:$0xff]  ;;  %v6639_v34 = vld [vmem:[#allocation110_spill] sm:$0xff] }
 0x34e   :  { %2825 = vmatprep.mubr.f32.mxu0 %v2191_v39  ;;  %3843 = vmatprep.subr.bf16.mxu0 %v6510_v31  ;;  %v2142_v48 = vmax.f32 %v2046_v18, 0.0  ;;  %v2349_v24 = vld [vmem:[#allocation2 + $0x5e8] sm:$0xff] }
 0x34f   :  { %2826 = vmatmul.mubr.f32.gmra.mrb[16].mxu0 %v2190_v44  ;;  %3891 = vmatprep.subr.bf16.mxu1 %v6510_v31  ;;  %v1219_v32 = vpop.permute.xlu1 %1218  ;;  %v2483_v44 = vld [vmem:[%s6424_s5 + $0x118] sm:$0xff]  ;;  %v2485_v27 = vld [vmem:[%s6424_s5 + $0x128] sm:$0xff] }
 0x350   :  { %3845 = vmatpush1.bf16.msra.mxu0 %v5627_v14  ;;  %3240 = vmatprep.mubr.f32.mxu1 %v2325_v22  ;;  %v1886_v25 = vpop.permute.xlu0 %1885  ;;  %v2480_v14 = vld [vmem:[%s6424_s5 + $0x100] sm:$0xff]  ;;  %v1376_v6 = vmul.f32 %v1219_v32, %v6639_v34  ;;  %v2214_v22 = vld [vmem:[#allocation2 + $0x1b0] sm:$0xff] }
 0x351   :  { %3893 = vmatpush1.bf16.msra.mxu1 %v3892_v57  ;;  %2648 = vperm.xlu1 %4182, %v2478_v51   ;;  %v2047_v52 = vadd.f32 %v1886_v25, %v1375_v17  ;;  %v2215_v57 = vld [vmem:[#allocation2 + $0x1b8] sm:$0xff]  ;;  %v2221_v25 = vld [vmem:[#allocation2 + $0x1e8] sm:$0xff]  ;;  %v2220_v17 = vld [vmem:[#allocation2 + $0x1e0] sm:$0xff] }
 0x352   :  { %3241 = vmatmul.mubr.f32.gmra.mrb[14].mxu1 %v2324_v20  ;;  %2643 = vperm.xlu0 %4181, %v2477_v63   ;;  %v2486_v63 = vld [vmem:[%s6424_s5 + $0x130] sm:$0xff] }
 0x353   :  { %2830 = vmatprep.mubr.f32.mxu0 %v2197_v60  ;;  %3846 = vmatprep.subr.bf16.mxu0 %v6510_v31  ;;  %v1891_v13 = vpop.permute.xlu1 %1890  ;;  %v2143_v2 = vmax.f32 %v2047_v52, 0.0 }
 0x354   :  { %2831 = vmatmul.mubr.f32.gmra.mrb[18].mxu0 %v2196_v10  ;;  %3894 = vmatprep.subr.bf16.mxu1 %v6510_v31  ;;  %v1224_v28 = vpop.permute.xlu0 %1223  ;;  %v2048_v58 = vadd.f32 %v1891_v13, %v1376_v6  ;;  %v2239_v6 = vld [vmem:[#allocation2 + $0x278] sm:$0xff] }
 0x355   :  { %3848 = vmatpush1.bf16.msra.mxu0 %v5649_v5  ;;  %3245 = vmatprep.mubr.f32.mxu1 %v2331_v59  ;;  %v2481_v5 = vld [vmem:[%s6424_s5 + $0x108] sm:$0xff]  ;;  %v1377_v8 = vmul.f32 %v1224_v28, %v6638_v4  ;;  %v3898_v36 = vpack.c.bf16 %v2143_v2, %v2142_v48  ;;  %v2355_v59 = vld [vmem:[#allocation2 + $0x618] sm:$0xff] }
 0x356   :  { %3896 = vmatpush1.bf16.msra.mxu1 %v3895_v46  ;;  %2658 = vperm.xlu1 %4182, %v2480_v14   ;;  %v2144_v60 = vmax.f32 %v2048_v58, 0.0  ;;  %v2487_v14 = vld [vmem:[%s6424_s5 + $0x138] sm:$0xff]  ;;  %v2494_v58 = vld [vmem:[%s6424_s5 + $0x170] sm:$0xff] }
 0x357   :  { %3246 = vmatmul.mubr.f32.gmra.mrb[16].mxu1 %v2330_v49  ;;  %2653 = vperm.xlu0 %4181, %v2479_v62   ;;  %v1229_v50 = vpop.permute.xlu1 %1228  ;;  %v2226_v49 = vld [vmem:[#allocation2 + $0x210] sm:$0xff]  ;;  %v2361_v62 = vld [vmem:[#allocation2 + $0x648] sm:$0xff]  ;;  %v2367_v4 = vld [vmem:[#allocation2 + $0x678] sm:$0xff] }
 0x358   :  { %2835 = vmatprep.mubr.f32.mxu0 %v2203_v55  ;;  %3849 = vmatprep.subr.bf16.mxu0 %v6510_v31  ;;  %v1896_v43 = vpop.permute.xlu0 %1895  ;;  %v1378_v11 = vmul.f32 %v1229_v50, %v5775_v12  ;;  %v2227_v12 = vld [vmem:[#allocation2 + $0x218] sm:$0xff]  ;;  %v6640_v50 = vld [vmem:[#allocation94_spill] sm:$0xff] }
 0x359   :  { %2836 = vmatmul.mubr.f32.gmra.mrb[20].mxu0 %v2202_v61  ;;  %3250 = vmatprep.mubr.f32.mxu1 %v2337_v16  ;;  %v2049_v39 = vadd.f32 %v1896_v43, %v1377_v8  ;;  %v2490_v61 = vld [vmem:[%s6424_s5 + $0x150] sm:$0xff]  ;;  %v2360_v16 = vld [vmem:[#allocation2 + $0x640] sm:$0xff] }
 0x35a   :  { %3851 = vmatpush1.bf16.msra.mxu0 %v5664_v38  ;;  %2668 = vperm.xlu1 %4182, %v2482_v30   ;;  %v2233_v30 = vld [vmem:[#allocation2 + $0x248] sm:$0xff]  ;;  %v6641_v8 = vld [vmem:[#allocation97_spill] sm:$0xff] }
 0x35b   :  { %3251 = vmatmul.mubr.f32.gmra.mrb[18].mxu1 %v2336_v15  ;;  %2663 = vperm.xlu0 %4181, %v2481_v5   ;;  %v1901_v37 = vpop.permute.xlu1 %1900  ;;  %v2145_v20 = vmax.f32 %v2049_v39, 0.0  ;;  %v2232_v5 = vld [vmem:[#allocation2 + $0x240] sm:$0xff] }
 0x35c   :  { %2840 = vmatprep.mubr.f32.mxu0 %v2209_v26  ;;  %3852 = vmatprep.subr.bf16.mxu0 %v6510_v31  ;;  %v1234_v38 = vpop.permute.xlu0 %1233  ;;  %v2050_v13 = vadd.f32 %v1901_v37, %v1378_v11  ;;  %v2491_v37 = vld [vmem:[%s6424_s5 + $0x158] sm:$0xff] }
 0x35d   :  { %2841 = vmatmul.mubr.f32.gmra.mrb[22].mxu0 %v2208_v0  ;;  %3897 = vmatprep.subr.bf16.mxu1 %v6510_v31  ;;  %v1379_v41 = vmul.f32 %v1234_v38, %v5661_v42  ;;  %v3901_v46 = vpack.c.bf16 %v2145_v20, %v2144_v60  ;;  %v2354_v42 = vld [vmem:[#allocation2 + $0x610] sm:$0xff]  ;;  %v2245_v20 = vld [vmem:[#allocation2 + $0x2a8] sm:$0xff]  ;;  %v2244_v60 = vld [vmem:[#allocation2 + $0x2a0] sm:$0xff] }
 0x35e   :  { %3854 = vmatpush1.bf16.msra.mxu0 %v5684_v21  ;;  %3255 = vmatprep.mubr.f32.mxu1 %v2343_v19  ;;  %v2348_v21 = vld [vmem:[#allocation2 + $0x5e0] sm:$0xff]  ;;  %v2146_v2 = vmax.f32 %v2050_v13, 0.0  ;;  %v2366_v19 = vld [vmem:[#allocation2 + $0x670] sm:$0xff] }
 0x35f   :  { %3899 = vmatpush1.bf16.msra.mxu1 %v3898_v36  ;;  %2678 = vperm.xlu1 %4182, %v2484_v45   ;;  %v5951_v51 = vpop.permute.xlu1 %1238  ;;  %v2238_v38 = vld [vmem:[#allocation2 + $0x270] sm:$0xff] }
 0x360   :  { %3256 = vmatmul.mubr.f32.gmra.mrb[20].mxu1 %v2342_v29  ;;  %2673 = vperm.xlu0 %4181, %v2483_v44   ;;  %v1906_v32 = vpop.permute.xlu0 %1905  ;;  %v1380_v0 = vmul.f32 %v5951_v51, %v6641_v8  ;;  %v2373_v29 = vld [vmem:[#allocation2 + $0x6a8] sm:$0xff]  ;;  %v2262_v8 = vld [vmem:[#allocation2 + $0x330] sm:$0xff] }
 0x361   :  { %2845 = vmatprep.mubr.f32.mxu0 %v2215_v57  ;;  %3855 = vmatprep.subr.bf16.mxu0 %v6510_v31  ;;  %v2051_v52 = vadd.f32 %v1906_v32, %v1379_v41  ;;  %v2372_v57 = vld [vmem:[#allocation2 + $0x6a0] sm:$0xff] }
 0x362   :  { %2846 = vmatmul.mubr.f32.gmra.mrb[24].mxu0 %v2214_v22  ;;  %3260 = vmatprep.mubr.f32.mxu1 %v2349_v24  ;;  %v2493_v24 = vld [vmem:[%s6424_s5 + $0x168] sm:$0xff] }
 0x363   :  { %3857 = vmatpush1.bf16.msra.mxu0 %v5706_v3  ;;  %2688 = vperm.xlu1 %4182, %v2486_v63   ;;  %v1911_v10 = vpop.permute.xlu1 %1910  ;;  %v2488_v3 = vld [vmem:[%s6424_s5 + $0x140] sm:$0xff]  ;;  %v2147_v55 = vmax.f32 %v2051_v52, 0.0 }
 0x364   :  { %3261 = vmatmul.mubr.f32.gmra.mrb[22].mxu1 %v2348_v21  ;;  %2683 = vperm.xlu0 %4181, %v2485_v27   ;;  %v1244_v35 = vpop.permute.xlu0 %1243  ;;  %v2052_v34 = vadd.f32 %v1911_v10, %v1380_v0  ;;  %v6643_v21 = vld [vmem:[#allocation112_spill] sm:$0xff]  ;;  %v2397_v0 = vld [vmem:[#allocation2 + $0x768] sm:$0xff] }
 0x365   :  { %2850 = vmatprep.mubr.f32.mxu0 %v2221_v25  ;;  %3858 = vmatprep.subr.bf16.mxu0 %v6510_v31  ;;  %v1381_v15 = vmul.f32 %v1244_v35, %v6640_v50  ;;  %v3904_v26 = vpack.c.bf16 %v2147_v55, %v2146_v2  ;;  %v2378_v35 = vld [vmem:[#allocation2 + $0x6d0] sm:$0xff] }
 0x366   :  { %2851 = vmatmul.mubr.f32.gmra.mrb[26].mxu0 %v2220_v17  ;;  %3900 = vmatprep.subr.bf16.mxu1 %v6510_v31  ;;  %v2148_v51 = vmax.f32 %v2052_v34, 0.0  ;;  %v2379_v17 = vld [vmem:[#allocation2 + $0x6d8] sm:$0xff]  ;;  %v2396_v34 = vld [vmem:[#allocation2 + $0x760] sm:$0xff] }
 0x367   :  { %3860 = vmatpush1.bf16.msra.mxu0 %v5728_v56  ;;  %3265 = vmatprep.mubr.f32.mxu1 %v2355_v59  ;;  %v2489_v56 = vld [vmem:[%s6424_s5 + $0x148] sm:$0xff] }
 0x368   :  { %3902 = vmatpush1.bf16.msra.mxu1 %v3901_v46  ;;  %2698 = vperm.xlu1 %4182, %v2488_v3   ;;  %v1249_v28 = vpop.permute.xlu1 %1248  ;;  %v1916_v18 = vpop.permute.xlu0 %1915  ;;  %v2251_v46 = vld [vmem:[#allocation2 + $0x2d8] sm:$0xff] }
 0x369   :  { %3266 = vmatmul.mubr.f32.gmra.mrb[24].mxu1 %v2354_v42  ;;  %2693 = vperm.xlu0 %4181, %v2487_v14   ;;  %v2053_v36 = vadd.f32 %v1916_v18, %v1381_v15  ;;  %v1382_v27 = vmul.f32 %v1249_v28, %v6643_v21  ;;  %v2250_v14 = vld [vmem:[#allocation2 + $0x2d0] sm:$0xff]  ;;  %v2384_v28 = vld [vmem:[#allocation2 + $0x700] sm:$0xff]  ;;  %v2409_v21 = vld [vmem:[#allocation2 + $0x7c8] sm:$0xff] }
 0x36a   :  { %2855 = vmatprep.mubr.f32.mxu0 %v2227_v12  ;;  %3861 = vmatprep.subr.bf16.mxu0 %v6510_v31 }
 0x36b   :  { %2856 = vmatmul.mubr.f32.gmra.mrb[28].mxu0 %v2226_v49  ;;  %3270 = vmatprep.mubr.f32.mxu1 %v2361_v62  ;;  %v2149_v44 = vmax.f32 %v2053_v36, 0.0  ;;  %v2257_v62 = vld [vmem:[#allocation2 + $0x308] sm:$0xff] }
 0x36c   :  { %3863 = vmatpush1.bf16.msra.mxu0 %v5746_v1  ;;  %2708 = vperm.xlu1 %4182, %v2490_v61   ;;  %v1921_v43 = vpop.permute.xlu1 %1920  ;;  %v1254_v48 = vpop.permute.xlu0 %1253  ;;  %v2492_v1 = vld [vmem:[%s6424_s5 + $0x160] sm:$0xff]  ;;  %v2391_v61 = vld [vmem:[#allocation2 + $0x738] sm:$0xff] }
 0x36d   :  { %3271 = vmatmul.mubr.f32.gmra.mrb[26].mxu1 %v2360_v16  ;;  %2703 = vperm.xlu0 %4181, %v2489_v56   ;;  %v3907_v41 = vpack.c.bf16 %v2149_v44, %v2148_v51  ;;  %v2054_v10 = vadd.f32 %v1921_v43, %v1382_v27  ;;  %v6644_v16 = vld [vmem:[#allocation98_spill] sm:$0xff]  ;;  %v2402_v51 = vld [vmem:[#allocation2 + $0x790] sm:$0xff] }
 0x36e   :  { %2860 = vmatprep.mubr.f32.mxu0 %v2233_v30  ;;  %3864 = vmatprep.subr.bf16.mxu0 %v6510_v31  ;;  %v2263_v30 = vld [vmem:[#allocation2 + $0x338] sm:$0xff] }
 0x36f   :  { %2861 = vmatmul.mubr.f32.gmra.mrb[30].mxu0 %v2232_v5  ;;  %3903 = vmatprep.subr.bf16.mxu1 %v6510_v31  ;;  %v2150_v12 = vmax.f32 %v2054_v10, 0.0  ;;  %v6645_v5 = vld [vmem:[#allocation96_spill] sm:$0xff] }
 0x370   :  { %3866 = vmatpush1.bf16.msra.mxu0 %v5770_v33  ;;  %3275 = vmatprep.mubr.f32.mxu1 %v2367_v4  ;;  %v1259_v39 = vpop.permute.xlu1 %1258  ;;  %v1926_v45 = vpop.permute.xlu0 %1925  ;;  %v6642_v33 = vld [vmem:[#allocation109_spill] sm:$0xff] }
 0x371   :  { %3905 = vmatpush1.bf16.msra.mxu1 %v3904_v26  ;;  %2718 = vperm.xlu1 %4182, %v2492_v1   ;;  %v1383_v22 = vmul.f32 %v1254_v48, %v6642_v33  ;;  %v1384_v3 = vmul.f32 %v1259_v39, %v5793_v54  ;;  %v2256_v54 = vld [vmem:[#allocation2 + $0x300] sm:$0xff]  ;;  %v2390_v48 = vld [vmem:[#allocation2 + $0x730] sm:$0xff]  ;;  %v2269_v1 = vld [vmem:[#allocation2 + $0x368] sm:$0xff] }
 0x372   :  { %3276 = vmatmul.mubr.f32.gmra.mrb[28].mxu1 %v2366_v19  ;;  %2713 = vperm.xlu0 %4181, %v2491_v37  }
 0x373   :  { %2865 = vmatprep.mubr.f32.mxu0 %v2239_v6  ;;  %3867 = vmatprep.subr.bf16.mxu0 %v6510_v31  ;;  %v2055_v25 = vadd.f32 %v1926_v45, %v1383_v22  ;;  %v2268_v45 = vld [vmem:[#allocation2 + $0x360] sm:$0xff]  ;;  %v6647_v22 = vld [vmem:[#allocation111_spill] sm:$0xff] }
 0x374   :  { %2866 = vmatmul.mubr.f32.gmra.mrb[32].mxu0 %v2238_v38  ;;  %3280 = vmatprep.mubr.f32.mxu1 %v2373_v29  ;;  %v1931_v63 = vpop.permute.xlu1 %1930  ;;  %v1264_v32 = vpop.permute.xlu0 %1263  ;;  %v2403_v38 = vld [vmem:[#allocation2 + $0x798] sm:$0xff]  ;;  %v6646_v29 = vld [vmem:[#allocation113_spill] sm:$0xff] }
 0x375   :  { %3869 = vmatpush1.bf16.msra.mxu0 %v5795_v7  ;;  %2728 = vperm.xlu1 %4182, %v2494_v58   ;;  %v1385_v59 = vmul.f32 %v1264_v32, %v5680_v9  ;;  %v2495_v7 = vld [vmem:[%s6424_s5 + $0x178] sm:$0xff]  ;;  %v2151_v42 = vmax.f32 %v2055_v25, 0.0  ;;  %v2385_v9 = vld [vmem:[#allocation2 + $0x708] sm:$0xff]  ;;  %v2056_v49 = vadd.f32 %v1931_v63, %v1384_v3  ;;  %v2274_v32 = vld [vmem:[#allocation2 + $0x390] sm:$0xff] }
 0x376   :  { %3281 = vmatmul.mubr.f32.gmra.mrb[30].mxu1 %v2372_v57  ;;  %2723 = vperm.xlu0 %4181, %v2493_v24   ;;  %v2275_v57 = vld [vmem:[#allocation2 + $0x398] sm:$0xff] }
 0x377   :  { %2870 = vmatprep.mubr.f32.mxu0 %v2245_v20  ;;  %3870 = vmatprep.subr.bf16.mxu0 %v6510_v31  ;;  %v3910_v55 = vpack.c.bf16 %v2151_v42, %v2150_v12  ;;  %v2152_v50 = vmax.f32 %v2056_v49, 0.0  ;;  %v2421_v12 = vld [vmem:[#allocation2 + $0x828] sm:$0xff] }
 0x378   :  { %2871 = vmatmul.mubr.f32.gmra.mrb[34].mxu0 %v2244_v60  ;;  %3906 = vmatprep.subr.bf16.mxu1 %v6510_v31  ;;  %v1269_v11 = vpop.permute.xlu1 %1268  ;;  %v1936_v52 = vpop.permute.xlu0 %1935  ;;  %v2281_v60 = vld [vmem:[#allocation2 + $0x3c8] sm:$0xff] }
 0x379   :  { %3872 = vmatpush1.bf16.msra.mxu0 %v5809_v53  ;;  %3285 = vmatprep.mubr.f32.mxu1 %v2379_v17  ;;  %v2057_v13 = vadd.f32 %v1936_v52, %v1385_v59  ;;  %v1386_v56 = vmul.f32 %v1269_v11, %v6644_v16  ;;  %v2408_v17 = vld [vmem:[#allocation2 + $0x7c0] sm:$0xff]  ;;  %v2287_v52 = vld [vmem:[#allocation2 + $0x3f8] sm:$0xff]  ;;  %v2298_v16 = vld [vmem:[#allocation2 + $0x450] sm:$0xff] }
 0x37a   :  { %3908 = vmatpush1.bf16.msra.mxu1 %v3907_v41  ;;  %2875 = vmatprep.mubr.f32.mxu0 %v2251_v46  ;;  %v2280_v59 = vld [vmem:[#allocation2 + $0x3c0] sm:$0xff] }
 0x37b   :  { %3286 = vmatmul.mubr.f32.gmra.mrb[32].mxu1 %v2378_v35  ;;  %2733 = vperm.xlu0 %4181, %v2495_v7   ;;  %v2153_v2 = vmax.f32 %v2057_v13, 0.0  ;;  %v2415_v35 = vld [vmem:[#allocation2 + $0x7f8] sm:$0xff] }
 0x37c   :  { %2876 = vmatmul.mubr.f32.gmra.mrb[36].mxu0 %v2250_v14  ;;  %3873 = vmatprep.subr.bf16.mxu0 %v6510_v31  ;;  %v1941_v18 = vpop.permute.xlu1 %1940  ;;  %v1274_v53 = vpop.permute.xlu0 %1273  ;;  %v2414_v14 = vld [vmem:[#allocation2 + $0x7f0] sm:$0xff] }
 0x37d   :  { %3875 = vmatpush1.bf16.msra.mxu0 %v5824_v23  ;;  %3290 = vmatprep.mubr.f32.mxu1 %v2385_v9  ;;  %v2058_v15 = vadd.f32 %v1941_v18, %v1386_v56  ;;  %v1387_v43 = vmul.f32 %v1274_v53, %v6645_v5  ;;  %v3913_v4 = vpack.c.bf16 %v2153_v2, %v2152_v50  ;;  %v2286_v9 = vld [vmem:[#allocation2 + $0x3f0] sm:$0xff]  ;;  %v2420_v18 = vld [vmem:[#allocation2 + $0x820] sm:$0xff]  ;;  %v2427_v53 = vld [vmem:[#allocation2 + $0x858] sm:$0xff] }
 0x37e   :  { %2880 = vmatprep.mubr.f32.mxu0 %v2257_v62  ;;  %3909 = vmatprep.subr.bf16.mxu1 %v6510_v31  ;;  %v2293_v62 = vld [vmem:[#allocation2 + $0x428] sm:$0xff]  ;;  %v2432_v2 = vld [vmem:[#allocation2 + $0x880] sm:$0xff]  ;;  %v2439_v50 = vld [vmem:[#allocation2 + $0x8b8] sm:$0xff] }
 0x37f   :  { %3291 = vmatmul.mubr.f32.gmra.mrb[34].mxu1 %v2384_v28  ;;  %v2154_v19 = vmax.f32 %v2058_v15, 0.0  ;;  %v2433_v56 = vld [vmem:[#allocation2 + $0x888] sm:$0xff]  ;;  %v2311_v15 = vld [vmem:[#allocation2 + $0x4b8] sm:$0xff]  ;;  %v2438_v5 = vld [vmem:[#allocation2 + $0x8b0] sm:$0xff] }
 0x380   :  { %2881 = vmatmul.mubr.f32.gmra.mrb[38].mxu0 %v2256_v54  ;;  %3295 = vmatprep.mubr.f32.mxu1 %v2391_v61  ;;  %v1279_v26 = vpop.permute.xlu1 %1278  ;;  %v1946_v23 = vpop.permute.xlu0 %1945  ;;  %v2299_v54 = vld [vmem:[#allocation2 + $0x458] sm:$0xff]  ;;  %v2426_v61 = vld [vmem:[#allocation2 + $0x850] sm:$0xff] }
 0x381   :  { %3911 = vmatpush1.bf16.msra.mxu1 %v3910_v55  ;;  %2885 = vmatprep.mubr.f32.mxu0 %v2263_v30  ;;  %v2059_v36 = vadd.f32 %v1946_v23, %v1387_v43  ;;  %v1388_v44 = vmul.f32 %v1279_v26, %v6646_v29  ;;  %v2304_v30 = vld [vmem:[#allocation2 + $0x480] sm:$0xff]  ;;  %v2310_v43 = vld [vmem:[#allocation2 + $0x4b0] sm:$0xff]  ;;  %v2317_v26 = vld [vmem:[#allocation2 + $0x4e8] sm:$0xff] }
 0x382   :  { %3912 = vmatprep.subr.bf16.mxu1 %v6510_v31  ;;  %v2444_v23 = vld [vmem:[#allocation2 + $0x8e0] sm:$0xff]  ;;  %v2334_v29 = vld [vmem:[#allocation2 + $0x570] sm:$0xff] }
 0x383   :  { %3296 = vmatmul.mubr.f32.gmra.mrb[36].mxu1 %v2390_v48  ;;  %v2155_v37 = vmax.f32 %v2059_v36, 0.0  ;;  %v2445_v48 = vld [vmem:[#allocation2 + $0x8e8] sm:$0xff]  ;;  %v2164_v36 = vld [vmem:[#allocation2 + $0x20] sm:$0xff] }
 0x384   :  { %2886 = vmatmul.mubr.f32.gmra.mrb[40].mxu0 %v2262_v8  ;;  %3300 = vmatprep.mubr.f32.mxu1 %v2397_v0  ;;  %v1951_v6 = vpop.permute.xlu1 %1950  ;;  %v1284_v39 = vpop.permute.xlu0 %1283  ;;  %v2165_v8 = vld [vmem:[#allocation2 + $0x28] sm:$0xff]  ;;  %v2323_v0 = vld [vmem:[#allocation2 + $0x518] sm:$0xff] }
 0x385   :  { %2890 = vmatprep.mubr.f32.mxu0 %v2269_v1  ;;  %3914 = vmatpush1.bf16.msra.mxu1 %v3913_v4  ;;  %v3916_v58 = vpack.c.bf16 %v2155_v37, %v2154_v19  ;;  %v2060_v33 = vadd.f32 %v1951_v6, %v1388_v44  ;;  %v1389_v24 = vmul.f32 %v1284_v39, %v6647_v22  ;;  %v2316_v4 = vld [vmem:[#allocation2 + $0x4e0] sm:$0xff]  ;;  %v2322_v1 = vld [vmem:[#allocation2 + $0x510] sm:$0xff]  ;;  %v2171_v19 = vld [vmem:[#allocation2 + $0x58] sm:$0xff] }
 0x386   :  { %3915 = vmatprep.subr.bf16.mxu1 %v6510_v31  ;;  %v2329_v37 = vld [vmem:[#allocation2 + $0x548] sm:$0xff]  ;;  %v2328_v6 = vld [vmem:[#allocation2 + $0x540] sm:$0xff]  ;;  %v2183_v44 = vld [vmem:[#allocation2 + $0xb8] sm:$0xff] }
 0x387   :  { %3301 = vmatmul.mubr.f32.gmra.mrb[38].mxu1 %v2396_v34  ;;  %v2156_v25 = vmax.f32 %v2060_v33, 0.0  ;;  %v2170_v34 = vld [vmem:[#allocation2 + $0x50] sm:$0xff]  ;;  %v2177_v39 = vld [vmem:[#allocation2 + $0x88] sm:$0xff]  ;;  %v2340_v33 = vld [vmem:[#allocation2 + $0x5a0] sm:$0xff] }
 0x388   :  { %2891 = vmatmul.mubr.f32.gmra.mrb[42].mxu0 %v2268_v45  ;;  %3305 = vmatprep.mubr.f32.mxu1 %v2403_v38  ;;  %v1289_v20 = vpop.permute.xlu1 %1288  ;;  %v1956_v63 = vpop.permute.xlu0 %1955  ;;  %v2335_v45 = vld [vmem:[#allocation2 + $0x578] sm:$0xff]  ;;  %v2176_v38 = vld [vmem:[#allocation2 + $0x80] sm:$0xff]  ;;  %v2189_v22 = vld [vmem:[#allocation2 + $0xe8] sm:$0xff] }
 0x389   :  { %2895 = vmatprep.mubr.f32.mxu0 %v2275_v57  ;;  %3917 = vmatpush1.bf16.msra.mxu1 %v3916_v58  ;;  %v2061_v27 = vadd.f32 %v1956_v63, %v1389_v24  ;;  %v1390_v7 = vmul.f32 %v1289_v20, %v5807_v40  ;;  %v2341_v58 = vld [vmem:[#allocation2 + $0x5a8] sm:$0xff]  ;;  %v2182_v57 = vld [vmem:[#allocation2 + $0xb0] sm:$0xff]  ;;  %v2347_v24 = vld [vmem:[#allocation2 + $0x5d8] sm:$0xff] }
 0x38a   :  { %3918 = vmatprep.subr.bf16.mxu1 %v6510_v31  ;;  %v2346_v20 = vld [vmem:[#allocation2 + $0x5d0] sm:$0xff]  ;;  %v2195_v63 = vld [vmem:[#allocation2 + $0x118] sm:$0xff] }
 0x38b   :  { %3306 = vmatmul.mubr.f32.gmra.mrb[40].mxu1 %v2402_v51  ;;  %v2157_v41 = vmax.f32 %v2061_v27, 0.0  ;;  %v2188_v51 = vld [vmem:[#allocation2 + $0xe0] sm:$0xff] }
 0x38c   :  { %2896 = vmatmul.mubr.f32.gmra.mrb[44].mxu0 %v2274_v32  ;;  %3310 = vmatprep.mubr.f32.mxu1 %v2409_v21  ;;  %v1961_v10 = vpop.permute.xlu1 %1960  ;;  %v1294_v46 = vpop.permute.xlu0 %1293  ;;  %v2353_v32 = vld [vmem:[#allocation2 + $0x608] sm:$0xff]  ;;  %v2194_v21 = vld [vmem:[#allocation2 + $0x110] sm:$0xff]  ;;  %v2352_v27 = vld [vmem:[#allocation2 + $0x600] sm:$0xff] }
 0x38d   :  { %2900 = vmatprep.mubr.f32.mxu0 %v2281_v60  ;;  %v3919_v11 = vpack.c.bf16 %v2157_v41, %v2156_v25  ;;  %v2062_v3 = vadd.f32 %v1961_v10, %v1390_v7  ;;  %v1391_v42 = vmul.f32 %v1294_v46, %v5699_v47  ;;  %v2292_v47 = vld [vmem:[#allocation2 + $0x420] sm:$0xff]  ;;  %v2201_v60 = vld [vmem:[#allocation2 + $0x148] sm:$0xff]  ;;  %v2359_v25 = vld [vmem:[#allocation2 + $0x638] sm:$0xff] }
 0x38e   :  { %v2200_v41 = vld [vmem:[#allocation2 + $0x140] sm:$0xff]  ;;  %v2207_v10 = vld [vmem:[#allocation2 + $0x178] sm:$0xff]  ;;  %v2365_v46 = vld [vmem:[#allocation2 + $0x668] sm:$0xff] }
 0x38f   :  { %3311 = vmatmul.mubr.f32.gmra.mrb[42].mxu1 %v2408_v17  ;;  %v2158_v40 = vmax.f32 %v2062_v3, 0.0  ;;  %v2358_v17 = vld [vmem:[#allocation2 + $0x630] sm:$0xff]  ;;  %v2213_v7 = vld [vmem:[#allocation2 + $0x1a8] sm:$0xff] }
 0x390   :  { %2901 = vmatmul.mubr.f32.gmra.mrb[46].mxu0 %v2280_v59  ;;  %3315 = vmatprep.mubr.f32.mxu1 %v2415_v35  ;;  %v1966_v13 = vpop.permute.xlu0 %1965  ;;  %v2206_v59 = vld [vmem:[#allocation2 + $0x170] sm:$0xff]  ;;  %v2364_v35 = vld [vmem:[#allocation2 + $0x660] sm:$0xff] }
 0x391   :  { %2905 = vmatprep.mubr.f32.mxu0 %v2287_v52  ;;  %3920 = vmatpush1.bf16.msra.mxu1 %v3919_v11  ;;  %v2063_v49 = vadd.f32 %v1966_v13, %v1391_v42  ;;  %v2371_v11 = vld [vmem:[#allocation2 + $0x698] sm:$0xff]  ;;  %v2212_v52 = vld [vmem:[#allocation2 + $0x1a0] sm:$0xff]  ;;  %v2370_v3 = vld [vmem:[#allocation2 + $0x690] sm:$0xff] }
 0x392   :  { %3921 = vmatprep.subr.bf16.mxu1 %v6510_v31  ;;  %v2305_v31 = vld [vmem:[#allocation2 + $0x488] sm:$0xff]  ;;  %v2219_v42 = vld [vmem:[#allocation2 + $0x1d8] sm:$0xff]  ;;  %v2218_v13 = vld [vmem:[#allocation2 + $0x1d0] sm:$0xff] }
 0x393   :  { %3316 = vmatmul.mubr.f32.gmra.mrb[44].mxu1 %v2414_v14  ;;  %v2159_v28 = vmax.f32 %v2063_v49, 0.0  ;;  %v2377_v14 = vld [vmem:[#allocation2 + $0x6c8] sm:$0xff]  ;;  %v2383_v49 = vld [vmem:[#allocation2 + $0x6f8] sm:$0xff] }
 0x394   :  { %2906 = vmatmul.mubr.f32.gmra.mrb[48].mxu0 %v2286_v9  ;;  %3320 = vmatprep.mubr.f32.mxu1 %v2421_v12  ;;  %v2376_v9 = vld [vmem:[#allocation2 + $0x6c0] sm:$0xff]  ;;  %v2225_v12 = vld [vmem:[#allocation2 + $0x208] sm:$0xff] }
 0x395   :  { %2910 = vmatprep.mubr.f32.mxu0 %v2293_v62  ;;  %v3922_v55 = vpack.c.bf16 %v2159_v28, %v2158_v40  ;;  %v2224_v62 = vld [vmem:[#allocation2 + $0x200] sm:$0xff]  ;;  %v2382_v40 = vld [vmem:[#allocation2 + $0x6f0] sm:$0xff]  ;;  %v2231_v28 = vld [vmem:[#allocation2 + $0x238] sm:$0xff] }
 0x397   :  { %3321 = vmatmul.mubr.f32.gmra.mrb[46].mxu1 %v2420_v18  ;;  %v2389_v18 = vld [vmem:[#allocation2 + $0x728] sm:$0xff] }
 0x398   :  { %2911 = vmatmul.mubr.f32.gmra.mrb[50].mxu0 %v2292_v47  ;;  %3325 = vmatprep.mubr.f32.mxu1 %v2427_v53  ;;  %v2230_v47 = vld [vmem:[#allocation2 + $0x230] sm:$0xff]  ;;  %v2388_v53 = vld [vmem:[#allocation2 + $0x720] sm:$0xff] }
 0x399   :  { %2915 = vmatprep.mubr.f32.mxu0 %v2299_v54  ;;  %3923 = vmatpush1.bf16.msra.mxu1 %v3922_v55  ;;  %v2237_v55 = vld [vmem:[#allocation2 + $0x268] sm:$0xff]  ;;  %v2395_v54 = vld [vmem:[#allocation2 + $0x758] sm:$0xff] }
 0x39b   :  { %3326 = vmatmul.mubr.f32.gmra.mrb[48].mxu1 %v2426_v61  ;;  %v2236_v61 = vld [vmem:[#allocation2 + $0x260] sm:$0xff] }
 0x39c   :  { %2916 = vmatmul.mubr.f32.gmra.mrb[52].mxu0 %v2298_v16  ;;  %3330 = vmatprep.mubr.f32.mxu1 %v2433_v56  ;;  %v2394_v16 = vld [vmem:[#allocation2 + $0x750] sm:$0xff]  ;;  %v2243_v56 = vld [vmem:[#allocation2 + $0x298] sm:$0xff] }
 0x39d   :  { %2920 = vmatprep.mubr.f32.mxu0 %v2305_v31  ;;  %v2401_v31 = vld [vmem:[#allocation2 + $0x788] sm:$0xff] }
 0x39f   :  { %3331 = vmatmul.mubr.f32.gmra.mrb[50].mxu1 %v2432_v2  ;;  %v2242_v2 = vld [vmem:[#allocation2 + $0x290] sm:$0xff] }
 0x3a0   :  { %2921 = vmatmul.mubr.f32.gmra.mrb[54].mxu0 %v2304_v30  ;;  %3335 = vmatprep.mubr.f32.mxu1 %v2439_v50  ;;  %v2400_v30 = vld [vmem:[#allocation2 + $0x780] sm:$0xff]  ;;  %v2249_v50 = vld [vmem:[#allocation2 + $0x2c8] sm:$0xff] }
 0x3a1   :  { %2925 = vmatprep.mubr.f32.mxu0 %v2311_v15  ;;  %v2407_v15 = vld [vmem:[#allocation2 + $0x7b8] sm:$0xff] }
 0x3a3   :  { %3336 = vmatmul.mubr.f32.gmra.mrb[52].mxu1 %v2438_v5  ;;  %v2248_v5 = vld [vmem:[#allocation2 + $0x2c0] sm:$0xff] }
 0x3a4   :  { %2926 = vmatmul.mubr.f32.gmra.mrb[56].mxu0 %v2310_v43  ;;  %3340 = vmatprep.mubr.f32.mxu1 %v2445_v48  ;;  %v2406_v43 = vld [vmem:[#allocation2 + $0x7b0] sm:$0xff]  ;;  %v2255_v48 = vld [vmem:[#allocation2 + $0x2f8] sm:$0xff] }
 0x3a5   :  { %2930 = vmatprep.mubr.f32.mxu0 %v2317_v26  ;;  %v2413_v26 = vld [vmem:[#allocation2 + $0x7e8] sm:$0xff] }
 0x3a7   :  { %3341 = vmatmul.mubr.f32.gmra.mrb[54].mxu1 %v2444_v23  ;;  %v2254_v23 = vld [vmem:[#allocation2 + $0x2f0] sm:$0xff] }
 0x3a8   :  { %2931 = vmatmul.mubr.f32.gmra.mrb[58].mxu0 %v2316_v4  ;;  %3410 = vmatprep.mubr.f32.mxu1 %v2165_v8  ;;  %v2412_v4 = vld [vmem:[#allocation2 + $0x7e0] sm:$0xff]  ;;  %v2261_v8 = vld [vmem:[#allocation2 + $0x328] sm:$0xff] }
 0x3a9   :  { %2935 = vmatprep.mubr.f32.mxu0 %v2323_v0  ;;  %v2419_v0 = vld [vmem:[#allocation2 + $0x818] sm:$0xff] }
 0x3ab   :  { %3411 = vmatmul.mubr.f32.vlgmr.msra.gmra.mrb[56].mxu1 %v2164_v36  ;;  %v2260_v36 = vld [vmem:[#allocation2 + $0x320] sm:$0xff] }
 0x3ac   :  { %2936 = vmatmul.mubr.f32.gmra.mrb[60].mxu0 %v2322_v1  ;;  %3415 = vmatprep.mubr.f32.mxu1 %v2171_v19  ;;  %v2418_v1 = vld [vmem:[#allocation2 + $0x810] sm:$0xff]  ;;  %v2267_v19 = vld [vmem:[#allocation2 + $0x358] sm:$0xff] }
 0x3ad   :  { %2940 = vmatprep.mubr.f32.mxu0 %v2329_v37  ;;  %v2425_v37 = vld [vmem:[#allocation2 + $0x848] sm:$0xff] }
 0x3af   :  { %3416 = vmatmul.mubr.f32.gmra.mrb[58].mxu1 %v2170_v34  ;;  %v2266_v34 = vld [vmem:[#allocation2 + $0x350] sm:$0xff] }
 0x3b0   :  { %2941 = vmatmul.mubr.f32.gmra.mrb[62].mxu0 %v2328_v6  ;;  %3420 = vmatprep.mubr.f32.mxu1 %v2177_v39  ;;  %v2424_v6 = vld [vmem:[#allocation2 + $0x840] sm:$0xff]  ;;  %v2273_v39 = vld [vmem:[#allocation2 + $0x388] sm:$0xff] }
 0x3b1   :  { %2945 = vmatprep.mubr.f32.mxu0 %v2335_v45  ;;  %v2431_v45 = vld [vmem:[#allocation2 + $0x878] sm:$0xff] }
 0x3b3   :  { %3421 = vmatmul.mubr.f32.gmra.mrb[60].mxu1 %v2176_v38  ;;  %v2272_v38 = vld [vmem:[#allocation2 + $0x380] sm:$0xff] }
 0x3b4   :  { %2946 = vmatmul.mubr.f32.gmra.mrb[64].mxu0 %v2334_v29  ;;  %3425 = vmatprep.mubr.f32.mxu1 %v2183_v44  ;;  %v2430_v29 = vld [vmem:[#allocation2 + $0x870] sm:$0xff]  ;;  %v2279_v44 = vld [vmem:[#allocation2 + $0x3b8] sm:$0xff] }
 0x3b5   :  { %2950 = vmatprep.mubr.f32.mxu0 %v2341_v58  ;;  %v2437_v58 = vld [vmem:[#allocation2 + $0x8a8] sm:$0xff] }
 0x3b7   :  { %3426 = vmatmul.mubr.f32.gmra.mrb[62].mxu1 %v2182_v57  ;;  %v2278_v57 = vld [vmem:[#allocation2 + $0x3b0] sm:$0xff] }
 0x3b8   :  { %2951 = vmatmul.mubr.f32.gmra.mrb[66].mxu0 %v2340_v33  ;;  %3430 = vmatprep.mubr.f32.mxu1 %v2189_v22  ;;  %v2436_v33 = vld [vmem:[#allocation2 + $0x8a0] sm:$0xff]  ;;  %v2285_v22 = vld [vmem:[#allocation2 + $0x3e8] sm:$0xff] }
 0x3b9   :  { %2955 = vmatprep.mubr.f32.mxu0 %v2347_v24  ;;  %v2443_v24 = vld [vmem:[#allocation2 + $0x8d8] sm:$0xff] }
 0x3bb   :  { %3431 = vmatmul.mubr.f32.gmra.mrb[64].mxu1 %v2188_v51  ;;  %v2284_v51 = vld [vmem:[#allocation2 + $0x3e0] sm:$0xff] }
 0x3bc   :  { %2956 = vmatmul.mubr.f32.gmra.mrb[68].mxu0 %v2346_v20  ;;  %3435 = vmatprep.mubr.f32.mxu1 %v2195_v63  ;;  %v2442_v20 = vld [vmem:[#allocation2 + $0x8d0] sm:$0xff]  ;;  %v2291_v63 = vld [vmem:[#allocation2 + $0x418] sm:$0xff] }
 0x3bd   :  { %2960 = vmatprep.mubr.f32.mxu0 %v2353_v32  ;;  %v2163_v32 = vld [vmem:[#allocation2 + $0x18] sm:$0xff] }
 0x3bf   :  { %3436 = vmatmul.mubr.f32.gmra.mrb[66].mxu1 %v2194_v21  ;;  %v2290_v21 = vld [vmem:[#allocation2 + $0x410] sm:$0xff] }
 0x3c0   :  { %2961 = vmatmul.mubr.f32.gmra.mrb[70].mxu0 %v2352_v27  ;;  %3440 = vmatprep.mubr.f32.mxu1 %v2201_v60  ;;  %v2162_v27 = vld [vmem:[#allocation2 + $0x10] sm:$0xff]  ;;  %v2297_v60 = vld [vmem:[#allocation2 + $0x448] sm:$0xff] }
 0x3c1   :  { %2965 = vmatprep.mubr.f32.mxu0 %v2359_v25  ;;  %v2169_v25 = vld [vmem:[#allocation2 + $0x48] sm:$0xff] }
 0x3c3   :  { %3441 = vmatmul.mubr.f32.gmra.mrb[68].mxu1 %v2200_v41  ;;  %v2296_v41 = vld [vmem:[#allocation2 + $0x440] sm:$0xff] }
 0x3c4   :  { %2966 = vmatmul.mubr.f32.gmra.mrb[72].mxu0 %v2358_v17  ;;  %3445 = vmatprep.mubr.f32.mxu1 %v2207_v10  ;;  %v2168_v17 = vld [vmem:[#allocation2 + $0x40] sm:$0xff]  ;;  %v2303_v10 = vld [vmem:[#allocation2 + $0x478] sm:$0xff] }
 0x3c5   :  { %2970 = vmatprep.mubr.f32.mxu0 %v2365_v46  ;;  %v2175_v46 = vld [vmem:[#allocation2 + $0x78] sm:$0xff] }
 0x3c7   :  { %3446 = vmatmul.mubr.f32.gmra.mrb[70].mxu1 %v2206_v59  ;;  %v2302_v59 = vld [vmem:[#allocation2 + $0x470] sm:$0xff] }
 0x3c8   :  { %2971 = vmatmul.mubr.f32.gmra.mrb[74].mxu0 %v2364_v35  ;;  %3450 = vmatprep.mubr.f32.mxu1 %v2213_v7  ;;  %v2174_v35 = vld [vmem:[#allocation2 + $0x70] sm:$0xff]  ;;  %v2309_v7 = vld [vmem:[#allocation2 + $0x4a8] sm:$0xff] }
 0x3c9   :  { %2975 = vmatprep.mubr.f32.mxu0 %v2371_v11  ;;  %v2181_v11 = vld [vmem:[#allocation2 + $0xa8] sm:$0xff] }
 0x3cb   :  { %3451 = vmatmul.mubr.f32.gmra.mrb[72].mxu1 %v2212_v52  ;;  %v2308_v52 = vld [vmem:[#allocation2 + $0x4a0] sm:$0xff] }
 0x3cc   :  { %2976 = vmatmul.mubr.f32.gmra.mrb[76].mxu0 %v2370_v3  ;;  %3455 = vmatprep.mubr.f32.mxu1 %v2219_v42  ;;  %v2180_v3 = vld [vmem:[#allocation2 + $0xa0] sm:$0xff]  ;;  %v2315_v42 = vld [vmem:[#allocation2 + $0x4d8] sm:$0xff] }
 0x3cd   :  { %2980 = vmatprep.mubr.f32.mxu0 %v2377_v14  ;;  %v2187_v14 = vld [vmem:[#allocation2 + $0xd8] sm:$0xff] }
 0x3cf   :  { %3456 = vmatmul.mubr.f32.gmra.mrb[74].mxu1 %v2218_v13  ;;  %v2314_v13 = vld [vmem:[#allocation2 + $0x4d0] sm:$0xff] }
 0x3d0   :  { %2981 = vmatmul.mubr.f32.gmra.mrb[78].mxu0 %v2376_v9  ;;  %3460 = vmatprep.mubr.f32.mxu1 %v2225_v12  ;;  %v2186_v9 = vld [vmem:[#allocation2 + $0xd0] sm:$0xff]  ;;  %v2321_v12 = vld [vmem:[#allocation2 + $0x508] sm:$0xff] }
 0x3d1   :  { %2985 = vmatprep.mubr.f32.mxu0 %v2383_v49  ;;  %v2193_v49 = vld [vmem:[#allocation2 + $0x108] sm:$0xff] }
 0x3d3   :  { %3461 = vmatmul.mubr.f32.gmra.mrb[76].mxu1 %v2224_v62  ;;  %v2320_v62 = vld [vmem:[#allocation2 + $0x500] sm:$0xff] }
 0x3d4   :  { %2986 = vmatmul.mubr.f32.gmra.mrb[80].mxu0 %v2382_v40  ;;  %3465 = vmatprep.mubr.f32.mxu1 %v2231_v28  ;;  %v2192_v40 = vld [vmem:[#allocation2 + $0x100] sm:$0xff]  ;;  %v2327_v28 = vld [vmem:[#allocation2 + $0x538] sm:$0xff] }
 0x3d5   :  { %2990 = vmatprep.mubr.f32.mxu0 %v2389_v18  ;;  %v2199_v18 = vld [vmem:[#allocation2 + $0x138] sm:$0xff] }
 0x3d7   :  { %3466 = vmatmul.mubr.f32.gmra.mrb[78].mxu1 %v2230_v47  ;;  %v2326_v47 = vld [vmem:[#allocation2 + $0x530] sm:$0xff] }
 0x3d8   :  { %2991 = vmatmul.mubr.f32.gmra.mrb[82].mxu0 %v2388_v53  ;;  %3470 = vmatprep.mubr.f32.mxu1 %v2237_v55  ;;  %v2198_v53 = vld [vmem:[#allocation2 + $0x130] sm:$0xff]  ;;  %v2333_v55 = vld [vmem:[#allocation2 + $0x568] sm:$0xff] }
 0x3d9   :  { %2995 = vmatprep.mubr.f32.mxu0 %v2395_v54  ;;  %v2205_v54 = vld [vmem:[#allocation2 + $0x168] sm:$0xff] }
 0x3db   :  { %3471 = vmatmul.mubr.f32.gmra.mrb[80].mxu1 %v2236_v61  ;;  %v2332_v61 = vld [vmem:[#allocation2 + $0x560] sm:$0xff] }
 0x3dc   :  { %2996 = vmatmul.mubr.f32.gmra.mrb[84].mxu0 %v2394_v16  ;;  %3475 = vmatprep.mubr.f32.mxu1 %v2243_v56  ;;  %v2204_v16 = vld [vmem:[#allocation2 + $0x160] sm:$0xff]  ;;  %v2339_v56 = vld [vmem:[#allocation2 + $0x598] sm:$0xff] }
 0x3dd   :  { %3000 = vmatprep.mubr.f32.mxu0 %v2401_v31  ;;  %v2211_v31 = vld [vmem:[#allocation2 + $0x198] sm:$0xff] }
 0x3df   :  { %3476 = vmatmul.mubr.f32.gmra.mrb[82].mxu1 %v2242_v2  ;;  %v2338_v2 = vld [vmem:[#allocation2 + $0x590] sm:$0xff] }
 0x3e0   :  { %3001 = vmatmul.mubr.f32.gmra.mrb[86].mxu0 %v2400_v30  ;;  %3480 = vmatprep.mubr.f32.mxu1 %v2249_v50  ;;  %v2210_v30 = vld [vmem:[#allocation2 + $0x190] sm:$0xff]  ;;  %v2345_v50 = vld [vmem:[#allocation2 + $0x5c8] sm:$0xff] }
 0x3e1   :  { %3005 = vmatprep.mubr.f32.mxu0 %v2407_v15  ;;  %v2217_v15 = vld [vmem:[#allocation2 + $0x1c8] sm:$0xff] }
 0x3e3   :  { %3481 = vmatmul.mubr.f32.gmra.mrb[84].mxu1 %v2248_v5  ;;  %v2344_v5 = vld [vmem:[#allocation2 + $0x5c0] sm:$0xff] }
 0x3e4   :  { %3006 = vmatmul.mubr.f32.gmra.mrb[88].mxu0 %v2406_v43  ;;  %3485 = vmatprep.mubr.f32.mxu1 %v2255_v48  ;;  %v2216_v43 = vld [vmem:[#allocation2 + $0x1c0] sm:$0xff]  ;;  %v2351_v48 = vld [vmem:[#allocation2 + $0x5f8] sm:$0xff] }
 0x3e5   :  { %3010 = vmatprep.mubr.f32.mxu0 %v2413_v26  ;;  %v2223_v26 = vld [vmem:[#allocation2 + $0x1f8] sm:$0xff] }
 0x3e7   :  { %3486 = vmatmul.mubr.f32.gmra.mrb[86].mxu1 %v2254_v23  ;;  %v2350_v23 = vld [vmem:[#allocation2 + $0x5f0] sm:$0xff] }
 0x3e8   :  { %3011 = vmatmul.mubr.f32.gmra.mrb[90].mxu0 %v2412_v4  ;;  %3490 = vmatprep.mubr.f32.mxu1 %v2261_v8  ;;  %v2222_v4 = vld [vmem:[#allocation2 + $0x1f0] sm:$0xff]  ;;  %v2357_v8 = vld [vmem:[#allocation2 + $0x628] sm:$0xff] }
 0x3e9   :  { %3015 = vmatprep.mubr.f32.mxu0 %v2419_v0  ;;  %v2229_v0 = vld [vmem:[#allocation2 + $0x228] sm:$0xff] }
 0x3eb   :  { %3491 = vmatmul.mubr.f32.gmra.mrb[88].mxu1 %v2260_v36  ;;  %v2356_v36 = vld [vmem:[#allocation2 + $0x620] sm:$0xff] }
 0x3ec   :  { %3016 = vmatmul.mubr.f32.gmra.mrb[92].mxu0 %v2418_v1  ;;  %3495 = vmatprep.mubr.f32.mxu1 %v2267_v19  ;;  %v2228_v1 = vld [vmem:[#allocation2 + $0x220] sm:$0xff]  ;;  %v2363_v19 = vld [vmem:[#allocation2 + $0x658] sm:$0xff] }
 0x3ed   :  { %3020 = vmatprep.mubr.f32.mxu0 %v2425_v37  ;;  %v2235_v37 = vld [vmem:[#allocation2 + $0x258] sm:$0xff] }
 0x3ef   :  { %3496 = vmatmul.mubr.f32.gmra.mrb[90].mxu1 %v2266_v34  ;;  %v2362_v34 = vld [vmem:[#allocation2 + $0x650] sm:$0xff] }
 0x3f0   :  { %3021 = vmatmul.mubr.f32.gmra.mrb[94].mxu0 %v2424_v6  ;;  %3500 = vmatprep.mubr.f32.mxu1 %v2273_v39  ;;  %v2234_v6 = vld [vmem:[#allocation2 + $0x250] sm:$0xff]  ;;  %v2369_v39 = vld [vmem:[#allocation2 + $0x688] sm:$0xff] }
 0x3f1   :  { %3025 = vmatprep.mubr.f32.mxu0 %v2431_v45  ;;  %v2241_v45 = vld [vmem:[#allocation2 + $0x288] sm:$0xff] }
 0x3f3   :  { %3501 = vmatmul.mubr.f32.gmra.mrb[92].mxu1 %v2272_v38  ;;  %v2368_v38 = vld [vmem:[#allocation2 + $0x680] sm:$0xff] }
 0x3f4   :  { %3026 = vmatmul.mubr.f32.gmra.mrb[96].mxu0 %v2430_v29  ;;  %3505 = vmatprep.mubr.f32.mxu1 %v2279_v44  ;;  %v2240_v29 = vld [vmem:[#allocation2 + $0x280] sm:$0xff]  ;;  %v2375_v44 = vld [vmem:[#allocation2 + $0x6b8] sm:$0xff] }
 0x3f5   :  { %3030 = vmatprep.mubr.f32.mxu0 %v2437_v58  ;;  %v2247_v58 = vld [vmem:[#allocation2 + $0x2b8] sm:$0xff] }
 0x3f7   :  { %3506 = vmatmul.mubr.f32.gmra.mrb[94].mxu1 %v2278_v57  ;;  %v2374_v57 = vld [vmem:[#allocation2 + $0x6b0] sm:$0xff] }
 0x3f8   :  { %3031 = vmatmul.mubr.f32.gmra.mrb[98].mxu0 %v2436_v33  ;;  %3510 = vmatprep.mubr.f32.mxu1 %v2285_v22  ;;  %v2246_v33 = vld [vmem:[#allocation2 + $0x2b0] sm:$0xff]  ;;  %v2381_v22 = vld [vmem:[#allocation2 + $0x6e8] sm:$0xff] }
 0x3f9   :  { %3035 = vmatprep.mubr.f32.mxu0 %v2443_v24  ;;  %v2253_v24 = vld [vmem:[#allocation2 + $0x2e8] sm:$0xff] }
 0x3fb   :  { %3511 = vmatmul.mubr.f32.gmra.mrb[0].mxu1 %v2284_v51  ;;  %v2380_v51 = vld [vmem:[#allocation2 + $0x6e0] sm:$0xff] }
 0x3fc   :  { %3036 = vmatmul.mubr.f32.gmra.mrb[100].mxu0 %v2442_v20  ;;  %3515 = vmatprep.mubr.f32.mxu1 %v2291_v63  ;;  %v2252_v20 = vld [vmem:[#allocation2 + $0x2e0] sm:$0xff]  ;;  %v2387_v63 = vld [vmem:[#allocation2 + $0x718] sm:$0xff] }
 0x3fd   :  { %3105 = vmatprep.mubr.f32.mxu0 %v2163_v32  ;;  %v2259_v32 = vld [vmem:[#allocation2 + $0x318] sm:$0xff] }
 0x3ff   :  { %3516 = vmatmul.mubr.f32.gmra.mrb[2].mxu1 %v2290_v21  ;;  %v2386_v21 = vld [vmem:[#allocation2 + $0x710] sm:$0xff] }
 0x400   :  { %3106 = vmatmul.mubr.f32.vlgmr.msra.gmra.mrb[6].mxu0 %v2162_v27  ;;  %3520 = vmatprep.mubr.f32.mxu1 %v2297_v60  ;;  %v2258_v27 = vld [vmem:[#allocation2 + $0x310] sm:$0xff]  ;;  %v2393_v60 = vld [vmem:[#allocation2 + $0x748] sm:$0xff] }
 0x401   :  { %3110 = vmatprep.mubr.f32.mxu0 %v2169_v25  ;;  %v2265_v25 = vld [vmem:[#allocation2 + $0x348] sm:$0xff] }
 0x403   :  { %3521 = vmatmul.mubr.f32.gmra.mrb[4].mxu1 %v2296_v41  ;;  %v2392_v41 = vld [vmem:[#allocation2 + $0x740] sm:$0xff] }
 0x404   :  { %3111 = vmatmul.mubr.f32.gmra.mrb[8].mxu0 %v2168_v17  ;;  %3525 = vmatprep.mubr.f32.mxu1 %v2303_v10  ;;  %v2264_v17 = vld [vmem:[#allocation2 + $0x340] sm:$0xff]  ;;  %v2399_v10 = vld [vmem:[#allocation2 + $0x778] sm:$0xff] }
 0x405   :  { %3115 = vmatprep.mubr.f32.mxu0 %v2175_v46  ;;  %v2271_v46 = vld [vmem:[#allocation2 + $0x378] sm:$0xff] }
 0x407   :  { %3526 = vmatmul.mubr.f32.gmra.mrb[6].mxu1 %v2302_v59  ;;  %v2398_v59 = vld [vmem:[#allocation2 + $0x770] sm:$0xff] }
 0x408   :  { %3116 = vmatmul.mubr.f32.gmra.mrb[10].mxu0 %v2174_v35  ;;  %3530 = vmatprep.mubr.f32.mxu1 %v2309_v7  ;;  %v2270_v35 = vld [vmem:[#allocation2 + $0x370] sm:$0xff]  ;;  %v2405_v7 = vld [vmem:[#allocation2 + $0x7a8] sm:$0xff] }
 0x409   :  { %3120 = vmatprep.mubr.f32.mxu0 %v2181_v11  ;;  %v2277_v11 = vld [vmem:[#allocation2 + $0x3a8] sm:$0xff] }
 0x40b   :  { %3531 = vmatmul.mubr.f32.gmra.mrb[8].mxu1 %v2308_v52  ;;  %v2404_v52 = vld [vmem:[#allocation2 + $0x7a0] sm:$0xff] }
 0x40c   :  { %3121 = vmatmul.mubr.f32.gmra.mrb[12].mxu0 %v2180_v3  ;;  %3535 = vmatprep.mubr.f32.mxu1 %v2315_v42  ;;  %v2276_v3 = vld [vmem:[#allocation2 + $0x3a0] sm:$0xff]  ;;  %v2411_v42 = vld [vmem:[#allocation2 + $0x7d8] sm:$0xff] }
 0x40d   :  { %3125 = vmatprep.mubr.f32.mxu0 %v2187_v14  ;;  %v2410_v14 = vld [vmem:[#allocation2 + $0x7d0] sm:$0xff] }
 0x40f   :  { %3536 = vmatmul.mubr.f32.gmra.mrb[10].mxu1 %v2314_v13  ;;  %v2417_v13 = vld [vmem:[#allocation2 + $0x808] sm:$0xff] }
 0x410   :  { %3126 = vmatmul.mubr.f32.gmra.mrb[14].mxu0 %v2186_v9  ;;  %3540 = vmatprep.mubr.f32.mxu1 %v2321_v12  ;;  %v2416_v9 = vld [vmem:[#allocation2 + $0x800] sm:$0xff]  ;;  %v2423_v12 = vld [vmem:[#allocation2 + $0x838] sm:$0xff] }
 0x411   :  { %3130 = vmatprep.mubr.f32.mxu0 %v2193_v49  ;;  %v2422_v49 = vld [vmem:[#allocation2 + $0x830] sm:$0xff] }
 0x413   :  { %3541 = vmatmul.mubr.f32.gmra.mrb[12].mxu1 %v2320_v62  ;;  %v2429_v62 = vld [vmem:[#allocation2 + $0x868] sm:$0xff] }
 0x414   :  { %3131 = vmatmul.mubr.f32.gmra.mrb[16].mxu0 %v2192_v40  ;;  %3545 = vmatprep.mubr.f32.mxu1 %v2327_v28  ;;  %v2428_v40 = vld [vmem:[#allocation2 + $0x860] sm:$0xff]  ;;  %v2435_v28 = vld [vmem:[#allocation2 + $0x898] sm:$0xff] }
 0x415   :  { %3135 = vmatprep.mubr.f32.mxu0 %v2199_v18  ;;  %v2434_v18 = vld [vmem:[#allocation2 + $0x890] sm:$0xff] }
 0x417   :  { %3546 = vmatmul.mubr.f32.gmra.mrb[14].mxu1 %v2326_v47  ;;  %v2441_v47 = vld [vmem:[#allocation2 + $0x8c8] sm:$0xff] }
 0x418   :  { %3136 = vmatmul.mubr.f32.gmra.mrb[18].mxu0 %v2198_v53  ;;  %3550 = vmatprep.mubr.f32.mxu1 %v2333_v55  ;;  %v2440_v53 = vld [vmem:[#allocation2 + $0x8c0] sm:$0xff]  ;;  %v2447_v55 = vld [vmem:[#allocation2 + $0x8f8] sm:$0xff] }
 0x419   :  { %3140 = vmatprep.mubr.f32.mxu0 %v2205_v54 }
 0x41b   :  { %3551 = vmatmul.mubr.f32.gmra.mrb[16].mxu1 %v2332_v61 }
 0x41c   :  { %3141 = vmatmul.mubr.f32.gmra.mrb[20].mxu0 %v2204_v16  ;;  %3555 = vmatprep.mubr.f32.mxu1 %v2339_v56  ;;  %v2446_v16 = vld [vmem:[#allocation2 + $0x8f0] sm:$0xff] }
 0x41d   :  { %3145 = vmatprep.mubr.f32.mxu0 %v2211_v31 }
 0x41f   :  { %3556 = vmatmul.mubr.f32.gmra.mrb[18].mxu1 %v2338_v2 }
 0x420   :  { %3146 = vmatmul.mubr.f32.gmra.mrb[22].mxu0 %v2210_v30  ;;  %3560 = vmatprep.mubr.f32.mxu1 %v2345_v50 }
 0x421   :  { %3150 = vmatprep.mubr.f32.mxu0 %v2217_v15 }
 0x423   :  { %3561 = vmatmul.mubr.f32.gmra.mrb[20].mxu1 %v2344_v5 }
 0x424   :  { %3151 = vmatmul.mubr.f32.gmra.mrb[24].mxu0 %v2216_v43  ;;  %3565 = vmatprep.mubr.f32.mxu1 %v2351_v48 }
 0x425   :  { %3155 = vmatprep.mubr.f32.mxu0 %v2223_v26 }
 0x427   :  { %3566 = vmatmul.mubr.f32.gmra.mrb[22].mxu1 %v2350_v23 }
 0x428   :  { %3156 = vmatmul.mubr.f32.gmra.mrb[26].mxu0 %v2222_v4  ;;  %3570 = vmatprep.mubr.f32.mxu1 %v2357_v8 }
 0x429   :  { %3160 = vmatprep.mubr.f32.mxu0 %v2229_v0 }
 0x42b   :  { %3571 = vmatmul.mubr.f32.gmra.mrb[24].mxu1 %v2356_v36 }
 0x42c   :  { %3161 = vmatmul.mubr.f32.gmra.mrb[28].mxu0 %v2228_v1  ;;  %3575 = vmatprep.mubr.f32.mxu1 %v2363_v19 }
 0x42d   :  { %3165 = vmatprep.mubr.f32.mxu0 %v2235_v37 }
 0x42f   :  { %3576 = vmatmul.mubr.f32.gmra.mrb[26].mxu1 %v2362_v34 }
 0x430   :  { %3166 = vmatmul.mubr.f32.gmra.mrb[30].mxu0 %v2234_v6  ;;  %3580 = vmatprep.mubr.f32.mxu1 %v2369_v39 }
 0x431   :  { %3170 = vmatprep.mubr.f32.mxu0 %v2241_v45 }
 0x433   :  { %3581 = vmatmul.mubr.f32.gmra.mrb[28].mxu1 %v2368_v38 }
 0x434   :  { %3171 = vmatmul.mubr.f32.gmra.mrb[32].mxu0 %v2240_v29  ;;  %3585 = vmatprep.mubr.f32.mxu1 %v2375_v44 }
 0x435   :  { %3175 = vmatprep.mubr.f32.mxu0 %v2247_v58 }
 0x437   :  { %3586 = vmatmul.mubr.f32.gmra.mrb[30].mxu1 %v2374_v57 }
 0x438   :  { %3176 = vmatmul.mubr.f32.gmra.mrb[34].mxu0 %v2246_v33  ;;  %3590 = vmatprep.mubr.f32.mxu1 %v2381_v22 }
 0x439   :  { %3180 = vmatprep.mubr.f32.mxu0 %v2253_v24 }
 0x43b   :  { %3591 = vmatmul.mubr.f32.gmra.mrb[32].mxu1 %v2380_v51 }
 0x43c   :  { %3181 = vmatmul.mubr.f32.gmra.mrb[36].mxu0 %v2252_v20  ;;  %3595 = vmatprep.mubr.f32.mxu1 %v2387_v63  ;;  %v6057_v20 = vpop.permute.xlu1 %2498 }
 0x43d   :  { %3185 = vmatprep.mubr.f32.mxu0 %v2259_v32 }
 0x43f   :  { %3596 = vmatmul.mubr.f32.gmra.mrb[34].mxu1 %v2386_v21 }
 0x440   :  { %3186 = vmatmul.mubr.f32.gmra.mrb[38].mxu0 %v2258_v27  ;;  %3600 = vmatprep.mubr.f32.mxu1 %v2393_v60  ;;  %v6063_v60 = vpop.permute.xlu0 %2503 }
 0x441   :  { %3190 = vmatprep.mubr.f32.mxu0 %v2265_v25 }
 0x443   :  { %3601 = vmatmul.mubr.f32.gmra.mrb[36].mxu1 %v2392_v41  ;;  %v6065_v41 = vpop.permute.xlu1 %2508 }
 0x444   :  { %3191 = vmatmul.mubr.f32.gmra.mrb[40].mxu0 %v2264_v17  ;;  %3605 = vmatprep.mubr.f32.mxu1 %v2399_v10 }
 0x445   :  { %3195 = vmatprep.mubr.f32.mxu0 %v2271_v46 }
 0x447   :  { %3606 = vmatmul.mubr.f32.gmra.mrb[38].mxu1 %v2398_v59 }
 0x448   :  { %3196 = vmatmul.mubr.f32.gmra.mrb[42].mxu0 %v2270_v35  ;;  %3610 = vmatprep.mubr.f32.mxu1 %v2405_v7  ;;  %v6071_v35 = vpop.permute.xlu0 %2513 }
 0x449   :  { %3200 = vmatprep.mubr.f32.mxu0 %v2277_v11 }
 0x44b   :  { %3611 = vmatmul.mubr.f32.gmra.mrb[40].mxu1 %v2404_v52 }
 0x44c   :  { %3201 = vmatmul.mubr.f32.gmra.mrb[44].mxu0 %v2276_v3  ;;  %3615 = vmatprep.mubr.f32.mxu1 %v2411_v42  ;;  %v6077_v3 = vpop.permute.xlu1 %2518 }
 0x44f   :  { %3616 = vmatmul.mubr.f32.gmra.mrb[42].mxu1 %v2410_v14 }
 0x450   :  { %3620 = vmatprep.mubr.f32.mxu1 %v2417_v13 }
 0x453   :  { %3621 = vmatmul.mubr.f32.gmra.mrb[44].mxu1 %v2416_v9 }
 0x454   :  { %3625 = vmatprep.mubr.f32.mxu1 %v2423_v12  ;;  %v6083_v12 = vpop.permute.xlu0 %2523 }
 0x457   :  { %3626 = vmatmul.mubr.f32.gmra.mrb[46].mxu1 %v2422_v49 }
 0x458   :  { %3630 = vmatprep.mubr.f32.mxu1 %v2429_v62  ;;  %v6085_v62 = vpop.permute.xlu1 %2528 }
 0x45b   :  { %3631 = vmatmul.mubr.f32.gmra.mrb[48].mxu1 %v2428_v40 }
 0x45c   :  { %3635 = vmatprep.mubr.f32.mxu1 %v2435_v28 }
 0x45f   :  { %3636 = vmatmul.mubr.f32.gmra.mrb[50].mxu1 %v2434_v18 }
 0x460   :  { %3640 = vmatprep.mubr.f32.mxu1 %v2441_v47 }
 0x463   :  { %3641 = vmatmul.mubr.f32.gmra.mrb[52].mxu1 %v2440_v53  ;;  %v6023_v54 = vpop.f32.mrb[46].mxu0  ;;  %v6091_v53 = vpop.permute.xlu0 %2533 }
 0x464   :  { %3645 = vmatprep.mubr.f32.mxu1 %v2447_v55  ;;  %v2904_v61 = vpop.f32.mrb[47].mxu0 }
 0x467   :  { %3646 = vmatmul.mubr.f32.gmra.mrb[54].mxu1 %v2446_v16  ;;  %v6025_v56 = vpop.f32.mrb[48].mxu0 }
 0x468   :  { %v2909_v31 = vpop.f32.mrb[49].mxu0 }
 0x469   :  { %v6097_v31 = vpop.permute.xlu1 %2538 }
 0x46b   :  { %v6027_v2 = vpop.f32.mrb[50].mxu0 }
 0x46c   :  { %v2914_v30 = vpop.f32.mrb[51].mxu0 }
 0x46f   :  { %v6029_v50 = vpop.f32.mrb[52].mxu0 }
 0x470   :  { %v2919_v15 = vpop.f32.mrb[53].mxu0 }
 0x473   :  { %v6031_v5 = vpop.f32.mrb[54].mxu0 }
 0x474   :  { %v2924_v43 = vpop.f32.mrb[55].mxu0 }
 0x477   :  { %v6033_v48 = vpop.f32.mrb[56].mxu0 }
 0x478   :  { %v2929_v26 = vpop.f32.mrb[57].mxu0 }
 0x47b   :  { %v6035_v23 = vpop.f32.mrb[58].mxu0 }
 0x47c   :  { %v2934_v4 = vpop.f32.mrb[59].mxu0 }
 0x47d   :  { %v6103_v4 = vpop.permute.xlu0 %2543 }
 0x47e   :  { %v6037_v8 = vpop.f32.mrb[56].mxu1 }
 0x47f   :  { %v6039_v0 = vpop.f32.mrb[60].mxu0  ;;  %v3414_v36 = vpop.f32.mrb[57].mxu1 }
 0x480   :  { %v2939_v1 = vpop.f32.mrb[61].mxu0 }
 0x481   :  { %v6105_v1 = vpop.permute.xlu1 %2548 }
 0x482   :  { %v6041_v19 = vpop.f32.mrb[58].mxu1 }
 0x483   :  { %v6043_v37 = vpop.f32.mrb[62].mxu0  ;;  %v3419_v34 = vpop.f32.mrb[59].mxu1 }
 0x484   :  { %v2944_v6 = vpop.f32.mrb[63].mxu0 }
 0x486   :  { %v6045_v39 = vpop.f32.mrb[60].mxu1 }
 0x487   :  { %v6047_v45 = vpop.f32.mrb[64].mxu0  ;;  %v3424_v38 = vpop.f32.mrb[61].mxu1 }
 0x488   :  { %v2949_v29 = vpop.f32.mrb[65].mxu0 }
 0x48a   :  { %v6049_v44 = vpop.f32.mrb[62].mxu1 }
 0x48b   :  { %v6051_v58 = vpop.f32.mrb[66].mxu0  ;;  %v3429_v57 = vpop.f32.mrb[63].mxu1 }
 0x48c   :  { %v2954_v33 = vpop.f32.mrb[67].mxu0  ;;  %v6111_v57 = vpop.permute.xlu0 %2553 }
 0x48e   :  { %v6053_v22 = vpop.f32.mrb[64].mxu1 }
 0x48f   :  { %v6055_v24 = vpop.f32.mrb[68].mxu0  ;;  %v3434_v51 = vpop.f32.mrb[65].mxu1 }
 0x490   :  { %v2959_v63 = vpop.f32.mrb[69].mxu0 }
 0x492   :  { %v6059_v32 = vpop.f32.mrb[66].mxu1 }
 0x493   :  { %v6061_v21 = vpop.f32.mrb[70].mxu0  ;;  %v3439_v27 = vpop.f32.mrb[67].mxu1 }
 0x494   :  { %v2964_v25 = vpop.f32.mrb[71].mxu0  ;;  %v6117_v27 = vpop.permute.xlu1 %2558 }
 0x496   :  { %v6067_v17 = vpop.f32.mrb[68].mxu1 }
 0x497   :  { %v6069_v10 = vpop.f32.mrb[72].mxu0  ;;  %v3444_v46 = vpop.f32.mrb[69].mxu1 }
 0x498   :  { %v2969_v59 = vpop.f32.mrb[73].mxu0 }
 0x49a   :  { %v6073_v7 = vpop.f32.mrb[70].mxu1 }
 0x49b   :  { %v6075_v11 = vpop.f32.mrb[74].mxu0  ;;  %v3449_v52 = vpop.f32.mrb[71].mxu1 }
 0x49c   :  { %v2974_v42 = vpop.f32.mrb[75].mxu0 }
 0x49d   :  { %v6123_v42 = vpop.permute.xlu0 %2563 }
 0x49e   :  { %v6079_v14 = vpop.f32.mrb[72].mxu1 }
 0x49f   :  { %v6081_v13 = vpop.f32.mrb[76].mxu0  ;;  %v3454_v9 = vpop.f32.mrb[73].mxu1 }
 0x4a0   :  { %v2979_v49 = vpop.f32.mrb[77].mxu0 }
 0x4a1   :  { %v6125_v49 = vpop.permute.xlu1 %2568 }
 0x4a2   :  { %v6087_v40 = vpop.f32.mrb[74].mxu1 }
 0x4a3   :  { %v6089_v28 = vpop.f32.mrb[78].mxu0  ;;  %v3459_v18 = vpop.f32.mrb[75].mxu1 }
 0x4a4   :  { %v2984_v47 = vpop.f32.mrb[79].mxu0 }
 0x4a6   :  { %v6093_v55 = vpop.f32.mrb[76].mxu1 }
 0x4a7   :  { %v6095_v61 = vpop.f32.mrb[80].mxu0  ;;  %v3464_v16 = vpop.f32.mrb[77].mxu1 }
 0x4a8   :  { %v2989_v30 = vpop.f32.mrb[81].mxu0 }
 0x4aa   :  { %v6099_v15 = vpop.f32.mrb[78].mxu1 }
 0x4ab   :  { %v6101_v43 = vpop.f32.mrb[82].mxu0  ;;  %v3469_v26 = vpop.f32.mrb[79].mxu1 }
 0x4ac   :  { %6648 = vst [vmem:[#allocation58_spill] sm:$0xff] %v6101_v43  ;;  %v2994_v36 = vpop.f32.mrb[83].mxu0  ;;  %v6131_v26 = vpop.permute.xlu0 %2573 }
 0x4ae   :  { %v6107_v34 = vpop.f32.mrb[80].mxu1 }
 0x4af   :  { %v6109_v6 = vpop.f32.mrb[84].mxu0  ;;  %v3474_v38 = vpop.f32.mrb[81].mxu1 }
 0x4b0   :  { %6649 = vst [vmem:[#allocation17_spill] sm:$0xff] %v6109_v6  ;;  %v2999_v29 = vpop.f32.mrb[85].mxu0 }
 0x4b2   :  { %v6113_v33 = vpop.f32.mrb[82].mxu1 }
 0x4b3   :  { %v6115_v51 = vpop.f32.mrb[86].mxu0  ;;  %v3479_v63 = vpop.f32.mrb[83].mxu1 }
 0x4b4   :  { %6650 = vst [vmem:[#allocation57_spill] sm:$0xff] %v6115_v51  ;;  %v3004_v25 = vpop.f32.mrb[87].mxu0  ;;  %v6137_v63 = vpop.permute.xlu1 %2578 }
 0x4b5   :  { %6655 = vst [vmem:[#allocation5_spill] sm:$0xff] %v6137_v63  ;;  %v6143_v51 = vpop.permute.xlu0 %2583 }
 0x4b6   :  { %v6119_v46 = vpop.f32.mrb[84].mxu1  ;;  %6658 = vst [vmem:[#allocation19_spill] sm:$0xff] %v6143_v51 }
 0x4b7   :  { %v6121_v59 = vpop.f32.mrb[88].mxu0  ;;  %v3484_v52 = vpop.f32.mrb[85].mxu1 }
 0x4b8   :  { %6651 = vst [vmem:[#allocation59_spill] sm:$0xff] %v6121_v59  ;;  %v3009_v9 = vpop.f32.mrb[89].mxu0 }
 0x4ba   :  { %v6127_v18 = vpop.f32.mrb[86].mxu1 }
 0x4bb   :  { %v6129_v47 = vpop.f32.mrb[90].mxu0  ;;  %v3489_v16 = vpop.f32.mrb[87].mxu1 }
 0x4bc   :  { %6652 = vst [vmem:[#allocation20_spill] sm:$0xff] %v6129_v47  ;;  %v3014_v30 = vpop.f32.mrb[91].mxu0  ;;  %v6145_v16 = vpop.permute.xlu1 %2588 }
 0x4bd   :  { %6659 = vst [vmem:[#allocation63_spill] sm:$0xff] %v6145_v16 }
 0x4be   :  { %v6133_v36 = vpop.f32.mrb[88].mxu1 }
 0x4bf   :  { %6653 = vst [vmem:[#allocation60_spill] sm:$0xff] %v6133_v36  ;;  %v6135_v38 = vpop.f32.mrb[92].mxu0  ;;  %v3494_v29 = vpop.f32.mrb[89].mxu1 }
 0x4c0   :  { %6654 = vst [vmem:[#allocation61_spill] sm:$0xff] %v6135_v38  ;;  %v3019_v25 = vpop.f32.mrb[93].mxu0  ;;  %v6151_v29 = vpop.permute.xlu0 %2593 }
 0x4c2   :  { %v6139_v52 = vpop.f32.mrb[90].mxu1 }
 0x4c3   :  { %6656 = vst [vmem:[#allocation8_spill] sm:$0xff] %v6139_v52  ;;  %v6141_v9 = vpop.f32.mrb[94].mxu0  ;;  %v3499_v59 = vpop.f32.mrb[91].mxu1 }
 0x4c4   :  { %6657 = vst [vmem:[#allocation22_spill] sm:$0xff] %v6141_v9  ;;  %v3024_v47 = vpop.f32.mrb[95].mxu0  ;;  %v2599_v9 = vpop.permute.xlu1 %2598 }
 0x4c5   :  { %v2903_v51 = vadd.f32 %v6023_v54, %v2599_v9 }
 0x4c6   :  { %v6147_v30 = vpop.f32.mrb[92].mxu1 }
 0x4c7   :  { %6660 = vst [vmem:[#allocation18_spill] sm:$0xff] %v6147_v30  ;;  %v6149_v6 = vpop.f32.mrb[96].mxu0  ;;  %v3504_v36 = vpop.f32.mrb[93].mxu1 }
 0x4c8   :  { %6661 = vst [vmem:[#allocation24_spill] sm:$0xff] %v6149_v6  ;;  %v3029_v38 = vpop.f32.mrb[97].mxu0  ;;  %v2604_v6 = vpop.permute.xlu0 %2603 }
 0x4c9   :  { %v2908_v38 = vadd.f32 %v6025_v56, %v2604_v6  ;;  %v2609_v54 = vpop.permute.xlu1 %2608 }
 0x4ca   :  { %v6153_v43 = vpop.f32.mrb[94].mxu1 }
 0x4cb   :  { %6662 = vst [vmem:[#allocation62_spill] sm:$0xff] %v6153_v43  ;;  %v6155_v25 = vpop.f32.mrb[98].mxu0  ;;  %v3509_v52 = vpop.f32.mrb[95].mxu1 }
 0x4cc   :  { %6663 = vst [vmem:[#allocation64_spill] sm:$0xff] %v6155_v25  ;;  %v3034_v59 = vpop.f32.mrb[99].mxu0 }
 0x4ce   :  { %v3512_v47 = vpop.f32.mrb[0].mxu1 }
 0x4cf   :  { %v3997_v16 = vadd.f32 %v3512_v47, %v2903_v51  ;;  %v3514_v63 = vpop.f32.mrb[1].mxu1  ;;  %v6158_v30 = vpop.f32.mrb[100].mxu0 }
 0x4d0   :  { %v3039_v36 = vpop.f32.mrb[101].mxu0  ;;  %v2913_v63 = vadd.f32 %v6027_v2, %v2609_v54 }
 0x4d1   :  { %3672 = vst.msk [vmem:[%s6425_s6 + $0xa0] sm:$0xff] %vm3651_vm4, %v3997_v16 }
 0x4d2   :  { %v3517_v52 = vpop.f32.mrb[2].mxu1 }
 0x4d3   :  { %v3999_v25 = vadd.f32 %v3517_v52, %v2908_v38  ;;  %v3519_v59 = vpop.f32.mrb[3].mxu1  ;;  %v3107_v43 = vpop.f32.mrb[6].mxu0 }
 0x4d4   :  { %v3956_v9 = vadd.f32 %v3107_v43, %v6057_v20  ;;  %v3109_v51 = vpop.f32.mrb[7].mxu0  ;;  %v2614_v38 = vpop.permute.xlu0 %2613 }
 0x4d5   :  { %3673 = vst.msk [vmem:[%s6425_s6 + $0xa8] sm:$0xff] %vm3651_vm4, %v3999_v25  ;;  %v2918_v43 = vadd.f32 %v6029_v50, %v2614_v38 }
 0x4d6   :  { %v3957_v56 = vadd.f32 %v3956_v9, %v6037_v8  ;;  %v3522_v6 = vpop.f32.mrb[4].mxu1  ;;  %v2619_v9 = vpop.permute.xlu1 %2618 }
 0x4d7   :  { %v4001_v47 = vadd.f32 %v3522_v6, %v2913_v63  ;;  %v3524_v16 = vpop.f32.mrb[5].mxu1  ;;  %v3112_v36 = vpop.f32.mrb[8].mxu0  ;;  %v2923_v51 = vadd.f32 %v6031_v5, %v2619_v9 }
 0x4d8   :  { %3652 = vst.msk [vmem:[%s6425_s6] sm:$0xff] %vm3651_vm4, %v3957_v56  ;;  %v3958_v20 = vadd.f32 %v3112_v36, %v6063_v60  ;;  %v3114_v2 = vpop.f32.mrb[9].mxu0  ;;  %v2624_v16 = vpop.permute.xlu0 %2623 }
 0x4d9   :  { %3674 = vst.msk [vmem:[%s6425_s6 + $0xb0] sm:$0xff] %vm3651_vm4, %v4001_v47  ;;  %v2928_v36 = vadd.f32 %v6033_v48, %v2624_v16 }
 0x4da   :  { %v3959_v8 = vadd.f32 %v3958_v20, %v6041_v19  ;;  %v3527_v25 = vpop.f32.mrb[6].mxu1 }
 0x4db   :  { %v4003_v52 = vadd.f32 %v3527_v25, %v2918_v43  ;;  %v3529_v59 = vpop.f32.mrb[7].mxu1  ;;  %v3117_v54 = vpop.f32.mrb[10].mxu0 }
 0x4dc   :  { %3653 = vst.msk [vmem:[%s6425_s6 + $0x8] sm:$0xff] %vm3651_vm4, %v3959_v8  ;;  %v3960_v60 = vadd.f32 %v3117_v54, %v6065_v41  ;;  %v3119_v50 = vpop.f32.mrb[11].mxu0  ;;  %v2629_v8 = vpop.permute.xlu1 %2628 }
 0x4dd   :  { %3675 = vst.msk [vmem:[%s6425_s6 + $0xb8] sm:$0xff] %vm3651_vm4, %v4003_v52  ;;  %v2933_v25 = vadd.f32 %v6035_v23, %v2629_v8 }
 0x4de   :  { %v3961_v19 = vadd.f32 %v3960_v60, %v6045_v39  ;;  %v3532_v63 = vpop.f32.mrb[8].mxu1  ;;  %v2634_v60 = vpop.permute.xlu0 %2633 }
 0x4df   :  { %v4005_v56 = vadd.f32 %v3532_v63, %v2923_v51  ;;  %v3534_v6 = vpop.f32.mrb[9].mxu1  ;;  %v3122_v47 = vpop.f32.mrb[12].mxu0  ;;  %v2938_v50 = vadd.f32 %v6039_v0, %v2634_v60 }
 0x4e0   :  { %3654 = vst.msk [vmem:[%s6425_s6 + $0x10] sm:$0xff] %vm3651_vm4, %v3961_v19  ;;  %v3962_v41 = vadd.f32 %v3122_v47, %v6071_v35  ;;  %v3124_v5 = vpop.f32.mrb[13].mxu0  ;;  %v2639_v6 = vpop.permute.xlu1 %2638 }
 0x4e1   :  { %3676 = vst.msk [vmem:[%s6425_s6 + $0xc0] sm:$0xff] %vm3651_vm4, %v4005_v56  ;;  %v2943_v47 = vadd.f32 %v6043_v37, %v2639_v6 }
 0x4e2   :  { %v3963_v39 = vadd.f32 %v3962_v41, %v6049_v44  ;;  %v3537_v38 = vpop.f32.mrb[10].mxu1 }
 0x4e3   :  { %v4007_v20 = vadd.f32 %v3537_v38, %v2928_v36  ;;  %v3539_v2 = vpop.f32.mrb[11].mxu1  ;;  %v3127_v43 = vpop.f32.mrb[14].mxu0 }
 0x4e4   :  { %3655 = vst.msk [vmem:[%s6425_s6 + $0x18] sm:$0xff] %vm3651_vm4, %v3963_v39  ;;  %v3964_v35 = vadd.f32 %v3127_v43, %v6077_v3  ;;  %v3129_v48 = vpop.f32.mrb[15].mxu0  ;;  %v2644_v39 = vpop.permute.xlu0 %2643 }
 0x4e5   :  { %3677 = vst.msk [vmem:[%s6425_s6 + $0xc8] sm:$0xff] %vm3651_vm4, %v4007_v20  ;;  %v2948_v38 = vadd.f32 %v6047_v45, %v2644_v39 }
 0x4e6   :  { %v3965_v44 = vadd.f32 %v3964_v35, %v6053_v22  ;;  %v3542_v52 = vpop.f32.mrb[12].mxu1  ;;  %v2649_v35 = vpop.permute.xlu1 %2648 }
 0x4e7   :  { %v4009_v59 = vadd.f32 %v3542_v52, %v2933_v25  ;;  %v3544_v54 = vpop.f32.mrb[13].mxu1  ;;  %v3132_v9 = vpop.f32.mrb[16].mxu0  ;;  %v2953_v48 = vadd.f32 %v6051_v58, %v2649_v35 }
 0x4e8   :  { %3656 = vst.msk [vmem:[%s6425_s6 + $0x20] sm:$0xff] %vm3651_vm4, %v3965_v44  ;;  %v3966_v3 = vadd.f32 %v3132_v9, %v6083_v12  ;;  %v3134_v23 = vpop.f32.mrb[17].mxu0  ;;  %v2654_v54 = vpop.permute.xlu0 %2653 }
 0x4e9   :  { %3678 = vst.msk [vmem:[%s6425_s6 + $0xd0] sm:$0xff] %vm3651_vm4, %v4009_v59  ;;  %v2958_v9 = vadd.f32 %v6055_v24, %v2654_v54 }
 0x4ea   :  { %v3967_v22 = vadd.f32 %v3966_v3, %v6059_v32  ;;  %v3547_v51 = vpop.f32.mrb[14].mxu1 }
 0x4eb   :  { %v4011_v19 = vadd.f32 %v3547_v51, %v2938_v50  ;;  %v3549_v63 = vpop.f32.mrb[15].mxu1  ;;  %v3137_v56 = vpop.f32.mrb[18].mxu0 }
 0x4ec   :  { %3657 = vst.msk [vmem:[%s6425_s6 + $0x28] sm:$0xff] %vm3651_vm4, %v3967_v22  ;;  %v3968_v12 = vadd.f32 %v3137_v56, %v6085_v62  ;;  %v3139_v0 = vpop.f32.mrb[19].mxu0  ;;  %v2659_v22 = vpop.permute.xlu1 %2658 }
 0x4ed   :  { %3679 = vst.msk [vmem:[%s6425_s6 + $0xd8] sm:$0xff] %vm3651_vm4, %v4011_v19  ;;  %v2963_v51 = vadd.f32 %v6061_v21, %v2659_v22 }
 0x4ee   :  { %v3969_v32 = vadd.f32 %v3968_v12, %v6067_v17  ;;  %v3552_v16 = vpop.f32.mrb[16].mxu1  ;;  %v2664_v12 = vpop.permute.xlu0 %2663 }
 0x4ef   :  { %v4013_v41 = vadd.f32 %v3552_v16, %v2943_v47  ;;  %v3554_v5 = vpop.f32.mrb[17].mxu1  ;;  %v3142_v36 = vpop.f32.mrb[20].mxu0  ;;  %v2968_v0 = vadd.f32 %v6069_v10, %v2664_v12 }
 0x4f0   :  { %3658 = vst.msk [vmem:[%s6425_s6 + $0x30] sm:$0xff] %vm3651_vm4, %v3969_v32  ;;  %v3970_v62 = vadd.f32 %v3142_v36, %v6091_v53  ;;  %v3144_v37 = vpop.f32.mrb[21].mxu0  ;;  %v2669_v5 = vpop.permute.xlu1 %2668 }
 0x4f1   :  { %3680 = vst.msk [vmem:[%s6425_s6 + $0xe0] sm:$0xff] %vm3651_vm4, %v4013_v41  ;;  %v2973_v36 = vadd.f32 %v6075_v11, %v2669_v5 }
 0x4f2   :  { %v3971_v17 = vadd.f32 %v3970_v62, %v6073_v7  ;;  %v3557_v20 = vpop.f32.mrb[18].mxu1 }
 0x4f3   :  { %v4015_v2 = vadd.f32 %v3557_v20, %v2948_v38  ;;  %v3559_v43 = vpop.f32.mrb[19].mxu1  ;;  %v3147_v8 = vpop.f32.mrb[22].mxu0 }
 0x4f4   :  { %3659 = vst.msk [vmem:[%s6425_s6 + $0x38] sm:$0xff] %vm3651_vm4, %v3971_v17  ;;  %v3972_v53 = vadd.f32 %v3147_v8, %v6097_v31  ;;  %v3149_v45 = vpop.f32.mrb[23].mxu0  ;;  %v2674_v17 = vpop.permute.xlu0 %2673 }
 0x4f5   :  { %3681 = vst.msk [vmem:[%s6425_s6 + $0xe8] sm:$0xff] %vm3651_vm4, %v4015_v2  ;;  %v2978_v20 = vadd.f32 %v6081_v13, %v2674_v17 }
 0x4f6   :  { %v3973_v7 = vadd.f32 %v3972_v53, %v6079_v14  ;;  %v3562_v25 = vpop.f32.mrb[20].mxu1  ;;  %v2679_v53 = vpop.permute.xlu1 %2678 }
 0x4f7   :  { %v4017_v44 = vadd.f32 %v3562_v25, %v2953_v48  ;;  %v3564_v52 = vpop.f32.mrb[21].mxu1  ;;  %v3152_v59 = vpop.f32.mrb[24].mxu0  ;;  %v2983_v45 = vadd.f32 %v6089_v28, %v2679_v53 }
 0x4f8   :  { %3660 = vst.msk [vmem:[%s6425_s6 + $0x40] sm:$0xff] %vm3651_vm4, %v3973_v7  ;;  %v3974_v31 = vadd.f32 %v3152_v59, %v6103_v4  ;;  %v3154_v58 = vpop.f32.mrb[25].mxu0  ;;  %v2684_v52 = vpop.permute.xlu0 %2683 }
 0x4f9   :  { %3682 = vst.msk [vmem:[%s6425_s6 + $0xf0] sm:$0xff] %vm3651_vm4, %v4017_v44  ;;  %v2988_v59 = vadd.f32 %v6095_v61, %v2684_v52 }
 0x4fa   :  { %v3975_v14 = vadd.f32 %v3974_v31, %v6087_v40  ;;  %v3567_v60 = vpop.f32.mrb[22].mxu1 }
 0x4fb   :  { %v4019_v3 = vadd.f32 %v3567_v60, %v2958_v9  ;;  %v3569_v23 = vpop.f32.mrb[23].mxu1  ;;  %v3157_v50 = vpop.f32.mrb[26].mxu0 }
 0x4fc   :  { %3661 = vst.msk [vmem:[%s6425_s6 + $0x48] sm:$0xff] %vm3651_vm4, %v3975_v14  ;;  %v3976_v4 = vadd.f32 %v3157_v50, %v6105_v1  ;;  %v3159_v24 = vpop.f32.mrb[27].mxu0  ;;  %v2689_v14 = vpop.permute.xlu1 %2688 }
 0x4fd   :  { %3683 = vst.msk [vmem:[%s6425_s6 + $0xf8] sm:$0xff] %vm3651_vm4, %v4019_v3  ;;  %v6665_v3 = vld [vmem:[#allocation58_spill] sm:$0xff] }
 0x4fe   :  { %v3977_v40 = vadd.f32 %v3976_v4, %v6093_v55  ;;  %v3572_v19 = vpop.f32.mrb[24].mxu1  ;;  %v2993_v23 = vadd.f32 %v6665_v3, %v2689_v14 }
 0x4ff   :  { %v4021_v63 = vadd.f32 %v3572_v19, %v2963_v51  ;;  %v3574_v56 = vpop.f32.mrb[25].mxu1  ;;  %v3162_v6 = vpop.f32.mrb[28].mxu0  ;;  %v6667_v19 = vld [vmem:[#allocation19_spill] sm:$0xff] }
 0x500   :  { %3662 = vst.msk [vmem:[%s6425_s6 + $0x50] sm:$0xff] %vm3651_vm4, %v3977_v40  ;;  %v3978_v1 = vadd.f32 %v3162_v6, %v6111_v57  ;;  %v3164_v21 = vpop.f32.mrb[29].mxu0  ;;  %v2694_v40 = vpop.permute.xlu0 %2693  ;;  %v6668_v6 = vld [vmem:[#allocation17_spill] sm:$0xff] }
 0x501   :  { %3684 = vst.msk [vmem:[%s6425_s6 + $0x100] sm:$0xff] %vm3651_vm4, %v4021_v63  ;;  %v2998_v12 = vadd.f32 %v6668_v6, %v2694_v40 }
 0x502   :  { %v3979_v55 = vadd.f32 %v3978_v1, %v6099_v15  ;;  %v3577_v47 = vpop.f32.mrb[26].mxu1  ;;  %v6669_v1 = vld [vmem:[#allocation8_spill] sm:$0xff] }
 0x503   :  { %v4023_v32 = vadd.f32 %v3577_v47, %v2968_v0  ;;  %v3579_v16 = vpop.f32.mrb[27].mxu1  ;;  %v3167_v41 = vpop.f32.mrb[30].mxu0 }
 0x504   :  { %3663 = vst.msk [vmem:[%s6425_s6 + $0x58] sm:$0xff] %vm3651_vm4, %v3979_v55  ;;  %v3980_v57 = vadd.f32 %v3167_v41, %v6117_v27  ;;  %v3169_v10 = vpop.f32.mrb[31].mxu0  ;;  %v2699_v16 = vpop.permute.xlu1 %2698  ;;  %v6670_v41 = vld [vmem:[#allocation63_spill] sm:$0xff] }
 0x505   :  { %3685 = vst.msk [vmem:[%s6425_s6 + $0x108] sm:$0xff] %vm3651_vm4, %v4023_v32  ;;  %v6671_v10 = vld [vmem:[#allocation57_spill] sm:$0xff] }
 0x506   :  { %v3981_v15 = vadd.f32 %v3980_v57, %v6107_v34  ;;  %v3582_v39 = vpop.f32.mrb[28].mxu1 }
 0x507   :  { %v4025_v62 = vadd.f32 %v3582_v39, %v2973_v36  ;;  %v3584_v37 = vpop.f32.mrb[29].mxu1  ;;  %v3172_v38 = vpop.f32.mrb[32].mxu0  ;;  %v3003_v36 = vadd.f32 %v6671_v10, %v2699_v16 }
 0x508   :  { %3664 = vst.msk [vmem:[%s6425_s6 + $0x60] sm:$0xff] %vm3651_vm4, %v3981_v15  ;;  %v3982_v27 = vadd.f32 %v3172_v38, %v6123_v42  ;;  %v3174_v11 = vpop.f32.mrb[33].mxu0  ;;  %v6672_v15 = vld [vmem:[#allocation18_spill] sm:$0xff] }
 0x509   :  { %3686 = vst.msk [vmem:[%s6425_s6 + $0x110] sm:$0xff] %vm3651_vm4, %v4025_v62 }
 0x50a   :  { %v3983_v34 = vadd.f32 %v3982_v27, %v6113_v33  ;;  %v3587_v2 = vpop.f32.mrb[30].mxu1  ;;  %v2704_v27 = vpop.permute.xlu0 %2703 }
 0x50b   :  { %v4027_v43 = vadd.f32 %v3587_v2, %v2978_v20  ;;  %v3589_v8 = vpop.f32.mrb[31].mxu1  ;;  %v3177_v35 = vpop.f32.mrb[34].mxu0 }
 0x50c   :  { %3665 = vst.msk [vmem:[%s6425_s6 + $0x68] sm:$0xff] %vm3651_vm4, %v3983_v34  ;;  %v3984_v42 = vadd.f32 %v3177_v35, %v6125_v49  ;;  %v3179_v13 = vpop.f32.mrb[35].mxu0  ;;  %v6673_v34 = vld [vmem:[#allocation59_spill] sm:$0xff] }
 0x50d   :  { %3687 = vst.msk [vmem:[%s6425_s6 + $0x118] sm:$0xff] %vm3651_vm4, %v4027_v43  ;;  %v3008_v2 = vadd.f32 %v6673_v34, %v2704_v27  ;;  %v6674_v43 = vld [vmem:[#allocation62_spill] sm:$0xff]  ;;  %v2709_v13 = vpop.permute.xlu1 %2708 }
 0x50e   :  { %v3985_v33 = vadd.f32 %v3984_v42, %v6119_v46  ;;  %v3592_v48 = vpop.f32.mrb[32].mxu1 }
 0x50f   :  { %v4029_v7 = vadd.f32 %v3592_v48, %v2983_v45  ;;  %v3594_v25 = vpop.f32.mrb[33].mxu1  ;;  %v3182_v44 = vpop.f32.mrb[36].mxu0 }
 0x510   :  { %3666 = vst.msk [vmem:[%s6425_s6 + $0x70] sm:$0xff] %vm3651_vm4, %v3985_v33  ;;  %v3986_v49 = vadd.f32 %v3182_v44, %v6131_v26  ;;  %v3184_v28 = vpop.f32.mrb[37].mxu0  ;;  %v6664_v26 = vld [vmem:[#allocation5_spill] sm:$0xff]  ;;  %v2714_v25 = vpop.permute.xlu0 %2713 }
 0x511   :  { %3688 = vst.msk [vmem:[%s6425_s6 + $0x120] sm:$0xff] %vm3651_vm4, %v4029_v7  ;;  %v6676_v44 = vld [vmem:[#allocation61_spill] sm:$0xff] }
 0x512   :  { %v3987_v46 = vadd.f32 %v3986_v49, %v6127_v18  ;;  %v3597_v54 = vpop.f32.mrb[34].mxu1  ;;  %v6666_v18 = vld [vmem:[#allocation60_spill] sm:$0xff]  ;;  %v3018_v52 = vadd.f32 %v6676_v44, %v2714_v25 }
 0x513   :  { %v4031_v31 = vadd.f32 %v3597_v54, %v2988_v59  ;;  %v3599_v58 = vpop.f32.mrb[35].mxu1  ;;  %v3187_v9 = vpop.f32.mrb[38].mxu0  ;;  %v6677_v54 = vld [vmem:[#allocation22_spill] sm:$0xff] }
 0x514   :  { %3667 = vst.msk [vmem:[%s6425_s6 + $0x78] sm:$0xff] %vm3651_vm4, %v3987_v46  ;;  %v3988_v60 = vadd.f32 %v3187_v9, %v6664_v26  ;;  %v3189_v61 = vpop.f32.mrb[39].mxu0  ;;  %v2719_v46 = vpop.permute.xlu1 %2718 }
 0x515   :  { %3689 = vst.msk [vmem:[%s6425_s6 + $0x128] sm:$0xff] %vm3651_vm4, %v4031_v31  ;;  %v3023_v31 = vadd.f32 %v6677_v54, %v2719_v46  ;;  %v2724_v26 = vpop.permute.xlu0 %2723 }
 0x516   :  { %v3989_v50 = vadd.f32 %v3988_v60, %v6666_v18  ;;  %v3602_v22 = vpop.f32.mrb[36].mxu1  ;;  %v6678_v60 = vld [vmem:[#allocation24_spill] sm:$0xff] }
 0x517   :  { %v4033_v4 = vadd.f32 %v3602_v22, %v2993_v23  ;;  %v3604_v24 = vpop.f32.mrb[37].mxu1  ;;  %v3192_v51 = vpop.f32.mrb[40].mxu0  ;;  %v3028_v61 = vadd.f32 %v6678_v60, %v2724_v26  ;;  %v6679_v22 = vld [vmem:[#allocation64_spill] sm:$0xff] }
 0x518   :  { %3668 = vst.msk [vmem:[%s6425_s6 + $0x80] sm:$0xff] %vm3651_vm4, %v3989_v50  ;;  %v3990_v63 = vadd.f32 %v3192_v51, %v6667_v19  ;;  %v3194_v56 = vpop.f32.mrb[41].mxu0  ;;  %v2729_v50 = vpop.permute.xlu1 %2728 }
 0x519   :  { %3690 = vst.msk [vmem:[%s6425_s6 + $0x130] sm:$0xff] %vm3651_vm4, %v4033_v4  ;;  %v3033_v4 = vadd.f32 %v6679_v22, %v2729_v50  ;;  %v2734_v19 = vpop.permute.xlu0 %2733 }
 0x51a   :  { %v3991_v21 = vadd.f32 %v3990_v63, %v6669_v1  ;;  %v3607_v0 = vpop.f32.mrb[38].mxu1  ;;  %v3038_v63 = vadd.f32 %v6158_v30, %v2734_v19 }
 0x51b   :  { %v4035_v55 = vadd.f32 %v3607_v0, %v2998_v12  ;;  %v3609_v47 = vpop.f32.mrb[39].mxu1  ;;  %v3197_v32 = vpop.f32.mrb[42].mxu0 }
 0x51c   :  { %3669 = vst.msk [vmem:[%s6425_s6 + $0x88] sm:$0xff] %vm3651_vm4, %v3991_v21  ;;  %v3992_v5 = vadd.f32 %v3197_v32, %v6670_v41  ;;  %v3199_v57 = vpop.f32.mrb[43].mxu0 }
 0x51d   :  { %3691 = vst.msk [vmem:[%s6425_s6 + $0x138] sm:$0xff] %vm3651_vm4, %v4035_v55 }
 0x51e   :  { %v3993_v39 = vadd.f32 %v3992_v5, %v6672_v15  ;;  %v3612_v62 = vpop.f32.mrb[40].mxu1 }
 0x51f   :  { %v4037_v37 = vadd.f32 %v3612_v62, %v3003_v36  ;;  %v3614_v38 = vpop.f32.mrb[41].mxu1  ;;  %v3202_v17 = vpop.f32.mrb[44].mxu0 }
 0x520   :  { %3670 = vst.msk [vmem:[%s6425_s6 + $0x90] sm:$0xff] %vm3651_vm4, %v3993_v39  ;;  %v3994_v11 = vadd.f32 %v3202_v17, %v6151_v29  ;;  %v3204_v20 = vpop.f32.mrb[45].mxu0  ;;  %v6675_v29 = vld [vmem:[#allocation20_spill] sm:$0xff] }
 0x521   :  { %3692 = vst.msk [vmem:[%s6425_s6 + $0x140] sm:$0xff] %vm3651_vm4, %v4037_v37  ;;  %v3013_v45 = vadd.f32 %v6675_v29, %v2709_v13 }
 0x522   :  { %v3995_v8 = vadd.f32 %v3994_v11, %v6674_v43  ;;  %v3617_v35 = vpop.f32.mrb[42].mxu1 }
 0x523   :  { %v4039_v53 = vadd.f32 %v3617_v35, %v3008_v2  ;;  %v3619_v42 = vpop.f32.mrb[43].mxu1 }
 0x524   :  { %3671 = vst.msk [vmem:[%s6425_s6 + $0x98] sm:$0xff] %vm3651_vm4, %v3995_v8 }
 0x525   :  { %3693 = vst.msk [vmem:[%s6425_s6 + $0x148] sm:$0xff] %vm3651_vm4, %v4039_v53 }
 0x526   :  { %v3622_v33 = vpop.f32.mrb[44].mxu1 }
 0x527   :  { %v4041_v48 = vadd.f32 %v3622_v33, %v3013_v45  ;;  %v3624_v7 = vpop.f32.mrb[45].mxu1 }
 0x529   :  { %3694 = vst.msk [vmem:[%s6425_s6 + $0x150] sm:$0xff] %vm3651_vm4, %v4041_v48 }
 0x52a   :  { %v3627_v49 = vpop.f32.mrb[46].mxu1 }
 0x52b   :  { %v4043_v28 = vadd.f32 %v3627_v49, %v3018_v52  ;;  %v3629_v59 = vpop.f32.mrb[47].mxu1 }
 0x52d   :  { %3695 = vst.msk [vmem:[%s6425_s6 + $0x158] sm:$0xff] %vm3651_vm4, %v4043_v28 }
 0x52e   :  { %v3632_v58 = vpop.f32.mrb[48].mxu1 }
 0x52f   :  { %v4045_v9 = vadd.f32 %v3632_v58, %v3023_v31  ;;  %v3634_v14 = vpop.f32.mrb[49].mxu1 }
 0x531   :  { %3696 = vst.msk [vmem:[%s6425_s6 + $0x160] sm:$0xff] %vm3651_vm4, %v4045_v9 }
 0x532   :  { %v3637_v3 = vpop.f32.mrb[50].mxu1 }
 0x533   :  { %v4047_v23 = vadd.f32 %v3637_v3, %v3028_v61  ;;  %v3639_v18 = vpop.f32.mrb[51].mxu1 }
 0x535   :  { %3697 = vst.msk [vmem:[%s6425_s6 + $0x168] sm:$0xff] %vm3651_vm4, %v4047_v23 }
 0x536   :  { %v3642_v24 = vpop.f32.mrb[52].mxu1 }
 0x537   :  { %v4049_v51 = vadd.f32 %v3642_v24, %v3033_v4  ;;  %v3644_v40 = vpop.f32.mrb[53].mxu1 }
 0x539   :  { %3698 = vst.msk [vmem:[%s6425_s6 + $0x170] sm:$0xff] %vm3651_vm4, %v4049_v51 }
 0x53a   :  { %v3647_v56 = vpop.f32.mrb[54].mxu1 }
 0x53b   :  { %v4051_v6 = vadd.f32 %v3647_v56, %v3038_v63  ;;  %v3649_v12 = vpop.f32.mrb[55].mxu1 }
 0x53d   :  { %3699 = vst.msk [vmem:[%s6425_s6 + $0x178] sm:$0xff] %vm3651_vm4, %v4051_v6 }
 0x53e   :  { %3704 = vsyncpa [#allocation3], 1 }

</bundles_post_ra>
